<compile_context>
chip_gen: v6e
topology: v6e:2x2x1
jax: 0.10.0
libtpu: 0.0.40
codegen_flags: <defaults>
</compile_context>

<pallas_src>
import functools

import jax
import jax.numpy as jnp
import numpy as np
from jax import lax
from jax.experimental import pallas as pl
from jax.experimental.pallas import tpu as pltpu


def _round_up(x, m):
    return (x + m - 1) // m * m


# ------------------------------ Pallas kernel ------------------------------ #

def _tower_kernel(x_ref, wc_ref, bc_ref, wh_ref, bh_ref, o_ref, act_ref, *,
                  H, W, Cp, Chp, n_conv):
    """Fused 4x(conv3x3+ReLU) + (conv3x3+sigmoid) for one batch element.

    x_ref:   (1, H+2, W+2, Cp)   bf16, spatially pre-padded, channel-padded
    wc_ref:  (n_conv, 9*Cp, Cp)  bf16, im2col layout (row = (ky*3+kx)*Cp + cin)
    bc_ref:  (n_conv, 1, Cp)     f32
    wh_ref:  (9*Cp, Chp)         bf16
    bh_ref:  (1, Chp)            f32
    o_ref:   (1, H, W, Chp)      f32, lane-dense head output
    act_ref: (H+2, W+2, Cp)      f32 VMEM scratch, zero halo kept across layers
    """

    def im2col(src):
        # src: (H+2, W+2, Cp)  ->  (H*W, 9*Cp) bf16; tap index = ky*3 + kx.
        cols = []
        for ky in range(3):
            for kx in range(3):
                cols.append(
                    src[ky:ky + H, kx:kx + W, :]
                    .reshape(H * W, Cp)
                    .astype(jnp.bfloat16))
        return jnp.concatenate(cols, axis=-1)

    # Zero the scratch once so the 1-pixel halo stays zero for every layer.
    act_ref[...] = jnp.zeros_like(act_ref)

    cur = x_ref[0]                                       # (H+2, W+2, Cp) bf16
    for l in range(n_conv):
        patches = im2col(cur)                            # (H*W, 9*Cp) bf16
        y = jnp.dot(patches, wc_ref[l],
                    preferred_element_type=jnp.float32)  # (H*W, Cp) f32
        y = jnp.maximum(y + bc_ref[l], 0.0)              # bias + ReLU (f32)
        act_ref[1:H + 1, 1:W + 1, :] = y.reshape(H, W, Cp)
        cur = act_ref[...]

    patches = im2col(cur)
    y = jnp.dot(patches, wh_ref[...], preferred_element_type=jnp.float32)
    y = jax.nn.sigmoid(y + bh_ref[...])                  # (H*W, Chp) f32
    o_ref[...] = y.reshape(1, H, W, Chp)


def fused_tower(x_nchw, packed):
    """One FPN level: (B, Cin, H, W) f32 -> (B, H, W, Chp) f32 head output."""
    B, Cin, H, W = x_nchw.shape
    Cp, Chp, n_conv = packed["Cp"], packed["Chp"], packed["n_conv"]

    x = jnp.transpose(x_nchw, (0, 2, 3, 1)).astype(jnp.bfloat16)
    # One pad per level: +1 spatial halo, lane-dense channel pad.
    x = jnp.pad(x, ((0, 0), (1, 1), (1, 1), (0, Cp - Cin)))

    kernel = functools.partial(_tower_kernel, H=H, W=W, Cp=Cp, Chp=Chp,
                               n_conv=n_conv)
    return pl.pallas_call(
        kernel,
        out_shape=jax.ShapeDtypeStruct((B, H, W, Chp), jnp.float32),
        grid_spec=pltpu.PrefetchScalarGridSpec(
            num_scalar_prefetch=0,
            grid=(B,),
            in_specs=[
                pl.BlockSpec((1, H + 2, W + 2, Cp), lambda b: (b, 0, 0, 0)),
                pl.BlockSpec((n_conv, 9 * Cp, Cp), lambda b: (0, 0, 0)),
                pl.BlockSpec((n_conv, 1, Cp), lambda b: (0, 0, 0)),
                pl.BlockSpec((9 * Cp, Chp), lambda b: (0, 0)),
                pl.BlockSpec((1, Chp), lambda b: (0, 0)),
            ],
            out_specs=pl.BlockSpec((1, H, W, Chp), lambda b: (b, 0, 0, 0)),
            scratch_shapes=[pltpu.VMEM((H + 2, W + 2, Cp), jnp.float32)],
        ),
        compiler_params=pltpu.CompilerParams(
            dimension_semantics=("parallel",),
            vmem_limit_bytes=48 * 1024 * 1024),
    )(x, packed["wc"], packed["bc"], packed["wh"], packed["bh"])


# ------------------------------ Parameters --------------------------------- #

def init_params(key, num_anchors, in_channels):
    """PyTorch-shaped params: conv weight HWIO (3,3,Cin,Cout), bias (Cout,)."""
    params = {"conv": [], "bbox_reg": None}
    keys = jax.random.split(key, 10)
    k = 0
    for _ in range(4):  # 4x Conv2d(in_channels, in_channels, 3, padding=1)
        w = jax.random.normal(keys[k], (3, 3, in_channels, in_channels),
                              jnp.float32) * 0.1
        b = jax.random.normal(keys[k + 1], (in_channels,), jnp.float32) * 0.05
        params["conv"].append((w, b))
        k += 2
    # Conv2d(in_channels, 4 * num_anchors, 3, padding=1)
    w = jax.random.normal(keys[k], (3, 3, in_channels, 4 * num_anchors),
                          jnp.float32) * 0.1
    b = jax.random.normal(keys[k + 1], (4 * num_anchors,), jnp.float32) * 0.05
    params["bbox_reg"] = (w, b)
    return params


def pack_params(params, num_anchors, in_channels):
    """Pad channels to 128-multiples (lane-dense), flatten taps into K, cast bf16."""
    Cin = in_channels
    Ch = 4 * num_anchors
    Cp = _round_up(Cin, 128)
    Chp = _round_up(Ch, 128)

    wc, bc = [], []
    for (w, b) in params["conv"]:
        wpad = jnp.zeros((3, 3, Cp, Cp), jnp.float32)
        wpad = wpad.at[:, :, :Cin, :Cin].set(w)
        wc.append(wpad.reshape(9 * Cp, Cp))
        bc.append(jnp.zeros((1, Cp), jnp.float32).at[0, :Cin].set(b))

    w, b = params["bbox_reg"]
    whp = jnp.zeros((3, 3, Cp, Chp), jnp.float32).at[:, :, :Cin, :Ch].set(w)
    bhp = jnp.zeros((1, Chp), jnp.float32).at[0, :Ch].set(b)

    return {
        "Cp": Cp, "Chp": Chp, "n_conv": len(params["conv"]),
        "wc": jnp.stack(wc).astype(jnp.bfloat16),           # (4, 9*Cp, Cp)
        "bc": jnp.stack(bc),                                 # (4, 1, Cp) f32
        "wh": whp.reshape(9 * Cp, Chp).astype(jnp.bfloat16),  # (9*Cp, Chp)
        "bh": bhp,                                           # (1, Chp) f32
    }


def box_regression_subnet(features_nchw, packed, num_anchors):
    """features: list of (B, C, H, W). Returns (B, sum(H*W*A), 4)."""
    all_bbox = []
    for p in features_nchw:
        B, _, H, W = p.shape
        head = fused_tower(p, packed)                    # (B, H, W, Chp)
        x = head[..., :4 * num_anchors]                  # (B, H, W, 4*A)
        # PyTorch: view(B, A, 4, H, W).permute(0, 3, 4, 1, 2).flatten(1, 3).
        # In NHWC the channel index is a*4 + k, so this is a pure reshape:
        all_bbox.append(x.reshape(B, H * W * num_anchors, 4))
    return jnp.concatenate(all_bbox, axis=1)


# ---------------------------- Pure-JAX reference --------------------------- #
# Mirrors the kernel's bf16-inputs / f32-accumulation numerics exactly.

def _ref_conv3x3(x, w, b, activation):
    y = lax.conv_general_dilated(
        x.astype(jnp.bfloat16), w.astype(jnp.bfloat16),
        window_strides=(1, 1), padding="SAME",
        dimension_numbers=("NHWC", "HWIO", "NHWC"),
        preferred_element_type=jnp.float32) + b.reshape(1, 1, 1, -1)
    return jnp.maximum(y, 0.0) if activation == "relu" else jax.nn.sigmoid(y)


def _ref_subnet(features_nchw, params, num_anchors):
    outs = []
    for p in features_nchw:
        B, _, H, W = p.shape
        x = jnp.transpose(p, (0, 2, 3, 1))
        for (w, b) in params["conv"]:
            x = _ref_conv3x3(x, w, b, "relu")
        w, b = params["bbox_reg"]
        x = _ref_conv3x3(x, w, b, "sigmoid")
        outs.append(x.reshape(B, H * W * num_anchors, 4))
    return jnp.concatenate(outs, axis=1)


# ---------------------------------- main ----------------------------------- #

if __name__ == "__main__":
    num_anchors = 3
    in_channels = 16
    B = 2

    key = jax.random.PRNGKey(0)
    k_par, k_f1, k_f2 = jax.random.split(key, 3)
    params = init_params(k_par, num_anchors, in_channels)
    packed = pack_params(params, num_anchors, in_channels)

    # Two FPN levels (NCHW, like the PyTorch module expects).
    features = [
        jax.random.normal(k_f1, (B, in_channels, 8, 8), jnp.float32),
        jax.random.normal(k_f2, (B, in_channels, 4, 4), jnp.float32),
    ]

    out = jax.block_until_ready(
        box_regression_subnet(features, packed, num_anchors))

    expected_len = sum(h * w * num_anchors
                       for (_, _, h, w) in [f.shape for f in features])
    assert out.shape == (B, expected_len, 4), out.shape

    ref = jax.block_until_ready(_ref_subnet(features, params, num_anchors))
    np.testing.assert_allclose(np.asarray(out), np.asarray(ref),
                               rtol=5e-3, atol=5e-3)

    print("KERNEL_OK")
</pallas_src>

<mosaic_0001>
module attributes {stable_mosaic.version = 11 : i64} {
  func.func @_tower_kernel(%arg0: i32, %arg1: memref<1x10x10x128xbf16, #tpu.memory_space<vmem>>, %arg2: memref<4x1152x128xbf16, #tpu.memory_space<vmem>>, %arg3: memref<4x1x128xf32, #tpu.memory_space<vmem>>, %arg4: memref<1152x128xbf16, #tpu.memory_space<vmem>>, %arg5: memref<1x128xf32, #tpu.memory_space<vmem>>, %arg6: memref<1x8x8x128xf32, #tpu.memory_space<vmem>>, %arg7: memref<10x10x128xf32, #tpu.memory_space<vmem>>) attributes {dimension_semantics = [#tpu.dimension_semantics<parallel>], iteration_bounds = array<i64: 2>, scalar_prefetch = 0 : i64, scratch_operands = 1 : i64, tpu.core_type = #tpu.core_type<tc>, window_params = [{transform_indices = @transform_0, window_bounds = array<i64: 1, 10, 10, 128>}, {pipeline_mode = #tpu.pipeline_mode<synchronous>, transform_indices = @transform_1, window_bounds = array<i64: 4, 1152, 128>}, {pipeline_mode = #tpu.pipeline_mode<synchronous>, transform_indices = @transform_2, window_bounds = array<i64: 4, 1, 128>}, {pipeline_mode = #tpu.pipeline_mode<synchronous>, transform_indices = @transform_3, window_bounds = array<i64: 1152, 128>}, {pipeline_mode = #tpu.pipeline_mode<synchronous>, transform_indices = @transform_4, window_bounds = array<i64: 1, 128>}, {transform_indices = @transform_5, window_bounds = array<i64: 1, 8, 8, 128>}]} {
    %cst = arith.constant 0.000000e+00 : f32
    %0 = vector.broadcast %cst : f32 to vector<10x10x128xf32>
    %c0 = arith.constant 0 : index
    %c0_0 = arith.constant 0 : index
    %c0_1 = arith.constant 0 : index
    %1 = vector.load %arg7[%c0, %c0_0, %c0_1] : memref<10x10x128xf32, #tpu.memory_space<vmem>>, vector<10x10x128xf32>
    tpu.vector_store %arg7[%c0, %c0_0, %c0_1], %0 {strides = array<i32>} : memref<10x10x128xf32, #tpu.memory_space<vmem>>, vector<10x10x128xf32>,
    %c0_2 = arith.constant 0 : index
    %c0_3 = arith.constant 0 : index
    %c0_4 = arith.constant 0 : index
    %c0_5 = arith.constant 0 : index
    %2 = vector.load %arg1[%c0_2, %c0_3, %c0_4, %c0_5] : memref<1x10x10x128xbf16, #tpu.memory_space<vmem>>, vector<1x10x10x128xbf16>
    %3 = vector.shape_cast %2 : vector<1x10x10x128xbf16> to vector<10x10x128xbf16>
    %4 = vector.extract_strided_slice %3 {offsets = [0, 0, 0], sizes = [8, 8, 128], strides = [1, 1, 1]} : vector<10x10x128xbf16> to vector<8x8x128xbf16>
    %5 = vector.shape_cast %4 : vector<8x8x128xbf16> to vector<64x128xbf16>
    %6 = vector.extract_strided_slice %3 {offsets = [0, 1, 0], sizes = [8, 8, 128], strides = [1, 1, 1]} : vector<10x10x128xbf16> to vector<8x8x128xbf16>
    %7 = vector.shape_cast %6 : vector<8x8x128xbf16> to vector<64x128xbf16>
    %8 = vector.extract_strided_slice %3 {offsets = [0, 2, 0], sizes = [8, 8, 128], strides = [1, 1, 1]} : vector<10x10x128xbf16> to vector<8x8x128xbf16>
    %9 = vector.shape_cast %8 : vector<8x8x128xbf16> to vector<64x128xbf16>
    %10 = vector.extract_strided_slice %3 {offsets = [1, 0, 0], sizes = [8, 8, 128], strides = [1, 1, 1]} : vector<10x10x128xbf16> to vector<8x8x128xbf16>
    %11 = vector.shape_cast %10 : vector<8x8x128xbf16> to vector<64x128xbf16>
    %12 = vector.extract_strided_slice %3 {offsets = [1, 1, 0], sizes = [8, 8, 128], strides = [1, 1, 1]} : vector<10x10x128xbf16> to vector<8x8x128xbf16>
    %13 = vector.shape_cast %12 : vector<8x8x128xbf16> to vector<64x128xbf16>
    %14 = vector.extract_strided_slice %3 {offsets = [1, 2, 0], sizes = [8, 8, 128], strides = [1, 1, 1]} : vector<10x10x128xbf16> to vector<8x8x128xbf16>
    %15 = vector.shape_cast %14 : vector<8x8x128xbf16> to vector<64x128xbf16>
    %16 = vector.extract_strided_slice %3 {offsets = [2, 0, 0], sizes = [8, 8, 128], strides = [1, 1, 1]} : vector<10x10x128xbf16> to vector<8x8x128xbf16>
    %17 = vector.shape_cast %16 : vector<8x8x128xbf16> to vector<64x128xbf16>
    %18 = vector.extract_strided_slice %3 {offsets = [2, 1, 0], sizes = [8, 8, 128], strides = [1, 1, 1]} : vector<10x10x128xbf16> to vector<8x8x128xbf16>
    %19 = vector.shape_cast %18 : vector<8x8x128xbf16> to vector<64x128xbf16>
    %20 = vector.extract_strided_slice %3 {offsets = [2, 2, 0], sizes = [8, 8, 128], strides = [1, 1, 1]} : vector<10x10x128xbf16> to vector<8x8x128xbf16>
    %21 = vector.shape_cast %20 : vector<8x8x128xbf16> to vector<64x128xbf16>
    %22 = tpu.concatenate %5, %7, %9, %11, %13, %15, %17, %19, %21 in 1 : vector<64x128xbf16>, vector<64x128xbf16>, vector<64x128xbf16>, vector<64x128xbf16>, vector<64x128xbf16>, vector<64x128xbf16>, vector<64x128xbf16>, vector<64x128xbf16>, vector<64x128xbf16> -> vector<64x1152xbf16>
    %c0_6 = arith.constant 0 : index
    %c0_7 = arith.constant 0 : index
    %c0_8 = arith.constant 0 : index
    %23 = vector.load %arg2[%c0_6, %c0_7, %c0_8] : memref<4x1152x128xbf16, #tpu.memory_space<vmem>>, vector<1x1152x128xbf16>
    %24 = vector.shape_cast %23 : vector<1x1152x128xbf16> to vector<1152x128xbf16>
    %cst_9 = arith.constant dense<0.000000e+00> : vector<64x128xf32>
    %25 = tpu.matmul %22, %24, %cst_9 {dimension_numbers = #tpu.dot_dimension_numbers<[1], [0], [0], [1], [0, 0, 1, 1], [], []>} : vector<64x1152xbf16>, vector<1152x128xbf16>, vector<64x128xf32> -> vector<64x128xf32>
    %c0_10 = arith.constant 0 : index
    %c0_11 = arith.constant 0 : index
    %c0_12 = arith.constant 0 : index
    %26 = vector.load %arg3[%c0_10, %c0_11, %c0_12] : memref<4x1x128xf32, #tpu.memory_space<vmem>>, vector<1x1x128xf32>
    %27 = vector.shape_cast %26 : vector<1x1x128xf32> to vector<1x128xf32>
    %28 = vector.broadcast %27 : vector<1x128xf32> to vector<64x128xf32>
    %29 = arith.addf %25, %28 : vector<64x128xf32>
    %cst_13 = arith.constant 0.000000e+00 : f32
    %30 = vector.broadcast %cst_13 : f32 to vector<64x128xf32>
    %31 = arith.maximumf %29, %30 : vector<64x128xf32>
    %32 = vector.shape_cast %31 : vector<64x128xf32> to vector<8x8x128xf32>
    %c1 = arith.constant 1 : index
    %c1_14 = arith.constant 1 : index
    %c0_15 = arith.constant 0 : index
    %33 = vector.load %arg7[%c1, %c1_14, %c0_15] : memref<10x10x128xf32, #tpu.memory_space<vmem>>, vector<8x8x128xf32>
    tpu.vector_store %arg7[%c1, %c1_14, %c0_15], %32 {strides = array<i32>} : memref<10x10x128xf32, #tpu.memory_space<vmem>>, vector<8x8x128xf32>,
    %c0_16 = arith.constant 0 : index
    %c0_17 = arith.constant 0 : index
    %c0_18 = arith.constant 0 : index
    %34 = vector.load %arg7[%c0_16, %c0_17, %c0_18] : memref<10x10x128xf32, #tpu.memory_space<vmem>>, vector<10x10x128xf32>
    %35 = vector.extract_strided_slice %34 {offsets = [0, 0, 0], sizes = [8, 8, 128], strides = [1, 1, 1]} : vector<10x10x128xf32> to vector<8x8x128xf32>
    %36 = vector.shape_cast %35 : vector<8x8x128xf32> to vector<64x128xf32>
    %37 = arith.truncf %36 : vector<64x128xf32> to vector<64x128xbf16>
    %38 = vector.extract_strided_slice %34 {offsets = [0, 1, 0], sizes = [8, 8, 128], strides = [1, 1, 1]} : vector<10x10x128xf32> to vector<8x8x128xf32>
    %39 = vector.shape_cast %38 : vector<8x8x128xf32> to vector<64x128xf32>
    %40 = arith.truncf %39 : vector<64x128xf32> to vector<64x128xbf16>
    %41 = vector.extract_strided_slice %34 {offsets = [0, 2, 0], sizes = [8, 8, 128], strides = [1, 1, 1]} : vector<10x10x128xf32> to vector<8x8x128xf32>
    %42 = vector.shape_cast %41 : vector<8x8x128xf32> to vector<64x128xf32>
    %43 = arith.truncf %42 : vector<64x128xf32> to vector<64x128xbf16>
    %44 = vector.extract_strided_slice %34 {offsets = [1, 0, 0], sizes = [8, 8, 128], strides = [1, 1, 1]} : vector<10x10x128xf32> to vector<8x8x128xf32>
    %45 = vector.shape_cast %44 : vector<8x8x128xf32> to vector<64x128xf32>
    %46 = arith.truncf %45 : vector<64x128xf32> to vector<64x128xbf16>
    %47 = vector.extract_strided_slice %34 {offsets = [1, 1, 0], sizes = [8, 8, 128], strides = [1, 1, 1]} : vector<10x10x128xf32> to vector<8x8x128xf32>
    %48 = vector.shape_cast %47 : vector<8x8x128xf32> to vector<64x128xf32>
    %49 = arith.truncf %48 : vector<64x128xf32> to vector<64x128xbf16>
    %50 = vector.extract_strided_slice %34 {offsets = [1, 2, 0], sizes = [8, 8, 128], strides = [1, 1, 1]} : vector<10x10x128xf32> to vector<8x8x128xf32>
    %51 = vector.shape_cast %50 : vector<8x8x128xf32> to vector<64x128xf32>
    %52 = arith.truncf %51 : vector<64x128xf32> to vector<64x128xbf16>
    %53 = vector.extract_strided_slice %34 {offsets = [2, 0, 0], sizes = [8, 8, 128], strides = [1, 1, 1]} : vector<10x10x128xf32> to vector<8x8x128xf32>
    %54 = vector.shape_cast %53 : vector<8x8x128xf32> to vector<64x128xf32>
    %55 = arith.truncf %54 : vector<64x128xf32> to vector<64x128xbf16>
    %56 = vector.extract_strided_slice %34 {offsets = [2, 1, 0], sizes = [8, 8, 128], strides = [1, 1, 1]} : vector<10x10x128xf32> to vector<8x8x128xf32>
    %57 = vector.shape_cast %56 : vector<8x8x128xf32> to vector<64x128xf32>
    %58 = arith.truncf %57 : vector<64x128xf32> to vector<64x128xbf16>
    %59 = vector.extract_strided_slice %34 {offsets = [2, 2, 0], sizes = [8, 8, 128], strides = [1, 1, 1]} : vector<10x10x128xf32> to vector<8x8x128xf32>
    %60 = vector.shape_cast %59 : vector<8x8x128xf32> to vector<64x128xf32>
    %61 = arith.truncf %60 : vector<64x128xf32> to vector<64x128xbf16>
    %62 = tpu.concatenate %37, %40, %43, %46, %49, %52, %55, %58, %61 in 1 : vector<64x128xbf16>, vector<64x128xbf16>, vector<64x128xbf16>, vector<64x128xbf16>, vector<64x128xbf16>, vector<64x128xbf16>, vector<64x128xbf16>, vector<64x128xbf16>, vector<64x128xbf16> -> vector<64x1152xbf16>
    %c1_19 = arith.constant 1 : index
    %c0_20 = arith.constant 0 : index
    %c0_21 = arith.constant 0 : index
    %63 = vector.load %arg2[%c1_19, %c0_20, %c0_21] : memref<4x1152x128xbf16, #tpu.memory_space<vmem>>, vector<1x1152x128xbf16>
    %64 = vector.shape_cast %63 : vector<1x1152x128xbf16> to vector<1152x128xbf16>
    %cst_22 = arith.constant dense<0.000000e+00> : vector<64x128xf32>
    %65 = tpu.matmul %62, %64, %cst_22 {dimension_numbers = #tpu.dot_dimension_numbers<[1], [0], [0], [1], [0, 0, 1, 1], [], []>} : vector<64x1152xbf16>, vector<1152x128xbf16>, vector<64x128xf32> -> vector<64x128xf32>
    %c1_23 = arith.constant 1 : index
    %c0_24 = arith.constant 0 : index
    %c0_25 = arith.constant 0 : index
    %66 = vector.load %arg3[%c1_23, %c0_24, %c0_25] : memref<4x1x128xf32, #tpu.memory_space<vmem>>, vector<1x1x128xf32>
    %67 = vector.shape_cast %66 : vector<1x1x128xf32> to vector<1x128xf32>
    %68 = vector.broadcast %67 : vector<1x128xf32> to vector<64x128xf32>
    %69 = arith.addf %65, %68 : vector<64x128xf32>
    %cst_26 = arith.constant 0.000000e+00 : f32
    %70 = vector.broadcast %cst_26 : f32 to vector<64x128xf32>
    %71 = arith.maximumf %69, %70 : vector<64x128xf32>
    %72 = vector.shape_cast %71 : vector<64x128xf32> to vector<8x8x128xf32>
    %c1_27 = arith.constant 1 : index
    %c1_28 = arith.constant 1 : index
    %c0_29 = arith.constant 0 : index
    %73 = vector.load %arg7[%c1_27, %c1_28, %c0_29] : memref<10x10x128xf32, #tpu.memory_space<vmem>>, vector<8x8x128xf32>
    tpu.vector_store %arg7[%c1_27, %c1_28, %c0_29], %72 {strides = array<i32>} : memref<10x10x128xf32, #tpu.memory_space<vmem>>, vector<8x8x128xf32>,
    %c0_30 = arith.constant 0 : index
    %c0_31 = arith.constant 0 : index
    %c0_32 = arith.constant 0 : index
    %74 = vector.load %arg7[%c0_30, %c0_31, %c0_32] : memref<10x10x128xf32, #tpu.memory_space<vmem>>, vector<10x10x128xf32>
    %75 = vector.extract_strided_slice %74 {offsets = [0, 0, 0], sizes = [8, 8, 128], strides = [1, 1, 1]} : vector<10x10x128xf32> to vector<8x8x128xf32>
    %76 = vector.shape_cast %75 : vector<8x8x128xf32> to vector<64x128xf32>
    %77 = arith.truncf %76 : vector<64x128xf32> to vector<64x128xbf16>
    %78 = vector.extract_strided_slice %74 {offsets = [0, 1, 0], sizes = [8, 8, 128], strides = [1, 1, 1]} : vector<10x10x128xf32> to vector<8x8x128xf32>
    %79 = vector.shape_cast %78 : vector<8x8x128xf32> to vector<64x128xf32>
    %80 = arith.truncf %79 : vector<64x128xf32> to vector<64x128xbf16>
    %81 = vector.extract_strided_slice %74 {offsets = [0, 2, 0], sizes = [8, 8, 128], strides = [1, 1, 1]} : vector<10x10x128xf32> to vector<8x8x128xf32>
    %82 = vector.shape_cast %81 : vector<8x8x128xf32> to vector<64x128xf32>
    %83 = arith.truncf %82 : vector<64x128xf32> to vector<64x128xbf16>
    %84 = vector.extract_strided_slice %74 {offsets = [1, 0, 0], sizes = [8, 8, 128], strides = [1, 1, 1]} : vector<10x10x128xf32> to vector<8x8x128xf32>
    %85 = vector.shape_cast %84 : vector<8x8x128xf32> to vector<64x128xf32>
    %86 = arith.truncf %85 : vector<64x128xf32> to vector<64x128xbf16>
    %87 = vector.extract_strided_slice %74 {offsets = [1, 1, 0], sizes = [8, 8, 128], strides = [1, 1, 1]} : vector<10x10x128xf32> to vector<8x8x128xf32>
    %88 = vector.shape_cast %87 : vector<8x8x128xf32> to vector<64x128xf32>
    %89 = arith.truncf %88 : vector<64x128xf32> to vector<64x128xbf16>
    %90 = vector.extract_strided_slice %74 {offsets = [1, 2, 0], sizes = [8, 8, 128], strides = [1, 1, 1]} : vector<10x10x128xf32> to vector<8x8x128xf32>
    %91 = vector.shape_cast %90 : vector<8x8x128xf32> to vector<64x128xf32>
    %92 = arith.truncf %91 : vector<64x128xf32> to vector<64x128xbf16>
    %93 = vector.extract_strided_slice %74 {offsets = [2, 0, 0], sizes = [8, 8, 128], strides = [1, 1, 1]} : vector<10x10x128xf32> to vector<8x8x128xf32>
    %94 = vector.shape_cast %93 : vector<8x8x128xf32> to vector<64x128xf32>
    %95 = arith.truncf %94 : vector<64x128xf32> to vector<64x128xbf16>
    %96 = vector.extract_strided_slice %74 {offsets = [2, 1, 0], sizes = [8, 8, 128], strides = [1, 1, 1]} : vector<10x10x128xf32> to vector<8x8x128xf32>
    %97 = vector.shape_cast %96 : vector<8x8x128xf32> to vector<64x128xf32>
    %98 = arith.truncf %97 : vector<64x128xf32> to vector<64x128xbf16>
    %99 = vector.extract_strided_slice %74 {offsets = [2, 2, 0], sizes = [8, 8, 128], strides = [1, 1, 1]} : vector<10x10x128xf32> to vector<8x8x128xf32>
    %100 = vector.shape_cast %99 : vector<8x8x128xf32> to vector<64x128xf32>
    %101 = arith.truncf %100 : vector<64x128xf32> to vector<64x128xbf16>
    %102 = tpu.concatenate %77, %80, %83, %86, %89, %92, %95, %98, %101 in 1 : vector<64x128xbf16>, vector<64x128xbf16>, vector<64x128xbf16>, vector<64x128xbf16>, vector<64x128xbf16>, vector<64x128xbf16>, vector<64x128xbf16>, vector<64x128xbf16>, vector<64x128xbf16> -> vector<64x1152xbf16>
    %c2 = arith.constant 2 : index
    %c0_33 = arith.constant 0 : index
    %c0_34 = arith.constant 0 : index
    %103 = vector.load %arg2[%c2, %c0_33, %c0_34] : memref<4x1152x128xbf16, #tpu.memory_space<vmem>>, vector<1x1152x128xbf16>
    %104 = vector.shape_cast %103 : vector<1x1152x128xbf16> to vector<1152x128xbf16>
    %cst_35 = arith.constant dense<0.000000e+00> : vector<64x128xf32>
    %105 = tpu.matmul %102, %104, %cst_35 {dimension_numbers = #tpu.dot_dimension_numbers<[1], [0], [0], [1], [0, 0, 1, 1], [], []>} : vector<64x1152xbf16>, vector<1152x128xbf16>, vector<64x128xf32> -> vector<64x128xf32>
    %c2_36 = arith.constant 2 : index
    %c0_37 = arith.constant 0 : index
    %c0_38 = arith.constant 0 : index
    %106 = vector.load %arg3[%c2_36, %c0_37, %c0_38] : memref<4x1x128xf32, #tpu.memory_space<vmem>>, vector<1x1x128xf32>
    %107 = vector.shape_cast %106 : vector<1x1x128xf32> to vector<1x128xf32>
    %108 = vector.broadcast %107 : vector<1x128xf32> to vector<64x128xf32>
    %109 = arith.addf %105, %108 : vector<64x128xf32>
    %cst_39 = arith.constant 0.000000e+00 : f32
    %110 = vector.broadcast %cst_39 : f32 to vector<64x128xf32>
    %111 = arith.maximumf %109, %110 : vector<64x128xf32>
    %112 = vector.shape_cast %111 : vector<64x128xf32> to vector<8x8x128xf32>
    %c1_40 = arith.constant 1 : index
    %c1_41 = arith.constant 1 : index
    %c0_42 = arith.constant 0 : index
    %113 = vector.load %arg7[%c1_40, %c1_41, %c0_42] : memref<10x10x128xf32, #tpu.memory_space<vmem>>, vector<8x8x128xf32>
    tpu.vector_store %arg7[%c1_40, %c1_41, %c0_42], %112 {strides = array<i32>} : memref<10x10x128xf32, #tpu.memory_space<vmem>>, vector<8x8x128xf32>,
    %c0_43 = arith.constant 0 : index
    %c0_44 = arith.constant 0 : index
    %c0_45 = arith.constant 0 : index
    %114 = vector.load %arg7[%c0_43, %c0_44, %c0_45] : memref<10x10x128xf32, #tpu.memory_space<vmem>>, vector<10x10x128xf32>
    %115 = vector.extract_strided_slice %114 {offsets = [0, 0, 0], sizes = [8, 8, 128], strides = [1, 1, 1]} : vector<10x10x128xf32> to vector<8x8x128xf32>
    %116 = vector.shape_cast %115 : vector<8x8x128xf32> to vector<64x128xf32>
    %117 = arith.truncf %116 : vector<64x128xf32> to vector<64x128xbf16>
    %118 = vector.extract_strided_slice %114 {offsets = [0, 1, 0], sizes = [8, 8, 128], strides = [1, 1, 1]} : vector<10x10x128xf32> to vector<8x8x128xf32>
    %119 = vector.shape_cast %118 : vector<8x8x128xf32> to vector<64x128xf32>
    %120 = arith.truncf %119 : vector<64x128xf32> to vector<64x128xbf16>
    %121 = vector.extract_strided_slice %114 {offsets = [0, 2, 0], sizes = [8, 8, 128], strides = [1, 1, 1]} : vector<10x10x128xf32> to vector<8x8x128xf32>
    %122 = vector.shape_cast %121 : vector<8x8x128xf32> to vector<64x128xf32>
    %123 = arith.truncf %122 : vector<64x128xf32> to vector<64x128xbf16>
    %124 = vector.extract_strided_slice %114 {offsets = [1, 0, 0], sizes = [8, 8, 128], strides = [1, 1, 1]} : vector<10x10x128xf32> to vector<8x8x128xf32>
    %125 = vector.shape_cast %124 : vector<8x8x128xf32> to vector<64x128xf32>
    %126 = arith.truncf %125 : vector<64x128xf32> to vector<64x128xbf16>
    %127 = vector.extract_strided_slice %114 {offsets = [1, 1, 0], sizes = [8, 8, 128], strides = [1, 1, 1]} : vector<10x10x128xf32> to vector<8x8x128xf32>
    %128 = vector.shape_cast %127 : vector<8x8x128xf32> to vector<64x128xf32>
    %129 = arith.truncf %128 : vector<64x128xf32> to vector<64x128xbf16>
    %130 = vector.extract_strided_slice %114 {offsets = [1, 2, 0], sizes = [8, 8, 128], strides = [1, 1, 1]} : vector<10x10x128xf32> to vector<8x8x128xf32>
    %131 = vector.shape_cast %130 : vector<8x8x128xf32> to vector<64x128xf32>
    %132 = arith.truncf %131 : vector<64x128xf32> to vector<64x128xbf16>
    %133 = vector.extract_strided_slice %114 {offsets = [2, 0, 0], sizes = [8, 8, 128], strides = [1, 1, 1]} : vector<10x10x128xf32> to vector<8x8x128xf32>
    %134 = vector.shape_cast %133 : vector<8x8x128xf32> to vector<64x128xf32>
    %135 = arith.truncf %134 : vector<64x128xf32> to vector<64x128xbf16>
    %136 = vector.extract_strided_slice %114 {offsets = [2, 1, 0], sizes = [8, 8, 128], strides = [1, 1, 1]} : vector<10x10x128xf32> to vector<8x8x128xf32>
    %137 = vector.shape_cast %136 : vector<8x8x128xf32> to vector<64x128xf32>
    %138 = arith.truncf %137 : vector<64x128xf32> to vector<64x128xbf16>
    %139 = vector.extract_strided_slice %114 {offsets = [2, 2, 0], sizes = [8, 8, 128], strides = [1, 1, 1]} : vector<10x10x128xf32> to vector<8x8x128xf32>
    %140 = vector.shape_cast %139 : vector<8x8x128xf32> to vector<64x128xf32>
    %141 = arith.truncf %140 : vector<64x128xf32> to vector<64x128xbf16>
    %142 = tpu.concatenate %117, %120, %123, %126, %129, %132, %135, %138, %141 in 1 : vector<64x128xbf16>, vector<64x128xbf16>, vector<64x128xbf16>, vector<64x128xbf16>, vector<64x128xbf16>, vector<64x128xbf16>, vector<64x128xbf16>, vector<64x128xbf16>, vector<64x128xbf16> -> vector<64x1152xbf16>
    %c3 = arith.constant 3 : index
    %c0_46 = arith.constant 0 : index
    %c0_47 = arith.constant 0 : index
    %143 = vector.load %arg2[%c3, %c0_46, %c0_47] : memref<4x1152x128xbf16, #tpu.memory_space<vmem>>, vector<1x1152x128xbf16>
    %144 = vector.shape_cast %143 : vector<1x1152x128xbf16> to vector<1152x128xbf16>
    %cst_48 = arith.constant dense<0.000000e+00> : vector<64x128xf32>
    %145 = tpu.matmul %142, %144, %cst_48 {dimension_numbers = #tpu.dot_dimension_numbers<[1], [0], [0], [1], [0, 0, 1, 1], [], []>} : vector<64x1152xbf16>, vector<1152x128xbf16>, vector<64x128xf32> -> vector<64x128xf32>
    %c3_49 = arith.constant 3 : index
    %c0_50 = arith.constant 0 : index
    %c0_51 = arith.constant 0 : index
    %146 = vector.load %arg3[%c3_49, %c0_50, %c0_51] : memref<4x1x128xf32, #tpu.memory_space<vmem>>, vector<1x1x128xf32>
    %147 = vector.shape_cast %146 : vector<1x1x128xf32> to vector<1x128xf32>
    %148 = vector.broadcast %147 : vector<1x128xf32> to vector<64x128xf32>
    %149 = arith.addf %145, %148 : vector<64x128xf32>
    %cst_52 = arith.constant 0.000000e+00 : f32
    %150 = vector.broadcast %cst_52 : f32 to vector<64x128xf32>
    %151 = arith.maximumf %149, %150 : vector<64x128xf32>
    %152 = vector.shape_cast %151 : vector<64x128xf32> to vector<8x8x128xf32>
    %c1_53 = arith.constant 1 : index
    %c1_54 = arith.constant 1 : index
    %c0_55 = arith.constant 0 : index
    %153 = vector.load %arg7[%c1_53, %c1_54, %c0_55] : memref<10x10x128xf32, #tpu.memory_space<vmem>>, vector<8x8x128xf32>
    tpu.vector_store %arg7[%c1_53, %c1_54, %c0_55], %152 {strides = array<i32>} : memref<10x10x128xf32, #tpu.memory_space<vmem>>, vector<8x8x128xf32>,
    %c0_56 = arith.constant 0 : index
    %c0_57 = arith.constant 0 : index
    %c0_58 = arith.constant 0 : index
    %154 = vector.load %arg7[%c0_56, %c0_57, %c0_58] : memref<10x10x128xf32, #tpu.memory_space<vmem>>, vector<10x10x128xf32>
    %155 = vector.extract_strided_slice %154 {offsets = [0, 0, 0], sizes = [8, 8, 128], strides = [1, 1, 1]} : vector<10x10x128xf32> to vector<8x8x128xf32>
    %156 = vector.shape_cast %155 : vector<8x8x128xf32> to vector<64x128xf32>
    %157 = arith.truncf %156 : vector<64x128xf32> to vector<64x128xbf16>
    %158 = vector.extract_strided_slice %154 {offsets = [0, 1, 0], sizes = [8, 8, 128], strides = [1, 1, 1]} : vector<10x10x128xf32> to vector<8x8x128xf32>
    %159 = vector.shape_cast %158 : vector<8x8x128xf32> to vector<64x128xf32>
    %160 = arith.truncf %159 : vector<64x128xf32> to vector<64x128xbf16>
    %161 = vector.extract_strided_slice %154 {offsets = [0, 2, 0], sizes = [8, 8, 128], strides = [1, 1, 1]} : vector<10x10x128xf32> to vector<8x8x128xf32>
    %162 = vector.shape_cast %161 : vector<8x8x128xf32> to vector<64x128xf32>
    %163 = arith.truncf %162 : vector<64x128xf32> to vector<64x128xbf16>
    %164 = vector.extract_strided_slice %154 {offsets = [1, 0, 0], sizes = [8, 8, 128], strides = [1, 1, 1]} : vector<10x10x128xf32> to vector<8x8x128xf32>
    %165 = vector.shape_cast %164 : vector<8x8x128xf32> to vector<64x128xf32>
    %166 = arith.truncf %165 : vector<64x128xf32> to vector<64x128xbf16>
    %167 = vector.extract_strided_slice %154 {offsets = [1, 1, 0], sizes = [8, 8, 128], strides = [1, 1, 1]} : vector<10x10x128xf32> to vector<8x8x128xf32>
    %168 = vector.shape_cast %167 : vector<8x8x128xf32> to vector<64x128xf32>
    %169 = arith.truncf %168 : vector<64x128xf32> to vector<64x128xbf16>
    %170 = vector.extract_strided_slice %154 {offsets = [1, 2, 0], sizes = [8, 8, 128], strides = [1, 1, 1]} : vector<10x10x128xf32> to vector<8x8x128xf32>
    %171 = vector.shape_cast %170 : vector<8x8x128xf32> to vector<64x128xf32>
    %172 = arith.truncf %171 : vector<64x128xf32> to vector<64x128xbf16>
    %173 = vector.extract_strided_slice %154 {offsets = [2, 0, 0], sizes = [8, 8, 128], strides = [1, 1, 1]} : vector<10x10x128xf32> to vector<8x8x128xf32>
    %174 = vector.shape_cast %173 : vector<8x8x128xf32> to vector<64x128xf32>
    %175 = arith.truncf %174 : vector<64x128xf32> to vector<64x128xbf16>
    %176 = vector.extract_strided_slice %154 {offsets = [2, 1, 0], sizes = [8, 8, 128], strides = [1, 1, 1]} : vector<10x10x128xf32> to vector<8x8x128xf32>
    %177 = vector.shape_cast %176 : vector<8x8x128xf32> to vector<64x128xf32>
    %178 = arith.truncf %177 : vector<64x128xf32> to vector<64x128xbf16>
    %179 = vector.extract_strided_slice %154 {offsets = [2, 2, 0], sizes = [8, 8, 128], strides = [1, 1, 1]} : vector<10x10x128xf32> to vector<8x8x128xf32>
    %180 = vector.shape_cast %179 : vector<8x8x128xf32> to vector<64x128xf32>
    %181 = arith.truncf %180 : vector<64x128xf32> to vector<64x128xbf16>
    %182 = tpu.concatenate %157, %160, %163, %166, %169, %172, %175, %178, %181 in 1 : vector<64x128xbf16>, vector<64x128xbf16>, vector<64x128xbf16>, vector<64x128xbf16>, vector<64x128xbf16>, vector<64x128xbf16>, vector<64x128xbf16>, vector<64x128xbf16>, vector<64x128xbf16> -> vector<64x1152xbf16>
    %c0_59 = arith.constant 0 : index
    %c0_60 = arith.constant 0 : index
    %183 = vector.load %arg4[%c0_59, %c0_60] : memref<1152x128xbf16, #tpu.memory_space<vmem>>, vector<1152x128xbf16>
    %cst_61 = arith.constant dense<0.000000e+00> : vector<64x128xf32>
    %184 = tpu.matmul %182, %183, %cst_61 {dimension_numbers = #tpu.dot_dimension_numbers<[1], [0], [0], [1], [0, 0, 1, 1], [], []>} : vector<64x1152xbf16>, vector<1152x128xbf16>, vector<64x128xf32> -> vector<64x128xf32>
    %c0_62 = arith.constant 0 : index
    %c0_63 = arith.constant 0 : index
    %185 = vector.load %arg5[%c0_62, %c0_63] : memref<1x128xf32, #tpu.memory_space<vmem>>, vector<1x128xf32>
    %186 = vector.broadcast %185 : vector<1x128xf32> to vector<64x128xf32>
    %187 = arith.addf %184, %186 : vector<64x128xf32>
    %188 = arith.negf %187 : vector<64x128xf32>
    %189 = math.exp %188 : vector<64x128xf32>
    %cst_64 = arith.constant 1.000000e+00 : f32
    %190 = vector.broadcast %cst_64 : f32 to vector<64x128xf32>
    %191 = arith.addf %190, %189 : vector<64x128xf32>
    %192 = arith.divf %190, %191 : vector<64x128xf32>
    %193 = vector.shape_cast %192 : vector<64x128xf32> to vector<1x8x8x128xf32>
    %c0_65 = arith.constant 0 : index
    %c0_66 = arith.constant 0 : index
    %c0_67 = arith.constant 0 : index
    %c0_68 = arith.constant 0 : index
    %194 = vector.load %arg6[%c0_65, %c0_66, %c0_67, %c0_68] : memref<1x8x8x128xf32, #tpu.memory_space<vmem>>, vector<1x8x8x128xf32>
    tpu.vector_store %arg6[%c0_65, %c0_66, %c0_67, %c0_68], %193 {strides = array<i32>} : memref<1x8x8x128xf32, #tpu.memory_space<vmem>>, vector<1x8x8x128xf32>,
    return
  }
  func.func @transform_0(%arg0: i32) -> (i32, i32, i32, i32) {
    %c0_i32 = arith.constant 0 : i32
    %c0_i32_0 = arith.constant 0 : i32
    %c0_i32_1 = arith.constant 0 : i32
    %c0_i32_2 = arith.constant 0 : i32
    return %arg0, %c0_i32, %c0_i32_0, %c0_i32_1 : i32, i32, i32, i32
  }
  func.func @transform_1(%arg0: i32) -> (i32, i32, i32) {
    %c0_i32 = arith.constant 0 : i32
    %c0_i32_0 = arith.constant 0 : i32
    %c0_i32_1 = arith.constant 0 : i32
    %c0_i32_2 = arith.constant 0 : i32
    return %c0_i32, %c0_i32_0, %c0_i32_1 : i32, i32, i32
  }
  func.func @transform_2(%arg0: i32) -> (i32, i32, i32) {
    %c0_i32 = arith.constant 0 : i32
    %c0_i32_0 = arith.constant 0 : i32
    %c0_i32_1 = arith.constant 0 : i32
    %c0_i32_2 = arith.constant 0 : i32
    return %c0_i32, %c0_i32_0, %c0_i32_1 : i32, i32, i32
  }
  func.func @transform_3(%arg0: i32) -> (i32, i32) {
    %c0_i32 = arith.constant 0 : i32
    %c0_i32_0 = arith.constant 0 : i32
    %c0_i32_1 = arith.constant 0 : i32
    return %c0_i32, %c0_i32_0 : i32, i32
  }
  func.func @transform_4(%arg0: i32) -> (i32, i32) {
    %c0_i32 = arith.constant 0 : i32
    %c0_i32_0 = arith.constant 0 : i32
    %c0_i32_1 = arith.constant 0 : i32
    return %c0_i32, %c0_i32_0 : i32, i32
  }
  func.func @transform_5(%arg0: i32) -> (i32, i32, i32, i32) {
    %c0_i32 = arith.constant 0 : i32
    %c0_i32_0 = arith.constant 0 : i32
    %c0_i32_1 = arith.constant 0 : i32
    %c0_i32_2 = arith.constant 0 : i32
    return %arg0, %c0_i32, %c0_i32_0, %c0_i32_1 : i32, i32, i32, i32
  }
}

</mosaic_0001>

<bundles_post_ra>
// kernel: tpu_custom_call.1
= control target key start
LH: loop header
LB: loop body
LE: loop exit
PB: predicated region body
PF: predicated region fallthrough
CT: control target
= control target key end

     0   :  { %10 = vsyncpa [#allocation4], 0  ;;  %s9363_s0 = inlined_call_operand.vmem [shape: bf16[2,10,10,128], index: 0, kind: input, shape index: {}]   ;;  %s9364_s1 = inlined_call_operand.hbm [shape: bf16[4,1152,128], index: 1, kind: input, shape index: {}]   ;;  %s9365_s2 = inlined_call_operand.hbm [shape: f32[4,1,128], index: 2, kind: input, shape index: {}]   ;;  %s9366_s3 = inlined_call_operand.hbm [shape: bf16[1152,128], index: 3, kind: input, shape index: {}]   ;;  %s9367_s4 = inlined_call_operand.hbm [shape: f32[1,128], index: 4, kind: input, shape index: {}]   ;;  %s9368_s5 = inlined_call_operand.hbm [shape: f32[2,8,8,128], index: 5, kind: output, shape index: {}]  }
   0x1   :  { %11 = vsyncpa [#allocation7], 0 }
   0x2   :  { %12 = vsyncpa [#allocation10], 0 }
   0x3   :  { %13 = vsyncpa [#allocation5], 0 }
   0x4   :  { %15 = vsyncpa [#allocation5 + $0x1], 0  ;;  %s8123_s18 = smov 0   ;;  %s8125_s19 = smov 0  }
   0x5   :  { %s8127_s20 = smov 0   ;;  %s8129_s21 = smov 0  }
   0x6 LB: > { %s8144_s22 = sadd.s32 4294967295, %s8079_s21   ;;  %s5985_s23 = sadd.s32 4294967294, %s8079_s21   ;;  %s8079_s21 = sphi %s8129_s21, %s9470_s21   ;;  %s8075_s20 = sphi %s8127_s20, %s9469_s20   ;;  %s8071_s19 = sphi %s8125_s19, %s9468_s19   ;;  %s8067_s18 = sphi %s8123_s18, %s9467_s18  }
   0x7   : > { %s8148_s24 = sadd.s32 1, %s8079_s21   ;;  %s138_s25 = sadd.s32 1, %s8075_s20 }
   0x8   : > { %s135_s26 = ssub.s32 %s8079_s21, %s8148_s24  ;;  %p148_p0 = scmp.ne.s32.totalorder %s8075_s20, %s8071_s19 }
   0x9   : > { %p136_p1 = scmp.eq.s32.totalorder %s135_s26, 0  ;;  %p149_p2 = scmp.eq.s32.totalorder %s8144_s22, 1 }
   0xa   : > { %p154_p3 = scmp.ne.s32.totalorder %s8071_s19, %s8067_s18  ;;  %p155_p4 = scmp.eq.s32.totalorder %s5985_s23, 1 }
   0xb   : > { %s8159_s27 = scalar_select %p136_p1, %s8075_s20, %s138_s25  }
   0xc   : > { %p8161_p5 = por %p149_p2, %p148_p0  ;;  %p8165_p6 = por %p155_p4, %p154_p3 }
   0xd   : > { %p5986_p7 = scmp.ge.s32.totalorder %s8079_s21, 1  ;;  %p162_p8 = scmp.lt.s32.totalorder %s8079_s21, 3 }
   0xe   : > { %s9378_s28 = scalar_select %p8161_p5, 1, 0 }
   0xf   : > { %s9379_s29 = scalar_select %p8165_p6, 1, 0 }
  0x10   : > { %p9369_p9 = scmp.eq.s32.totalorder %s8144_s22, 0  ;;  %p8172_p10 = pnand %p5986_p7, %p162_p8 }
  0x11   : > { %s8081_s6 = smov [#allocation6]   ;;  %s8082_s9 = smov [#allocation3]  }
  0x12   : > { %s187_s7 = sshll.u32 %s8081_s6, 4  ;;  %p7430_p11 = pneg %p8172_p10  ;;  %s188_s7 = int_to_ptr.vmem [resolvable:$true] %s187_s7 }
  0x13   : > { %s174_s10 = sshll.u32 %s8082_s9, 4  ;;  %s7914_s11 = scalar_lea.vmem %s188_s7, 64  ;;  %s175_s10 = int_to_ptr.vmem [resolvable:$true] %s174_s10 }
  0x14   : > { %p8180_p12 = pnand %p9369_p9, %p7430_p11  ;;  %p7915_p0 = scmp.ne.s32.totalorder %s188_s7, %s7914_s11 }
  0x15   : > { %p7922_p3 = scmp.lt.s32.totalorder %s188_s7, %s188_s7  ;;  %p7923_p4 = scmp.lt.s32.totalorder %s7914_s11, %s7914_s11 }
  0x16   : > { %p7905_p13 = pneg %p8180_p12 }
  0x17   : > { %p7924_p7 = por %p7923_p4, %p7922_p3 }
  0x18   : > { %p7917_p1 = pnand %p7915_p0, %p7905_p13 }
  0x1a   : > { %p7918_p2 = pneg %p7917_p1 }
  0x1c   : > { %p7925_p8 = pnand %p7924_p7, %p7918_p2 }
  0x1e   : > { %7928 = shalt.err (!%p7925_p8)
}
  0x1f   : > { %s8083_s12 = smov 16   ;;  %s8084_s13 = smov 1  }
  0x20   : > { %7436 = dma.hbm_to_vmem [thread:$0]  (!%p8180_p12), %s9365_s2, 64, %s188_s7, [#allocation7], %s8083_s12, %s8083_s12, %s8084_s13  }
  0x21   : > { %s7940_s16 = scalar_lea.vmem %s175_s10, 36864  ;;  %p7948_p9 = scmp.lt.s32.totalorder %s175_s10, %s175_s10 }
  0x22   : > { %p7941_p11 = scmp.ne.s32.totalorder %s175_s10, %s7940_s16  ;;  %p7949_p6 = scmp.lt.s32.totalorder %s7940_s16, %s7940_s16 }
  0x24   : > { %p7943_p0 = pnand %p7941_p11, %p7905_p13  ;;  %p7950_p3 = por %p7949_p6, %p7948_p9 }
  0x26   : > { %p7944_p1 = pneg %p7943_p0 }
  0x28   : > { %p7951_p2 = pnand %p7950_p3, %p7944_p1 }
  0x2a   : > { %7954 = shalt.err (!%p7951_p2)
}
  0x2b   : > { %s8085_s17 = smov 64   ;;  %s8086_s23 = smov 4  }
  0x2c   : > { %7433 = dma.hbm_to_vmem [thread:$0]  (!%p8180_p12), %s9364_s1, 36864, %s175_s10, [#allocation4], %s8085_s17, %s8085_s17, %s8086_s23  }
  0x2d   : > { %s8087_s6 = smov [#allocation8]   ;;  %s8088_s9 = smov [#allocation9]  }
  0x2e   : > { %s200_s7 = sshll.u32 %s8087_s6, 4  ;;  %s214_s11 = sshll.u32 %s8088_s9, 4  ;;  %s201_s7 = int_to_ptr.vmem [resolvable:$true] %s200_s7  ;;  %s215_s11 = int_to_ptr.vmem [resolvable:$true] %s214_s11 }
  0x2f   : > { %s7966_s12 = scalar_lea.vmem %s201_s7, 9216  ;;  %p7974_p7 = scmp.lt.s32.totalorder %s201_s7, %s201_s7 }
  0x30   : > { %p7967_p4 = scmp.ne.s32.totalorder %s201_s7, %s7966_s12  ;;  %p7975_p8 = scmp.lt.s32.totalorder %s7966_s12, %s7966_s12 }
  0x32   : > { %p7969_p6 = pnand %p7967_p4, %p7905_p13  ;;  %p7976_p11 = por %p7975_p8, %p7974_p7 }
  0x34   : > { %p7970_p9 = pneg %p7969_p6 }
  0x36   : > { %p7977_p0 = pnand %p7976_p11, %p7970_p9 }
  0x38   : > { %7980 = shalt.err (!%p7977_p0)
}
  0x39   : > { %7439 = dma.hbm_to_vmem [thread:$0]  (!%p8180_p12), %s9366_s3, 9216, %s201_s7, [#allocation7], %s8085_s17, %s8085_s17, %s8086_s23  }
  0x3a   : > { %s7992_s14 = scalar_lea.vmem %s215_s11, 16  ;;  %s7999_s15 = scalar_lea.vmem %s215_s11, 32 }
  0x3b   : > { %p7993_p1 = scmp.ne.s32.totalorder %s215_s11, %s7992_s14  ;;  %p8000_p4 = scmp.lt.s32.totalorder %s215_s11, %s215_s11 }
  0x3c   : > { %p8001_p6 = scmp.lt.s32.totalorder %s7999_s15, %s7992_s14 }
  0x3d   : > { %p7995_p3 = pnand %p7993_p1, %p7905_p13 }
  0x3e   : > { %p8002_p5 = por %p8001_p6, %p8000_p4 }
  0x3f   : > { %p7996_p2 = pneg %p7995_p3 }
  0x41   : > { %p8003_p7 = pnand %p8002_p5, %p7996_p2 }
  0x43   : > { %8006 = shalt.err (!%p8003_p7)
}
  0x44   : > { %7442 = dma.hbm_to_vmem [thread:$0]  (!%p8180_p12), %s9367_s4, 16, %s215_s11, [#allocation10]  }
  0x45   : > { %235 = sbr.rel (%p8172_p10) target bundleno = 1545 (0x609), region = 40 }
  0x4a   : > { %p9382_p9 = scmp.eq.s32.totalorder %s8144_s22, 0 }
  0x4c   : > { %8050 = dma.done.wait (%p9382_p9), [#allocation4], 36864   ;;  %p9383_p13 = pmov %p9382_p9 }
  0x4d   : > { %p9384_p8 = pmov %p9382_p9 }
  0x4e   : > { %8052 = vsyncadd (%p9383_p13), [#allocation4], 4294930432 }
  0x4f   : > { %8054 = dma.done.wait (%p9384_p8), [#allocation7], 9280   ;;  %p9385_p5 = pmov %p9384_p8 }
  0x51   : > { %8056 = vsyncadd (%p9385_p5), [#allocation7], 4294958016  ;;  %p9386_p11 = pmov %p9385_p5 }
  0x52   : > { %p9387_p12 = pmov %p9385_p5 }
  0x53   : > { %8058 = dma.done.wait (%p9386_p11), [#allocation10], 16  }
  0x54   : > { %8060 = vsyncadd (%p9387_p12), [#allocation10], 4294967280  ;;  %v7499_v0 = vld [vmem:[#allocation3 + $0x78] sm:$0xff]   ;;  %v7503_v4 = vld [vmem:[#allocation3 + $0x70] sm:$0xff]   ;;  %p275_p10 = scmp.lt.s32.totalorder %s8144_s22, 1  ;;  %vm452_vm2 = vcmask 1042432  }
  0x55   : > { %v7500_v1 = vld [vmem:[#allocation3 + $0x38] sm:$0xff]   ;;  %6415 = vmatprep.subr.bf16.mxu0 %v7499_v0  ;;  %v7504_v5 = vld [vmem:[#allocation3 + $0x30] sm:$0xff]   ;;  %v7507_v8 = vld [vmem:[#allocation3 + $0x68] sm:$0xff]   ;;  %vm321_vm0 = vsmask.f32 3328  ;;  %vm453_vm3 = vcmask 1046532  }
  0x56   : > { %v7501_v2 = vld [vmem:[#allocation3 + $0xf8] sm:$0xff]   ;;  %6416 = vmatpush3.bf16.msra.mxu0 %v7500_v1  ;;  %v7505_v6 = vld [vmem:[#allocation3 + $0xf0] sm:$0xff]   ;;  %v7508_v9 = vld [vmem:[#allocation3 + $0x28] sm:$0xff]   ;;  %s276_s30 = scalar_select %p275_p10, %s8144_s22, 1  ;;  %vm322_vm1 = vsmask.f32 7440 }
  0x57   : > { %v7502_v3 = vld [vmem:[#allocation3 + $0xb8] sm:$0xff]   ;;  %6455 = vmatprep.subr.bf16.mxu1 %v7501_v2  ;;  %6417 = vmatprep.subr.bf16.mxu0 %v7503_v4  ;;  %v7506_v7 = vld [vmem:[#allocation3 + $0xb0] sm:$0xff]   ;;  %v7509_v10 = vld [vmem:[#allocation3 + $0xe8] sm:$0xff]   ;;  %vm1576_vm6 = vcmask 1046528   ;;  %vm1613_vm7 = vcmask 1045504   ;;  %s272_s6 = sand.u32 1, %s8071_s19  }
  0x58   : > { %6456 = vmatpush3.bf16.msra.mxu1 %v7502_v3  ;;  %v7510_v11 = vld [vmem:[#allocation3 + $0xa8] sm:$0xff]   ;;  %v7511_v12 = vld [vmem:[#allocation3 + $0x60] sm:$0xff]   ;;  %v7515_v16 = vld [vmem:[#allocation3 + $0x58] sm:$0xff]   ;;  %s7411_s8 = smul.u32 80, %s276_s30  ;;  %s5997_s7 = sshll.u32 %s272_s6, 6 }
  0x59   : > { %6457 = vmatprep.subr.bf16.mxu1 %v7505_v6  ;;  %v7512_v13 = vld [vmem:[#allocation3 + $0x20] sm:$0xff]   ;;  %v7516_v17 = vld [vmem:[#allocation3 + $0x18] sm:$0xff]   ;;  %v7519_v20 = vld [vmem:[#allocation3 + $0x50] sm:$0xff]   ;;  %s274_s9 = scalar_lea.vmem [#allocation11], %s5997_s7  ;;  %s6414_s11 = sshll.u32 %s8144_s22, 10 }
  0x5a   : > { %6418 = vmatpush3.bf16.msra.mxu0 %v7504_v5  ;;  %v7513_v14 = vld [vmem:[#allocation3 + $0xe0] sm:$0xff]   ;;  %v7517_v18 = vld [vmem:[#allocation3 + $0xd8] sm:$0xff]   ;;  %v7520_v21 = vld [vmem:[#allocation3 + $0x10] sm:$0xff]   ;;  %s8237_s26 = scalar_lea.vmem %s9363_s0, %s7411_s8  ;;  %s5882_s12 = sshll.u32 %s274_s9, 4  ;;  %s9321_s12 = int_to_ptr.vmem [resolvable:$true] %s5882_s12 }
  0x5b   : > { %6419 = vmatprep.subr.bf16.mxu0 %v7507_v8  ;;  %v7514_v15 = vld [vmem:[#allocation3 + $0xa0] sm:$0xff]   ;;  %v7518_v19 = vld [vmem:[#allocation3 + $0x98] sm:$0xff]   ;;  %v7521_v22 = vld [vmem:[#allocation3 + $0xd0] sm:$0xff]   ;;  %s9319_s14 = scalar_lea.hbm %s9368_s5, %s6414_s11  ;;  %s9323_s22 = scalar_lea.sflag [#allocation5], %s272_s6 }
  0x5c   : > { %6458 = vmatpush3.bf16.msra.mxu1 %v7506_v7  ;;  %v7522_v23 = vld [vmem:[#allocation3 + $0x90] sm:$0xff]   ;;  %v7523_v24 = vld [vmem:[#allocation3 + $0x48] sm:$0xff]   ;;  %v7527_v28 = vld [vmem:[#allocation3 + $0x40] sm:$0xff]   ;;  %s8007_s15 = scalar_lea.vmem %s9321_s12, 1024  ;;  %p9465_p1 = scmp.ne.s32.totalorder %s9378_s28, 0 }
  0x5d   : > { %6459 = vmatprep.subr.bf16.mxu1 %v7509_v10  ;;  %v7524_v25 = vld [vmem:[#allocation3 + $0x8] sm:$0xff]   ;;  %v7528_v29 = vld [vmem:[#allocation3] sm:$0xff]   ;;  %v8248_v35 = vld [vmem:[%s8237_s26 + $0x10] sm:$0xf]  ;;  %p8008_p0 = scmp.ne.s32.totalorder %s9321_s12, %s8007_s15  ;;  %s8090_s16 = smov [#allocation11]  }
  0x5e   : > { %6420 = vmatpush3.bf16.msra.mxu0 %v7508_v9  ;;  %v7525_v26 = vld [vmem:[#allocation3 + $0xc8] sm:$0xff]   ;;  %v7529_v30 = vld [vmem:[#allocation3 + $0xc0] sm:$0xff]   ;;  %v8251_v36 = vld [vmem:[%s8237_s26 + $0x14] sm:$0x1]  ;;  %v353_v43 = vshrl.u32 %v8248_v35, 16  ;;  %v356_v44 = vshll.u32 %v8248_v35, 16 }
  0x5f   : > { %6421 = vmatprep.subr.bf16.mxu0 %v7511_v12  ;;  %v7526_v27 = vld [vmem:[#allocation3 + $0x88] sm:$0xff]   ;;  %v8240_v31 = vld [vmem:[%s8237_s26] sm:$0xf]  ;;  %v302_v32 = vld [vmem:[%s8237_s26 + $0x4] sm:$0x1]  ;;  %v362_v57 = vshll.u32 %v8251_v36, 16  ;;  %p8009_p3 = pnand %p8008_p0, %p9465_p1 }
  0x60   : > { %6460 = vmatpush3.bf16.msra.mxu1 %v7510_v11  ;;  %v8244_v33 = vld [vmem:[%s8237_s26 + $0x8] sm:$0xf]  ;;  %v304_v34 = vld [vmem:[%s8237_s26 + $0xc] sm:$0x1]  ;;  %v325_v37 = vshrl.u32 %v8240_v31, 16  ;;  %v328_v38 = vshll.u32 %v8240_v31, 16  ;;  %vm8261_vm4 = vmor %vm321_vm0, %vm322_vm1 }
  0x61   : > { %6461 = vmatprep.subr.bf16.mxu1 %v7513_v14  ;;  %v334_v39 = vshll.u32 %v302_v32, 16  ;;  %v339_v40 = vshrl.u32 %v8244_v33, 16  ;;  %v342_v41 = vshll.u32 %v8244_v33, 16  ;;  %v348_v42 = vshll.u32 %v304_v34, 16  ;;  %v7530_v49 = vld [vmem:[#allocation3 + $0x80] sm:$0xff]   ;;  %v7532_v50 = vld [vmem:[#allocation3 + $0x178] sm:$0xff]   ;;  %vm8268_vm5 = vmor %vm452_vm2, %vm453_vm3  ;;  %p8010_p2 = pneg %p8009_p3 }
  0x62   : > { %6422 = vmatpush3.bf16.msra.mxu0 %v7512_v13  ;;  %v327_v45 = vrot.slane %v325_v37, 4  ;;  %v330_v46 = vrot.slane %v328_v38, 5  ;;  %v355_v54 = vrot.slane %v353_v43, 4  ;;  %v358_v55 = vrot.slane %v356_v44, 5  ;;  %v7535_v1 = vld [vmem:[#allocation3 + $0x1f8] sm:$0xff]   ;;  %v7545_v38 = vld [vmem:[#allocation3 + $0x1e8] sm:$0xff]  }
  0x63   : > { %6423 = vmatprep.subr.bf16.mxu0 %v7515_v16  ;;  %v336_v47 = vrot.slane %v334_v39, 5  ;;  %v341_v48 = vrot.slane %v339_v40, 4  ;;  %v344_v52 = vrot.slane %v342_v41, 5  ;;  %v350_v53 = vrot.slane %v348_v42, 5  ;;  %v7536_v6 = vld [vmem:[#allocation3 + $0x1b8] sm:$0xff]   ;;  %v7537_v16 = vld [vmem:[#allocation3 + $0x170] sm:$0xff]  }
  0x64   : > { %6462 = vmatpush3.bf16.msra.mxu1 %v7514_v15  ;;  %v331_v56 = vor.u32 %v330_v46, %v327_v45  ;;  %v457_v58 = vrot.slane %v302_v32, 5  ;;  %v461_v59 = vrot.slane %v304_v34, 5  ;;  %v359_v62 = vor.u32 %v358_v55, %v355_v54  ;;  %v7534_v9 = vld [vmem:[#allocation3 + $0x138] sm:$0xff]   ;;  %v7546_v39 = vld [vmem:[#allocation3 + $0x1a8] sm:$0xff]   ;;  %v7547_v46 = vld [vmem:[#allocation3 + $0x160] sm:$0xff]   ;;  %s8011_s25 = sshll.u32 %s8090_s16, 4  ;;  %s8012_s25 = int_to_ptr.vmem [resolvable:$false] %s8011_s25 }
  0x65   : > { %6463 = vmatprep.subr.bf16.mxu1 %v7517_v18  ;;  %v345_v61 = vor.u32 %v344_v52, %v341_v48  ;;  %v6021_v63 = vcombine.low %v8244_v33, %v8248_v35  ;;  %v5999_v0 = vrot.slane %v8240_v31, 9  ;;  %v6000_v3 = vrot.slane %v8244_v33, 9  ;;  %v7539_v18 = vld [vmem:[#allocation3 + $0x1f0] sm:$0xff]   ;;  %v7544_v43 = vld [vmem:[#allocation3 + $0x128] sm:$0xff]   ;;  %v7549_v52 = vld [vmem:[#allocation3 + $0x1e0] sm:$0xff]   ;;  %s8013_s30 = scalar_lea.vmem %s8012_s25, 2048  ;;  %p8014_p4 = scmp.lt.s32.totalorder %s9321_s12, %s8012_s25 }
  0x66   : > { %6424 = vmatpush3.bf16.msra.mxu0 %v7516_v17  ;;  %v332_v2 = vrot.slane %v331_v56, 4  ;;  %v6009_v8 = vcombine.low %v8240_v31, %v8244_v33  ;;  %v360_v12 = vrot.slane %v359_v62, 4  ;;  %v364_v13 = vrot.slane %v362_v57, 5  ;;  %v7542_v31 = vld [vmem:[#allocation3 + $0x168] sm:$0xff]   ;;  %v310_v55 = vld [vmem:[%s8237_s26 + $0x24] sm:$0x1]  ;;  %p8015_p6 = scmp.lt.s32.totalorder %s8013_s30, %s8007_s15 }
  0x67   : > { %6425 = vmatprep.subr.bf16.mxu0 %v7519_v20  ;;  %v346_v4 = vrot.slane %v345_v61, 4  ;;  %1291 = vmatprep.mubr.bf16.mxu1 %v6021_v63  ;;  %v458_v5 = vsel %vm8268_vm5, %v5999_v0, %v457_v58  ;;  %v8284_v10 = vsel %vm8268_vm5, %v6000_v3, %v461_v59  ;;  %v6001_v17 = vrot.slane %v8248_v35, 9  ;;  %v308_v20 = vld [vmem:[%s8237_s26 + $0x1c] sm:$0x1]  ;;  %v311_v56 = vld [vmem:[%s8237_s26 + $0x28] sm:$0xf] }
  0x68   : > { %6464 = vmatpush3.bf16.msra.mxu1 %v7518_v19  ;;  %v337_v7 = vsel %vm8261_vm4, %v332_v2, %v336_v47  ;;  %v6017_v14 = vcombine.low %v458_v5, %v8284_v10  ;;  %v307_v19 = vld [vmem:[%s8237_s26 + $0x18] sm:$0xf]  ;;  %v469_v37 = vrot.slane %v308_v20, 5  ;;  %v8307_v41 = vsel %vm8261_vm4, %v360_v12, %v364_v13  ;;  %v312_v57 = vld [vmem:[%s8237_s26 + $0x2c] sm:$0x1]  ;;  %v7550_v63 = vld [vmem:[#allocation3 + $0x1a0] sm:$0xff]   ;;  %p8016_p7 = por %p8015_p6, %p8014_p4 }
  0x69   : > { %6465 = vmatprep.subr.bf16.mxu1 %v7521_v22  ;;  %v8288_v11 = vsel %vm8261_vm4, %v346_v4, %v350_v53  ;;  %v367_v22 = vshrl.u32 %v307_v19, 16  ;;  %v6002_v33 = vrot.slane %v307_v19, 9  ;;  %v395_v59 = vshrl.u32 %v311_v56, 16  ;;  %v7552_v4 = vld [vmem:[#allocation3 + $0x158] sm:$0xff]   ;;  %v7577_v51 = vld [vmem:[#allocation3 + $0x208] sm:$0xff]  }
  0x6a   : > { %6426 = vmatpush3.bf16.msra.mxu0 %v7520_v21  ;;  %v6013_v15 = vcombine.low %v337_v7, %v8288_v11  ;;  %v465_v21 = vrot.slane %v8251_v36, 5  ;;  %v398_v61 = vshll.u32 %v311_v56, 16  ;;  %v404_v62 = vshll.u32 %v312_v57, 16  ;;  %v7554_v7 = vld [vmem:[#allocation3 + $0x118] sm:$0xff]   ;;  %v7588_v60 = vld [vmem:[#allocation3 + $0x2a8] sm:$0xff]   ;;  %p8017_p9 = pnand %p8016_p7, %p8010_p2 }
  0x6b   : > { %6427 = vmatprep.subr.bf16.mxu0 %v7523_v24  ;;  %v376_v24 = vshll.u32 %v308_v20, 16  ;;  %v8311_v44 = vsel %vm8268_vm5, %v6002_v33, %v469_v37  ;;  %v397_v2 = vrot.slane %v395_v59, 4  ;;  %v7556_v20 = vld [vmem:[#allocation3 + $0x198] sm:$0xff]  }
  0x6c   : > { %6466 = vmatpush3.bf16.msra.mxu1 %v7522_v23  ;;  %1226 = vmatprep.mubr.bf16.mxu0 %v6013_v15  ;;  %v370_v23 = vshll.u32 %v307_v19, 16  ;;  %v8302_v36 = vsel %vm8268_vm5, %v6001_v17, %v465_v21  ;;  %v400_v3 = vrot.slane %v398_v61, 5  ;;  %v406_v5 = vrot.slane %v404_v62, 5  ;;  %v7555_v17 = vld [vmem:[#allocation3 + $0x1d8] sm:$0xff]  }
  0x6d   : > { %6467 = vmatprep.subr.bf16.mxu1 %v7525_v26  ;;  %v7538_v26 = vld [vmem:[#allocation3 + $0x130] sm:$0xff]   ;;  %v8315_v45 = vcombine.low %v8302_v36, %v8311_v44  ;;  %v6004_v15 = vrot.slane %v311_v56, 9  ;;  %v316_v37 = vld [vmem:[%s8237_s26 + $0x3c] sm:$0x1] }
  0x6e   : > { %6428 = vmatpush3.bf16.msra.mxu0 %v7524_v25  ;;  %v7540_v25 = vld [vmem:[#allocation3 + $0x1b0] sm:$0xff]  }
  0x6f   : > { %6429 = vmatprep.subr.bf16.mxu0 %v7527_v28  ;;  %v372_v28 = vrot.slane %v370_v23, 5  ;;  %v7557_v23 = vld [vmem:[#allocation3 + $0x150] sm:$0xff]  }
  0x70   : > { %6468 = vmatpush3.bf16.msra.mxu1 %v7526_v27  ;;  %v369_v27 = vrot.slane %v367_v22, 4 }
  0x71   : > { %6469 = vmatprep.subr.bf16.mxu1 %v7529_v30  ;;  %v8297_v30 = vld [vmem:[%s8237_s26 + $0x20] sm:$0xf] }
  0x72   : > { %6430 = vmatpush3.bf16.msra.mxu0 %v7528_v29  ;;  %v378_v29 = vrot.slane %v376_v24, 5  ;;  %v6022_v32 = vcombine.low %v307_v19, %v8297_v30  ;;  %v373_v34 = vor.u32 %v372_v28, %v369_v27  ;;  %v381_v40 = vshrl.u32 %v8297_v30, 16  ;;  %v7558_v28 = vld [vmem:[#allocation3 + $0x110] sm:$0xff]  }
  0x73   : > { %6495 = vmatprep.subr.bf16.mxu0 %v7532_v50  ;;  %v7548_v50 = vld [vmem:[#allocation3 + $0x120] sm:$0xff]   ;;  %v384_v53 = vshll.u32 %v8297_v30, 16  ;;  %v6003_v13 = vrot.slane %v8297_v30, 9 }
  0x74   : > { %6470 = vmatpush3.bf16.msra.mxu1 %v7530_v49  ;;  %v374_v42 = vrot.slane %v373_v34, 4  ;;  %v383_v47 = vrot.slane %v381_v40, 4  ;;  %v8322_v49 = vcombine.low %v8248_v35, %v307_v19  ;;  %v390_v35 = vshll.u32 %v310_v55, 16  ;;  %v315_v34 = vld [vmem:[%s8237_s26 + $0x38] sm:$0xf] }
  0x75   : > { %6535 = vmatprep.subr.bf16.mxu1 %v7535_v1  ;;  %1227 = vmatmul.mubr.bf16.vlgmr.msra.gmra.mxu0 %v6009_v8  ;;  %v386_v58 = vrot.slane %v384_v53, 5  ;;  %v423_v40 = vshrl.u32 %v315_v34, 16 }
  0x76   : > { %6496 = vmatpush3.bf16.msra.mxu0 %v7534_v9  ;;  %v8319_v48 = vsel %vm8261_vm4, %v374_v42, %v378_v29  ;;  %v392_v1 = vrot.slane %v390_v35, 5  ;;  %v401_v9 = vor.u32 %v400_v3, %v397_v2  ;;  %v426_v42 = vshll.u32 %v315_v34, 16  ;;  %v7565_v2 = vld [vmem:[#allocation3 + $0x1c8] sm:$0xff]  }
  0x77   : > { %1292 = vmatmul.mubr.bf16.vlgmr.msra.gmra.mxu1 %v6017_v14  ;;  %6497 = vmatprep.subr.bf16.mxu0 %v7537_v16  ;;  %v8327_v54 = vcombine.low %v8307_v41, %v8319_v48  ;;  %v387_v0 = vor.u32 %v386_v58, %v383_v47  ;;  %v473_v14 = vrot.slane %v310_v55, 5  ;;  %v477_v16 = vrot.slane %v312_v57, 5  ;;  %v7562_v55 = vld [vmem:[#allocation3 + $0x148] sm:$0xff]   ;;  %v8376_v57 = vld [vmem:[%s8237_s26 + $0x40] sm:$0xf] }
  0x78   : > { %6536 = vmatpush3.bf16.msra.mxu1 %v7536_v6  ;;  %1299 = vmatprep.mubr.bf16.mxu1 %v6022_v32  ;;  %v8336_v6 = vld [vmem:[%s8237_s26 + $0x30] sm:$0xf]  ;;  %v402_v19 = vrot.slane %v401_v9, 4  ;;  %v428_v53 = vrot.slane %v426_v42, 5  ;;  %v7564_v58 = vld [vmem:[#allocation3 + $0x108] sm:$0xff]   ;;  %v6024_v61 = vcombine.low %v315_v34, %v8376_v57  ;;  %v7567_v9 = vld [vmem:[#allocation3 + $0x140] sm:$0xff]  }
  0x79   : > { %6537 = vmatprep.subr.bf16.mxu1 %v7539_v18  ;;  %1234 = vmatprep.mubr.bf16.mxu0 %v8327_v54  ;;  %v388_v8 = vrot.slane %v387_v0, 4  ;;  %v6023_v12 = vcombine.low %v311_v56, %v8336_v6  ;;  %v8346_v21 = vsel %vm8268_vm5, %v6003_v13, %v473_v14  ;;  %v8350_v22 = vsel %vm8268_vm5, %v6004_v15, %v477_v16  ;;  %v7559_v32 = vld [vmem:[#allocation3 + $0x1d0] sm:$0xff]   ;;  %v7568_v15 = vld [vmem:[#allocation3 + $0x100] sm:$0xff]  }
  0x7a   : > { %6498 = vmatpush3.bf16.msra.mxu0 %v7538_v26  ;;  %v409_v24 = vshrl.u32 %v8336_v6, 16  ;;  %v8358_v26 = vcombine.low %v8297_v30, %v311_v56  ;;  %v8362_v27 = vcombine.low %v8346_v21, %v8350_v22  ;;  %v412_v29 = vshll.u32 %v8336_v6, 16  ;;  %v314_v30 = vld [vmem:[%s8237_s26 + $0x34] sm:$0x1] }
  0x7b   : > { %6499 = vmatprep.subr.bf16.mxu0 %v7542_v31  ;;  %v8342_v18 = vsel %vm8261_vm4, %v388_v8, %v392_v1  ;;  %v6005_v62 = vrot.slane %v8336_v6, 9  ;;  %v6006_v0 = vrot.slane %v315_v34, 9  ;;  %v485_v1 = vrot.slane %v316_v37, 5 }
  0x7c   : > { %6538 = vmatpush3.bf16.msra.mxu1 %v7540_v25  ;;  %v8355_v25 = vsel %vm8261_vm4, %v402_v19, %v406_v5  ;;  %v411_v33 = vrot.slane %v409_v24, 4  ;;  %v7566_v5 = vld [vmem:[#allocation3 + $0x188] sm:$0xff]   ;;  %v8397_v13 = vcombine.low %v8336_v6, %v315_v34  ;;  %v488_v16 = vshrl.u32 %v8376_v57, 16  ;;  %v7569_v19 = vld [vmem:[#allocation3 + $0x1c0] sm:$0xff]   ;;  %v7571_v24 = vld [vmem:[#allocation3 + $0x238] sm:$0xff]  }
  0x7d   : > { %6539 = vmatprep.subr.bf16.mxu1 %v7545_v38  ;;  %1235 = vmatmul.mubr.bf16.gmra.mxu0 %v8322_v49  ;;  %v8367_v31 = vcombine.low %v8342_v18, %v8355_v25  ;;  %v414_v38 = vrot.slane %v412_v29, 5  ;;  %v8390_v8 = vsel %vm8268_vm5, %v6006_v0, %v485_v1  ;;  %v7570_v6 = vld [vmem:[#allocation3 + $0x180] sm:$0xff]   ;;  %v7580_v1 = vld [vmem:[#allocation3 + $0x2b8] sm:$0xff]  }
  0x7e   : > { %6500 = vmatpush3.bf16.msra.mxu0 %v7544_v43  ;;  %v432_v43 = vshll.u32 %v316_v37, 16  ;;  %v8419_v37 = vld [vmem:[%s8237_s26 + $0x48] sm:$0xf] }
  0x7f   : > { %1300 = vmatmul.mubr.bf16.gmra.mxu1 %v8315_v45  ;;  %6501 = vmatprep.subr.bf16.mxu0 %v7547_v46  ;;  %v7560_v46 = vld [vmem:[#allocation3 + $0x190] sm:$0xff]   ;;  %v415_v47 = vor.u32 %v414_v38, %v411_v33  ;;  %v8423_v38 = vld [vmem:[%s8237_s26 + $0x4c] sm:$0x1] }
  0x80   : > { %6540 = vmatpush3.bf16.msra.mxu1 %v7546_v39  ;;  %1307 = vmatprep.mubr.bf16.mxu1 %v6023_v12  ;;  %v418_v39 = vshll.u32 %v314_v30, 16  ;;  %v434_v56 = vrot.slane %v432_v43, 5 }
  0x81   : > { %6541 = vmatprep.subr.bf16.mxu1 %v7549_v52  ;;  %1242 = vmatprep.mubr.bf16.mxu0 %v8367_v31  ;;  %v425_v52 = vrot.slane %v423_v40, 4  ;;  %v416_v35 = vrot.slane %v415_v47, 4  ;;  %v7574_v47 = vld [vmem:[#allocation3 + $0x220] sm:$0xff]  }
  0x82   : > { %6502 = vmatpush3.bf16.msra.mxu0 %v7548_v50  ;;  %v420_v50 = vrot.slane %v418_v39, 5  ;;  %v511_v39 = vshll.u32 %v8419_v37, 16 }
  0x83   : > { %6503 = vmatprep.subr.bf16.mxu0 %v7552_v4  ;;  %v429_v59 = vor.u32 %v428_v53, %v425_v52 }
  0x84   : > { %6542 = vmatpush3.bf16.msra.mxu1 %v7550_v63  ;;  %v481_v63 = vrot.slane %v314_v30, 5  ;;  %v8382_v3 = vsel %vm8261_vm4, %v416_v35, %v420_v50  ;;  %v7572_v30 = vld [vmem:[#allocation3 + $0x230] sm:$0xff]   ;;  %v513_v40 = vrot.slane %v511_v39, 5  ;;  %v7612_v39 = vld [vmem:[#allocation3 + $0x3b8] sm:$0xff]  }
  0x85   : > { %6543 = vmatprep.subr.bf16.mxu1 %v7555_v17  ;;  %1243 = vmatmul.mubr.bf16.gmra.mxu0 %v8358_v26  ;;  %v430_v4 = vrot.slane %v429_v59, 4  ;;  %v6033_v59 = vcombine.low %v8376_v57, %v8419_v37 }
  0x86   : > { %6504 = vmatpush3.bf16.msra.mxu0 %v7554_v7  ;;  %v8386_v7 = vsel %vm8268_vm5, %v6005_v62, %v481_v63  ;;  %v7579_v62 = vld [vmem:[#allocation3 + $0x200] sm:$0xff]   ;;  %v525_v63 = vrot.slane %v8423_v38, 5 }
  0x87   : > { %6505 = vmatprep.subr.bf16.mxu0 %v7557_v23  ;;  %1308 = vmatmul.mubr.bf16.gmra.mxu1 %v8362_v27  ;;  %v8394_v12 = vsel %vm8261_vm4, %v430_v4, %v434_v56  ;;  %v8401_v14 = vcombine.low %v8386_v7, %v8390_v8  ;;  %v491_v23 = vshll.u32 %v8376_v57, 16  ;;  %v6031_v50 = vcombine.low %v8350_v22, %v8386_v7  ;;  %v7583_v4 = vld [vmem:[#allocation3 + $0x2f8] sm:$0xff]   ;;  %v7586_v7 = vld [vmem:[#allocation3 + $0x330] sm:$0xff]  }
  0x88   : > { %6544 = vmatpush3.bf16.msra.mxu1 %v7556_v20  ;;  %1315 = vmatprep.mubr.bf16.mxu1 %v6024_v61  ;;  %v6016_v17 = vcombine.low %v8382_v3, %v8394_v12  ;;  %v6029_v20 = vcombine.low %v8284_v10, %v8302_v36  ;;  %v6025_v10 = vcombine.low %v8288_v11, %v8307_v41  ;;  %v6007_v11 = vrot.slane %v8376_v57, 9 }
  0x89   : > { %6545 = vmatprep.subr.bf16.mxu1 %v7559_v32  ;;  %v493_v29 = vrot.slane %v491_v23, 5  ;;  %v6030_v36 = vcombine.low %v8311_v44, %v8346_v21  ;;  %v318_v32 = vld [vmem:[%s8237_s26 + $0x44] sm:$0x1]  ;;  %v517_v41 = vshll.u32 %v8423_v38, 16  ;;  %v7573_v44 = vld [vmem:[#allocation3 + $0x228] sm:$0xff]   ;;  %v6027_v22 = vcombine.low %v8355_v25, %v8382_v3  ;;  %v7582_v3 = vld [vmem:[#allocation3 + $0x338] sm:$0xff]  }
  0x8a   : > { %6506 = vmatpush3.bf16.msra.mxu0 %v7558_v28  ;;  %1250 = vmatprep.mubr.bf16.mxu0 %v6016_v17  ;;  %v490_v28 = vrot.slane %v488_v16, 4  ;;  %v497_v34 = vshll.u32 %v318_v32, 16  ;;  %v505_v52 = vrot.slane %v318_v32, 5  ;;  %v6008_v25 = vrot.slane %v8419_v37, 9  ;;  %v7595_v16 = vld [vmem:[#allocation3 + $0x2e0] sm:$0xff]   ;;  %v7598_v23 = vld [vmem:[#allocation3 + $0x318] sm:$0xff]  }
  0x8b   : > { %6507 = vmatprep.subr.bf16.mxu0 %v7562_v55  ;;  %v7575_v55 = vld [vmem:[#allocation3 + $0x218] sm:$0xff]   ;;  %v7605_v32 = vld [vmem:[#allocation3 + $0x248] sm:$0xff]   ;;  %v7610_v38 = vld [vmem:[#allocation3 + $0x300] sm:$0xff]  }
  0x8c   : > { %6546 = vmatpush3.bf16.msra.mxu1 %v7560_v46  ;;  %v494_v33 = vor.u32 %v493_v29, %v490_v28  ;;  %v499_v42 = vrot.slane %v497_v34, 5  ;;  %v6026_v46 = vcombine.low %v8319_v48, %v8342_v18  ;;  %v506_v48 = vsel %vm8268_vm5, %v6007_v11, %v505_v52  ;;  %v7601_v28 = vld [vmem:[#allocation3 + $0x250] sm:$0xff]   ;;  %v7608_v34 = vld [vmem:[#allocation3 + $0x280] sm:$0xff]   ;;  %v7614_v11 = vld [vmem:[#allocation3 + $0x438] sm:$0xff]  }
  0x8d   : > { %6547 = vmatprep.subr.bf16.mxu1 %v7565_v2  ;;  %1251 = vmatmul.mubr.bf16.gmra.mxu0 %v8397_v13  ;;  %v6032_v35 = vcombine.low %v8390_v8, %v506_v48  ;;  %v526_v57 = vsel %vm8268_vm5, %v6008_v25, %v525_v63  ;;  %v7581_v2 = vld [vmem:[#allocation3 + $0x278] sm:$0xff]   ;;  %v7589_v8 = vld [vmem:[#allocation3 + $0x268] sm:$0xff]   ;;  %v7602_v29 = vld [vmem:[#allocation3 + $0x310] sm:$0xff]  }
  0x8e   : > { %6508 = vmatpush3.bf16.msra.mxu0 %v7564_v58  ;;  %1356 = vmatprep.mubr.bf16.mxu0 %v6029_v20  ;;  %v6035_v0 = vcombine.low %v506_v48, %v526_v57  ;;  %v7597_v20 = vld [vmem:[#allocation3 + $0x258] sm:$0xff]  }
  0x8f   : > { %6509 = vmatprep.subr.bf16.mxu0 %v7567_v9  ;;  %1316 = vmatmul.mubr.bf16.gmra.mxu1 %v8401_v14  ;;  %v7590_v9 = vld [vmem:[#allocation3 + $0x328] sm:$0xff]  }
  0x90   : > { %6548 = vmatpush3.bf16.msra.mxu1 %v7566_v5  ;;  %1421 = vmatprep.mubr.bf16.mxu1 %v8327_v54  ;;  %v508_v54 = vshrl.u32 %v8419_v37, 16  ;;  %v7585_v5 = vld [vmem:[#allocation3 + $0x270] sm:$0xff]   ;;  %v7609_v37 = vld [vmem:[#allocation3 + $0x240] sm:$0xff]  }
  0x91   : > { %6549 = vmatprep.subr.bf16.mxu1 %v7569_v19  ;;  %v7596_v19 = vld [vmem:[#allocation3 + $0x298] sm:$0xff]  }
  0x92   : > { %6510 = vmatpush3.bf16.msra.mxu0 %v7568_v15  ;;  %v510_v21 = vrot.slane %v508_v54, 4  ;;  %v7594_v15 = vld [vmem:[#allocation3 + $0x320] sm:$0xff]  }
  0x93   : > { %7275 = vmatprep.subr.bf16.mxu0 %v7571_v24  ;;  %v7611_v54 = vld [vmem:[#allocation3 + $0x2c0] sm:$0xff]  }
  0x94   : > { %6550 = vmatpush3.bf16.msra.mxu1 %v7570_v6  ;;  %v514_v43 = vor.u32 %v513_v40, %v510_v21  ;;  %v7599_v6 = vld [vmem:[#allocation3 + $0x2d8] sm:$0xff]  }
  0x95   : > { %1357 = vmatmul.mubr.bf16.vlgmr.msra.gmra.mxu0 %v6025_v10  ;;  %6587 = vmatprep.subr.bf16.mxu1 %v7580_v1  ;;  %v7603_v10 = vld [vmem:[#allocation3 + $0x2d0] sm:$0xff]  }
  0x96   : > { %7276 = vmatpush3.bf16.msra.mxu0 %v7571_v24  ;;  %1364 = vmatprep.mubr.bf16.mxu0 %v6030_v36  ;;  %v515_v53 = vrot.slane %v514_v43, 4  ;;  %v7600_v24 = vld [vmem:[#allocation3 + $0x290] sm:$0xff]   ;;  %v7604_v36 = vld [vmem:[#allocation3 + $0x288] sm:$0xff]  }
  0x97   : > { %1422 = vmatmul.mubr.bf16.vlgmr.msra.gmra.mxu1 %v8322_v49  ;;  %v495_v49 = vrot.slane %v494_v33, 4  ;;  %7277 = vmatprep.subr.bf16.mxu0 %v7572_v30  ;;  %v7606_v33 = vld [vmem:[#allocation3 + $0x308] sm:$0xff]  }
  0x98   : > { %1429 = vmatprep.mubr.bf16.mxu1 %v8367_v31  ;;  %v519_v31 = vrot.slane %v517_v41, 5  ;;  %6588 = vmatpush3.bf16.msra.mxu1 %v7581_v2 }
  0x99   : > { %v500_v56 = vsel %vm8261_vm4, %v495_v49, %v499_v42 }
  0x9a   : > { %7278 = vmatpush3.bf16.msra.mxu0 %v7572_v30  ;;  %v520_v58 = vsel %vm8261_vm4, %v515_v53, %v519_v31  ;;  %v6028_v61 = vcombine.low %v8394_v12, %v500_v56  ;;  %v7591_v12 = vld [vmem:[#allocation3 + $0x2e8] sm:$0xff]  }
  0x9b   : > { %7279 = vmatprep.subr.bf16.mxu0 %v7573_v44  ;;  %v6034_v18 = vcombine.low %v500_v56, %v520_v58  ;;  %v7607_v30 = vld [vmem:[#allocation3 + $0x2c8] sm:$0xff]  }
  0x9d   : > { %1365 = vmatmul.mubr.bf16.gmra.mxu0 %v6026_v46 }
  0x9e   : > { %7280 = vmatpush3.bf16.msra.mxu0 %v7573_v44  ;;  %1372 = vmatprep.mubr.bf16.mxu0 %v6031_v50 }
  0x9f   : > { %1430 = vmatmul.mubr.bf16.gmra.mxu1 %v8358_v26  ;;  %7281 = vmatprep.subr.bf16.mxu0 %v7574_v47  ;;  %v7576_v26 = vld [vmem:[#allocation3 + $0x210] sm:$0xff]  }
  0xa0   : > { %1437 = vmatprep.mubr.bf16.mxu1 %v6016_v17  ;;  %v9371_v17 = vmov 0.0  }
  0xa1   : > { %287 = vst [vmem:[#allocation2 + $0x30] sm:$0xff] %v9371_v17  ;;  %288 = vst [vmem:[#allocation2 + $0x38] sm:$0x3] %v9371_v17 }
  0xa2   : > { %7282 = vmatpush3.bf16.msra.mxu0 %v7574_v47  ;;  %281 = vst [vmem:[#allocation2] sm:$0xff] %v9371_v17  ;;  %282 = vst [vmem:[#allocation2 + $0x8] sm:$0x3] %v9371_v17 }
  0xa3   : > { %7283 = vmatprep.subr.bf16.mxu0 %v7575_v55  ;;  %283 = vst [vmem:[#allocation2 + $0x10] sm:$0xff] %v9371_v17  ;;  %284 = vst [vmem:[#allocation2 + $0x18] sm:$0x3] %v9371_v17 }
  0xa4   : > { %285 = vst [vmem:[#allocation2 + $0x20] sm:$0xff] %v9371_v17  ;;  %286 = vst [vmem:[#allocation2 + $0x28] sm:$0x3] %v9371_v17 }
  0xa5   : > { %1373 = vmatmul.mubr.bf16.gmra.mxu0 %v6027_v22  ;;  %289 = vst [vmem:[#allocation2 + $0x40] sm:$0xff] %v9371_v17  ;;  %290 = vst [vmem:[#allocation2 + $0x48] sm:$0x3] %v9371_v17 }
  0xa6   : > { %7284 = vmatpush3.bf16.msra.mxu0 %v7575_v55  ;;  %1380 = vmatprep.mubr.bf16.mxu0 %v6032_v35  ;;  %291 = vst [vmem:[#allocation2 + $0x50] sm:$0xff] %v9371_v17  ;;  %292 = vst [vmem:[#allocation2 + $0x58] sm:$0x3] %v9371_v17 }
  0xa7   : > { %1438 = vmatmul.mubr.bf16.gmra.mxu1 %v8397_v13  ;;  %7285 = vmatprep.subr.bf16.mxu0 %v7576_v26  ;;  %v7592_v13 = vld [vmem:[#allocation3 + $0x2a0] sm:$0xff]   ;;  %293 = vst [vmem:[#allocation2 + $0x60] sm:$0xff] %v9371_v17  ;;  %294 = vst [vmem:[#allocation2 + $0x68] sm:$0x3] %v9371_v17 }
  0xa8   : > { %1445 = vmatprep.mubr.bf16.mxu1 %v6034_v18  ;;  %295 = vst [vmem:[#allocation2 + $0x70] sm:$0xff] %v9371_v17  ;;  %296 = vst [vmem:[#allocation2 + $0x78] sm:$0x3] %v9371_v17 }
  0xa9   : > { %297 = vst [vmem:[#allocation2 + $0x80] sm:$0xff] %v9371_v17  ;;  %298 = vst [vmem:[#allocation2 + $0x88] sm:$0x3] %v9371_v17 }
  0xaa   : > { %7286 = vmatpush3.bf16.msra.mxu0 %v7576_v26  ;;  %300 = vst [vmem:[#allocation2 + $0x98] sm:$0x3] %v9371_v17 }
  0xab   : > { %7287 = vmatprep.subr.bf16.mxu0 %v7577_v51 }
  0xad   : > { %1381 = vmatmul.mubr.bf16.gmra.mxu0 %v6028_v61 }
  0xae   : > { %7288 = vmatpush3.bf16.msra.mxu0 %v7577_v51  ;;  %7291 = vmatprep.mubr.bf16.mxu0 %v8315_v45  ;;  %v7584_v45 = vld [vmem:[#allocation3 + $0x2b0] sm:$0xff]  }
  0xaf   : > { %1446 = vmatmul.mubr.bf16.gmra.mxu1 %v6033_v59  ;;  %7289 = vmatprep.subr.bf16.mxu0 %v7579_v62 }
  0xb0   : > { %6589 = vmatprep.subr.bf16.mxu1 %v7584_v45 }
  0xb1   : > { %6590 = vmatpush3.bf16.msra.mxu1 %v7585_v5 }
  0xb2   : > { %7290 = vmatpush3.bf16.msra.mxu0 %v7579_v62  ;;  %6591 = vmatprep.subr.bf16.mxu1 %v7588_v60 }
  0xb3   : > { %6627 = vmatprep.subr.bf16.mxu0 %v7582_v3 }
  0xb5   : > { %7292 = vmatmul.mubr.bf16.vlgmr.msra.gmra.mxu0 %v8362_v27  ;;  %v7587_v27 = vld [vmem:[#allocation3 + $0x2f0] sm:$0xff]   ;;  %6592 = vmatpush3.bf16.msra.mxu1 %v7589_v8 }
  0xb6   : > { %7295 = vmatprep.mubr.bf16.mxu0 %v8401_v14  ;;  %6628 = vmatpush3.bf16.msra.mxu0 %v7583_v4  ;;  %v7593_v14 = vld [vmem:[#allocation3 + $0x260] sm:$0xff]  }
  0xb7   : > { %6629 = vmatprep.subr.bf16.mxu0 %v7586_v7  ;;  %6593 = vmatprep.subr.bf16.mxu1 %v7592_v13 }
  0xb9   : > { %6594 = vmatpush3.bf16.msra.mxu1 %v7593_v14 }
  0xba   : > { %6630 = vmatpush3.bf16.msra.mxu0 %v7587_v27  ;;  %6595 = vmatprep.subr.bf16.mxu1 %v7596_v19 }
  0xbb   : > { %6631 = vmatprep.subr.bf16.mxu0 %v7590_v9 }
  0xbd   : > { %7296 = vmatmul.mubr.bf16.gmra.mxu0 %v6035_v0  ;;  %6596 = vmatpush3.bf16.msra.mxu1 %v7597_v20 }
  0xbe   : > { %6632 = vmatpush3.bf16.msra.mxu0 %v7591_v12  ;;  %6597 = vmatprep.subr.bf16.mxu1 %v7600_v24 }
  0xbf   : > { %6633 = vmatprep.subr.bf16.mxu0 %v7594_v15 }
  0xc1   : > { %6598 = vmatpush3.bf16.msra.mxu1 %v7601_v28 }
  0xc2   : > { %6634 = vmatpush3.bf16.msra.mxu0 %v7595_v16  ;;  %6599 = vmatprep.subr.bf16.mxu1 %v7604_v36 }
  0xc3   : > { %6635 = vmatprep.subr.bf16.mxu0 %v7598_v23 }
  0xc5   : > { %6600 = vmatpush3.bf16.msra.mxu1 %v7605_v32 }
  0xc6   : > { %6636 = vmatpush3.bf16.msra.mxu0 %v7599_v6  ;;  %6601 = vmatprep.subr.bf16.mxu1 %v7608_v34 }
  0xc7   : > { %6637 = vmatprep.subr.bf16.mxu0 %v7602_v29 }
  0xc9   : > { %6602 = vmatpush3.bf16.msra.mxu1 %v7609_v37 }
  0xca   : > { %6638 = vmatpush3.bf16.msra.mxu0 %v7603_v10  ;;  %6667 = vmatprep.subr.bf16.mxu1 %v7612_v39  ;;  %v6036_v10 = vld [vmem:[#allocation6] ss:$0 sm:$0xff] }
  0xcb   : > { %6639 = vmatprep.subr.bf16.mxu0 %v7606_v33 }
  0xce   : > { %6640 = vmatpush3.bf16.msra.mxu0 %v7607_v30 }
  0xcf   : > { %6641 = vmatprep.subr.bf16.mxu0 %v7610_v38 }
  0xd2   : > { %6642 = vmatpush3.bf16.msra.mxu0 %v7611_v54 }
  0xd3   : > { %6707 = vmatprep.subr.bf16.mxu0 %v7614_v11 }
 0x135   : > { %v6431_v44 = vpop.f32.mrf.mxu0 }
 0x137   : > { %v6471_v41 = vpop.f32.mrf.mxu1  ;;  %v6432_v21 = vpop.f32.mrf.mxu0 }
 0x138   : > { %v6433_v33 = vadd.f32 %v6432_v21, %v6431_v44 }
 0x139   : > { %v6472_v49 = vpop.f32.mrf.mxu1  ;;  %v6434_v42 = vpop.f32.mrf.mxu0 }
 0x13a   : > { %v6473_v11 = vadd.f32 %v6472_v49, %v6471_v41 }
 0x13b   : > { %v6474_v40 = vpop.f32.mrf.mxu1  ;;  %v6435_v43 = vpop.f32.mrf.mxu0 }
 0x13c   : > { %v6436_v30 = vadd.f32 %v6435_v43, %v6434_v42 }
 0x13d   : > { %v6475_v31 = vpop.f32.mrf.mxu1  ;;  %v6437_v50 = vpop.f32.mrf.mxu0 }
 0x13f   : > { %v6477_v46 = vpop.f32.mrf.mxu1  ;;  %v6438_v53 = vpop.f32.mrf.mxu0 }
 0x140   : > { %v6439_v29 = vadd.f32 %v6438_v53, %v6437_v50 }
 0x141   : > { %v6478_v47 = vpop.f32.mrf.mxu1  ;;  %v6440_v55 = vpop.f32.mrf.mxu0 }
 0x142   : > { %v1237_v54 = vadd.f32 %v6439_v29, %v6036_v10  ;;  %v6479_v39 = vadd.f32 %v6478_v47, %v6477_v46 }
 0x143   : > { %v6480_v52 = vpop.f32.mrf.mxu1  ;;  %v6441_v58 = vpop.f32.mrf.mxu0 }
 0x144   : > { %v6442_v34 = vadd.f32 %v6441_v58, %v6440_v55 }
 0x145   : > { %v6481_v56 = vpop.f32.mrf.mxu1  ;;  %v6443_v18 = vpop.f32.mrf.mxu0 }
 0x146   : > { %v1240_v53 = vadd.f32 %v6442_v34, %v6036_v10 }
 0x147   : > { %v8473_v48 = vpop.f32.mrf.mxu1  ;;  %v6444_v26 = vpop.f32.mrf.mxu0 }
 0x148   : > { %v6445_v42 = vadd.f32 %v6444_v26, %v6443_v18 }
 0x149   : > { %v8475_v22 = vpop.f32.mrf.mxu1  ;;  %v8479_v51 = vpop.f32.mrf.mxu0 }
 0x14a   : > { %v1245_v26 = vadd.f32 %v6445_v42, %v6036_v10 }
 0x14b   : > { %v8477_v35 = vpop.f32.mrf.mxu1  ;;  %v8483_v61 = vpop.f32.mrf.mxu0 }
 0x14d   : > { %v8481_v59 = vpop.f32.mrf.mxu1  ;;  %v6449_v25 = vpop.f32.mrf.mxu0 }
 0x14f   : > { %v8485_v62 = vpop.f32.mrf.mxu1  ;;  %v6450_v57 = vpop.f32.mrf.mxu0 }
 0x150   : > { %v6451_v44 = vadd.f32 %v6450_v57, %v6449_v25  ;;  %v6448_v57 = vadd.f32 %v8483_v61, %v8479_v51 }
 0x151   : > { %v8487_v63 = vpop.f32.mrf.mxu1  ;;  %v6452_v1 = vpop.f32.mrf.mxu0 }
 0x153   : > { %v8489_v0 = vpop.f32.mrf.mxu1  ;;  %v6453_v3 = vpop.f32.mrf.mxu0 }
 0x154   : > { %9392 = vst [vmem:[#allocation16_spill] sm:$0xff] %v8489_v0 }
 0x155   : > { %v8491_v2 = vpop.f32.mrf.mxu1  ;;  %v6511_v45 = vpop.f32.mrf.mxu0 }
 0x156   : > { %9393 = vst [vmem:[#allocation17_spill] sm:$0xff] %v8491_v2  ;;  %v6482_v2 = vadd.f32 %v6481_v56, %v6480_v52  ;;  %v1253_v52 = vadd.f32 %v6451_v44, %v6036_v10  ;;  %v6491_v56 = vadd.f32 %v8487_v63, %v8485_v62 }
 0x157   : > { %v6551_v4 = vpop.f32.mrf.mxu1  ;;  %v6512_v7 = vpop.f32.mrf.mxu0 }
 0x158   : > { %v6513_v21 = vadd.f32 %v6512_v7, %v6511_v45  ;;  %v1305_v49 = vadd.f32 %v6482_v2, %v1240_v53  ;;  %v6488_v2 = vadd.f32 %v8481_v59, %v8477_v35 }
 0x159   : > { %v6552_v5 = vpop.f32.mrf.mxu1  ;;  %v6514_v60 = vpop.f32.mrf.mxu0 }
 0x15a   : > { %v6553_v18 = vadd.f32 %v6552_v5, %v6551_v4 }
 0x15b   : > { %v8493_v27 = vpop.f32.mrf.mxu1  ;;  %v6515_v9 = vpop.f32.mrf.mxu0 }
 0x15c   : > { %9394 = vst [vmem:[#allocation18_spill] sm:$0xff] %v8493_v27  ;;  %v6476_v27 = vadd.f32 %v6475_v31, %v6474_v40  ;;  %v6485_v40 = vadd.f32 %v8475_v22, %v8473_v48  ;;  %v6454_v31 = vadd.f32 %v6453_v3, %v6452_v1  ;;  %v6516_v47 = vadd.f32 %v6515_v9, %v6514_v60  ;;  %v9400_v60 = vld [vmem:[#allocation16_spill] sm:$0xff] }
 0x15d   : > { %v8495_v8 = vpop.f32.mrf.mxu1  ;;  %v6517_v13 = vpop.f32.mrf.mxu0 }
 0x15e   : > { %9395 = vst [vmem:[#allocation19_spill] sm:$0xff] %v8495_v8  ;;  %v1232_v8 = vadd.f32 %v6436_v30, %v6036_v10  ;;  %v1256_v3 = vadd.f32 %v6454_v31, %v6036_v10 }
 0x15f   : > { %v6557_v12 = vpop.f32.mrf.mxu1  ;;  %v6518_v15 = vpop.f32.mrf.mxu0 }
 0x161   : > { %v6558_v14 = vpop.f32.mrf.mxu1  ;;  %v6520_v19 = vpop.f32.mrf.mxu0 }
 0x162   : > { %v6559_v46 = vadd.f32 %v6558_v14, %v6557_v12  ;;  %v1318_v14 = vadd.f32 %v6491_v56, %v1253_v52 }
 0x163   : > { %v6560_v16 = vpop.f32.mrf.mxu1  ;;  %v6521_v23 = vpop.f32.mrf.mxu0  ;;  %v9402_v63 = vld [vmem:[#allocation18_spill] sm:$0xff] }
 0x164   : > { %v6522_v43 = vadd.f32 %v6521_v23, %v6520_v19  ;;  %v1248_v19 = vadd.f32 %v6448_v57, %v6036_v10 }
 0x165   : > { %v6561_v20 = vpop.f32.mrf.mxu1  ;;  %v6523_v24 = vpop.f32.mrf.mxu0  ;;  %v9403_v4 = vld [vmem:[#allocation19_spill] sm:$0xff] }
 0x166   : > { %v1370_v45 = vadd.f32 %v6522_v43, %v1305_v49  ;;  %v6562_v7 = vadd.f32 %v6561_v20, %v6560_v16  ;;  %v6556_v5 = vadd.f32 %v9403_v4, %v9402_v63  ;;  %v1310_v16 = vadd.f32 %v6485_v40, %v1245_v26 }
 0x167   : > { %v8497_v6 = vpop.f32.mrf.mxu1  ;;  %v6524_v36 = vpop.f32.mrf.mxu0 }
 0x168   : > { %9396 = vst [vmem:[#allocation20_spill] sm:$0xff] %v8497_v6  ;;  %v1229_v6 = vadd.f32 %v6433_v33, %v6036_v10  ;;  %v6525_v51 = vadd.f32 %v6524_v36, %v6523_v24  ;;  %v1435_v59 = vadd.f32 %v6562_v7, %v1370_v45  ;;  %v8527_v45 = vld [vmem:[#allocation2] sm:$0xff] }
 0x169   : > { %v8499_v28 = vpop.f32.mrf.mxu1  ;;  %v8503_v37 = vpop.f32.mrf.mxu0  ;;  %9409 = vst [vmem:[#allocation16_spill] sm:$0xff] %v8527_v45  ;;  %v8530_v7 = vrot.slane %v8527_v45, 2 }
 0x16a   : > { %9397 = vst [vmem:[#allocation21_spill] sm:$0xff] %v8499_v28  ;;  %v6519_v28 = vadd.f32 %v6518_v15, %v6517_v13  ;;  %v1294_v58 = vadd.f32 %v6473_v11, %v1229_v6  ;;  %v1375_v11 = vadd.f32 %v6525_v51, %v1310_v16 }
 0x16b   : > { %v8501_v32 = vpop.f32.mrf.mxu1  ;;  %v6527_v17 = vpop.f32.mrf.mxu0 }
 0x16c   : > { %9398 = vst [vmem:[#allocation22_spill] sm:$0xff] %v8501_v32  ;;  %v1302_v32 = vadd.f32 %v6479_v39, %v1237_v54  ;;  %v1359_v25 = vadd.f32 %v6513_v21, %v1294_v58  ;;  %v6528_v24 = vadd.f32 %v6527_v17, %v8503_v37  ;;  %v1537_v58 = vld [vmem:[#allocation2 + $0x8] sm:$0x3] }
 0x16d   : > { %v8505_v38 = vpop.f32.mrf.mxu1  ;;  %v6529_v0 = vpop.f32.mrf.mxu0  ;;  %v1578_v56 = vrot.slane %v1537_v58, 1 }
 0x16e   : > { %9399 = vst [vmem:[#allocation23_spill] sm:$0xff] %v8505_v38  ;;  %v1297_v38 = vadd.f32 %v6476_v27, %v1232_v8  ;;  %v1367_v29 = vadd.f32 %v6519_v28, %v1302_v32  ;;  %v9401_v8 = vld [vmem:[#allocation17_spill] sm:$0xff]  ;;  %v1424_v15 = vadd.f32 %v6553_v18, %v1359_v25 }
 0x16f   : > { %v6569_v50 = vpop.f32.mrf.mxu1  ;;  %v6530_v55 = vpop.f32.mrf.mxu0  ;;  %v6494_v9 = vadd.f32 %v9401_v8, %v9400_v60  ;;  %v9404_v30 = vld [vmem:[#allocation20_spill] sm:$0xff]  ;;  %9410 = vst [vmem:[#allocation17_spill] sm:$0xff] %v8530_v7 }
 0x170   : > { %v6531_v48 = vadd.f32 %v6530_v55, %v6529_v0  ;;  %v1432_v1 = vadd.f32 %v6559_v46, %v1367_v29  ;;  %v1362_v62 = vadd.f32 %v6516_v47, %v1297_v38 }
 0x171   : > { %v6570_v41 = vpop.f32.mrf.mxu1  ;;  %v6532_v13 = vpop.f32.mrf.mxu0  ;;  %v1321_v33 = vadd.f32 %v6494_v9, %v1256_v3  ;;  %v9405_v34 = vld [vmem:[#allocation21_spill] sm:$0xff] }
 0x172   : > { %v6571_v20 = vadd.f32 %v6570_v41, %v6569_v50  ;;  %v1383_v0 = vadd.f32 %v6531_v48, %v1318_v14  ;;  %v6565_v38 = vadd.f32 %v9405_v34, %v9404_v30  ;;  %v1427_v39 = vadd.f32 %v6556_v5, %v1362_v62  ;;  %v7615_v30 = vld [vmem:[#allocation3 + $0x3f8] sm:$0xff]  }
 0x173   : > { %v6533_v27 = vpop.f32.mrf.mxu0  ;;  %v6572_v22 = vpop.f32.mrf.mxu1  ;;  %v1313_v50 = vadd.f32 %v6488_v2, %v1248_v19  ;;  %v9406_v29 = vld [vmem:[#allocation22_spill] sm:$0xff] }
 0x174   : > { %v6534_v23 = vadd.f32 %v6533_v27, %v6532_v13  ;;  %v1448_v55 = vadd.f32 %v6571_v20, %v1383_v0  ;;  %v1440_v37 = vadd.f32 %v6565_v38, %v1375_v11  ;;  %v9408_v13 = vmov 0.0   ;;  %v7616_v11 = vld [vmem:[#allocation3 + $0x3b0] sm:$0xff]  }
 0x175   : > { %v7293_v12 = vpop.f32.mrf.mxu0  ;;  %v6573_v6 = vpop.f32.mrf.mxu1  ;;  %v9407_v46 = vld [vmem:[#allocation23_spill] sm:$0xff]  ;;  %v1378_v40 = vadd.f32 %v6528_v24, %v1313_v50  ;;  %v8525_v52 = vrot.slane %v9408_v13, 1  ;;  %v7618_v50 = vld [vmem:[#allocation3 + $0x430] sm:$0xff]  }
 0x176   : > { %v1497_v61 = vadd.f32 %v7293_v12, %v1432_v1  ;;  %v6574_v53 = vadd.f32 %v6573_v6, %v6572_v22  ;;  %v1386_v21 = vadd.f32 %v6534_v23, %v1321_v33  ;;  %v6568_v41 = vadd.f32 %v9407_v46, %v9406_v29  ;;  %v7619_v46 = vld [vmem:[#allocation3 + $0x3f0] sm:$0xff]  }
 0x177   : > { %v1488_v35 = vpop.f32.mrf.mxu0  ;;  %v1615_v22 = vrot.slane %v1537_v58, 2  ;;  %v1579_v62 = vsel %vm1576_vm6, %v8525_v52, %v1578_v56 }
 0x178   : > { %v1521_v28 = vmax.f32 %v1497_v61, 0.0  ;;  %v1489_v32 = vadd.f32 %v1488_v35, %v1424_v15  ;;  %v1451_v26 = vadd.f32 %v6574_v53, %v1386_v21  ;;  %v1443_v48 = vadd.f32 %v6568_v41, %v1378_v40  ;;  %v7613_v35 = vld [vmem:[#allocation3 + $0x378] sm:$0xff]   ;;  %v7620_v41 = vld [vmem:[#allocation3 + $0x3a8] sm:$0xff]  }
 0x179   : > { %v7294_v54 = vpop.f32.mrf.mxu0  ;;  %v1616_v20 = vsel %vm1613_vm7, %v8530_v7, %v1615_v22 }
 0x17a   : > { %1530 = vst [vmem:[#allocation2 + $0x31] sm:$0xff] %v1521_v28  ;;  %v1519_v36 = vmax.f32 %v1489_v32, 0.0  ;;  %v1500_v10 = vadd.f32 %v7294_v54, %v1435_v59 }
 0x17b   : > { %v1491_v44 = vpop.f32.mrf.mxu0 }
 0x17c   : > { %1528 = vst [vmem:[#allocation2 + $0x11] sm:$0xff] %v1519_v36  ;;  %v1522_v42 = vmax.f32 %v1500_v10, 0.0  ;;  %v1492_v43 = vadd.f32 %v1491_v44, %v1427_v39 }
 0x17d   : > { %v7297_v49 = vpop.f32.mrf.mxu0 }
 0x17e   : > { %1531 = vst [vmem:[#allocation2 + $0x41] sm:$0xff] %v1522_v42  ;;  %v1520_v31 = vmax.f32 %v1492_v43, 0.0  ;;  %v1513_v17 = vadd.f32 %v7297_v49, %v1448_v55  ;;  %v7617_v42 = vld [vmem:[#allocation3 + $0x370] sm:$0xff]  }
 0x17f   : > { %v1504_v47 = vpop.f32.mrf.mxu0 }
 0x180   : > { %1529 = vst [vmem:[#allocation2 + $0x21] sm:$0xff] %v1520_v31  ;;  %v1525_v25 = vmax.f32 %v1513_v17, 0.0  ;;  %v1505_v18 = vadd.f32 %v1504_v47, %v1440_v37  ;;  %v7622_v37 = vld [vmem:[#allocation3 + $0x428] sm:$0xff]  }
 0x181   : > { %v7298_v57 = vpop.f32.mrf.mxu0  ;;  %v8532_v1 = vld [vmem:[#allocation2 + $0x30] sm:$0xff]  ;;  %v8534_v3 = vld [vmem:[#allocation2 + $0x38] sm:$0x3] }
 0x182   : > { %1534 = vst [vmem:[#allocation2 + $0x71] sm:$0xff] %v1525_v25  ;;  %v1523_v27 = vmax.f32 %v1505_v18, 0.0  ;;  %v1516_v2 = vadd.f32 %v7298_v57, %v1451_v26  ;;  %v1586_v61 = vrot.slane %v8532_v1, 1  ;;  %v1587_v15 = vrot.slane %v8534_v3, 1 }
 0x183   : > { %v1507_v60 = vpop.f32.mrf.mxu0  ;;  %v1538_v8 = vld [vmem:[#allocation2 + $0x10] sm:$0xff]  ;;  %v1539_v9 = vld [vmem:[#allocation2 + $0x18] sm:$0x3]  ;;  %v1623_v58 = vrot.slane %v8532_v1, 2  ;;  %v1624_v29 = vrot.slane %v8534_v3, 2 }
 0x184   : > { %1532 = vst [vmem:[#allocation2 + $0x51] sm:$0xff] %v1523_v27  ;;  %v1526_v63 = vmax.f32 %v1516_v2, 0.0  ;;  %v1508_v4 = vadd.f32 %v1507_v60, %v1443_v48  ;;  %v1580_v5 = vrot.slane %v1538_v8, 1  ;;  %v1581_v12 = vrot.slane %v1539_v9, 1  ;;  %v7621_v27 = vld [vmem:[#allocation3 + $0x368] sm:$0xff]  }
 0x185   : > { %v1617_v14 = vrot.slane %v1538_v8, 2  ;;  %v1618_v51 = vrot.slane %v1539_v9, 2  ;;  %v8549_v6 = vld [vmem:[#allocation2 + $0x40] sm:$0xff]  ;;  %v1556_v32 = vpack.c.bf16 %v1538_v8, %v8527_v45  ;;  %v8554_v39 = vsel %vm1576_vm6, %v1586_v61, %v1587_v15  ;;  %v8556_v24 = vld [vmem:[#allocation2 + $0x48] sm:$0x3] }
 0x186   : > { %1535 = vst [vmem:[#allocation2 + $0x81] sm:$0xff] %v1526_v63  ;;  %v1524_v16 = vmax.f32 %v1508_v4, 0.0  ;;  %v8541_v19 = vsel %vm1576_vm6, %v1580_v5, %v1581_v12  ;;  %v1651_v36 = vpack.c.bf16 %v8549_v6, %v8532_v1  ;;  %v1589_v49 = vrot.slane %v8549_v6, 1  ;;  %v7623_v2 = vld [vmem:[#allocation3 + $0x3e8] sm:$0xff]   ;;  %v7625_v12 = vld [vmem:[#allocation3 + $0x360] sm:$0xff]  }
 0x187   : > { %v1609_v59 = vpack.c.bf16 %v8541_v19, %v1579_v62  ;;  %v1540_v0 = vld [vmem:[#allocation2 + $0x20] sm:$0xff]  ;;  %v8547_v23 = vsel %vm1613_vm7, %v1617_v14, %v1618_v51  ;;  %v1541_v28 = vld [vmem:[#allocation2 + $0x28] sm:$0x3]  ;;  %v1590_v40 = vrot.slane %v8556_v24, 1  ;;  %v8589_v57 = vsel %vm1613_vm7, %v1623_v58, %v1624_v29 }
 0x188   : > { %1533 = vst [vmem:[#allocation2 + $0x61] sm:$0xff] %v1524_v16  ;;  %v1650_v33 = vpack.c.bf16 %v1540_v0, %v1538_v8  ;;  %v1583_v34 = vrot.slane %v1540_v0, 1  ;;  %v1584_v38 = vrot.slane %v1541_v28, 1  ;;  %v1646_v54 = vpack.c.bf16 %v8547_v23, %v1616_v20  ;;  %v7626_v62 = vld [vmem:[#allocation3 + $0x420] sm:$0xff]   ;;  %v7628_v20 = vld [vmem:[#allocation3 + $0x398] sm:$0xff]   ;;  %v7636_v58 = vld [vmem:[#allocation3 + $0x388] sm:$0xff]  }
 0x189   : > { %2302 = vmatprep.mubr.bf16.mxu1 %v1609_v59  ;;  %v1620_v53 = vrot.slane %v1540_v0, 2  ;;  %v1621_v44 = vrot.slane %v1541_v28, 2  ;;  %v8583_v18 = vpack.c.bf16 %v8532_v1, %v1540_v0  ;;  %v8586_v26 = vsel %vm1576_vm6, %v1589_v49, %v1590_v40  ;;  %v7624_v1 = vld [vmem:[#allocation3 + $0x3a0] sm:$0xff]   ;;  %v1550_v3 = vld [vmem:[#allocation2 + $0x70] sm:$0xff]  ;;  %v1551_v60 = vld [vmem:[#allocation2 + $0x78] sm:$0x3] }
 0x18a   : > { %2303 = vmatmul.mubr.bf16.vlgmr.msra.gmra.mxu1 %v1556_v32  ;;  %2367 = vmatprep.mubr.bf16.mxu0 %v1650_v33  ;;  %v8561_v10 = vsel %vm1576_vm6, %v1583_v34, %v1584_v38  ;;  %v1598_v14 = vrot.slane %v1550_v3, 1  ;;  %v1599_v51 = vrot.slane %v1551_v60, 1  ;;  %v1626_v61 = vrot.slane %v8549_v6, 2  ;;  %v7627_v16 = vld [vmem:[#allocation3 + $0x3e0] sm:$0xff]   ;;  %v7630_v0 = vld [vmem:[#allocation3 + $0x418] sm:$0xff]   ;;  %v7637_v40 = vld [vmem:[#allocation3 + $0x348] sm:$0xff]  }
 0x18b   : > { %2368 = vmatmul.mubr.bf16.vlgmr.msra.gmra.mxu0 %v1646_v54  ;;  %6668 = vmatpush3.bf16.msra.mxu1 %v7613_v35  ;;  %v8565_v21 = vpack.c.bf16 %v8554_v39, %v8561_v10  ;;  %v1546_v43 = vld [vmem:[#allocation2 + $0x50] sm:$0xff]  ;;  %v1547_v55 = vld [vmem:[#allocation2 + $0x58] sm:$0x3]  ;;  %v8576_v13 = vsel %vm1613_vm7, %v1620_v53, %v1621_v44  ;;  %v1627_v15 = vrot.slane %v8556_v24, 2 }
 0x18c   : > { %2375 = vmatprep.mubr.bf16.mxu0 %v1651_v36  ;;  %6708 = vmatpush3.bf16.msra.mxu0 %v7615_v30  ;;  %v1592_v31 = vrot.slane %v1546_v43, 1  ;;  %v1593_v17 = vrot.slane %v1547_v55, 1  ;;  %v8597_v22 = vpack.c.bf16 %v8589_v57, %v8576_v13  ;;  %v1629_v8 = vrot.slane %v1546_v43, 2  ;;  %v7629_v34 = vld [vmem:[#allocation3 + $0x358] sm:$0xff]   ;;  %v7632_v24 = vld [vmem:[#allocation3 + $0x390] sm:$0xff]  }
 0x18d   : > { %2310 = vmatprep.mubr.bf16.mxu1 %v8565_v21  ;;  %6669 = vmatprep.subr.bf16.mxu1 %v7616_v11  ;;  %v1630_v5 = vrot.slane %v1547_v55, 2  ;;  %v8613_v28 = vld [vmem:[#allocation2 + $0x80] sm:$0xff]  ;;  %v8616_v32 = vpack.c.bf16 %v1546_v43, %v8549_v6  ;;  %v8619_v33 = vsel %vm1576_vm6, %v1598_v14, %v1599_v51  ;;  %v1628_v30 = vsel %vm1613_vm7, %v1626_v61, %v1627_v15  ;;  %v7631_v11 = vld [vmem:[#allocation3 + $0x3d8] sm:$0xff]   ;;  %v7634_v36 = vld [vmem:[#allocation3 + $0x410] sm:$0xff]  }
 0x18e   : > { %6709 = vmatprep.subr.bf16.mxu0 %v7618_v50  ;;  %v8573_v47 = vsel %vm1576_vm6, %v1592_v31, %v1593_v17  ;;  %v1653_v6 = vpack.c.bf16 %v8613_v28, %v1550_v3  ;;  %v7633_v44 = vld [vmem:[#allocation3 + $0x350] sm:$0xff]   ;;  %v1668_v17 = vpack.c.bf16 %v8576_v13, %v8547_v23  ;;  %v1660_v23 = vpack.c.bf16 %v8561_v10, %v8541_v19  ;;  %v1555_v19 = vld [vmem:[#allocation2 + $0x98] sm:$0x3]  ;;  %v7650_v15 = vld [vmem:[#allocation3 + $0x448] sm:$0xff]  }
 0x18f   : > { %6670 = vmatpush3.bf16.msra.mxu1 %v7617_v42  ;;  %v8578_v56 = vld [vmem:[#allocation2 + $0x60] sm:$0xff]  ;;  %v8580_v25 = vld [vmem:[#allocation2 + $0x68] sm:$0x3]  ;;  %v8593_v48 = vpack.c.bf16 %v8573_v47, %v8586_v26  ;;  %v8611_v59 = vsel %vm1613_vm7, %v1629_v8, %v1630_v5  ;;  %v1635_v42 = vrot.slane %v1550_v3, 2  ;;  %v7635_v55 = vld [vmem:[#allocation3 + $0x3d0] sm:$0xff]   ;;  %v1669_v13 = vpack.c.bf16 %v1628_v30, %v8589_v57 }
 0x190   : > { %6710 = vmatpush3.bf16.msra.mxu0 %v7619_v46  ;;  %6671 = vmatprep.subr.bf16.mxu1 %v7620_v41  ;;  %v1652_v9 = vpack.c.bf16 %v8578_v56, %v1546_v43  ;;  %v1595_v63 = vrot.slane %v8578_v56, 1  ;;  %v1596_v4 = vrot.slane %v8580_v25, 1  ;;  %v8627_v54 = vpack.c.bf16 %v8611_v59, %v1628_v30  ;;  %v7638_v46 = vld [vmem:[#allocation3 + $0x408] sm:$0xff]   ;;  %v7647_v57 = vld [vmem:[#allocation3 + $0x460] sm:$0xff]   ;;  %v7649_v51 = vld [vmem:[#allocation3 + $0x450] sm:$0xff]  }
 0x191   : > { %6711 = vmatprep.subr.bf16.mxu0 %v7622_v37  ;;  %v1632_v50 = vrot.slane %v8578_v56, 2  ;;  %v1633_v53 = vrot.slane %v8580_v25, 2  ;;  %v1636_v43 = vrot.slane %v1551_v60, 2  ;;  %v8637_v41 = vpack.c.bf16 %v1550_v3, %v8578_v56  ;;  %v7639_v37 = vld [vmem:[#allocation3 + $0x3c8] sm:$0xff]   ;;  %v7640_v25 = vld [vmem:[#allocation3 + $0x380] sm:$0xff]   ;;  %v7645_v3 = vld [vmem:[#allocation3 + $0x470] sm:$0xff]  }
 0x192   : > { %2311 = vmatmul.mubr.bf16.gmra.mxu1 %v8583_v18  ;;  %v8608_v35 = vsel %vm1576_vm6, %v1595_v63, %v1596_v4  ;;  %v7641_v56 = vld [vmem:[#allocation3 + $0x340] sm:$0xff]   ;;  %v1553_v60 = vld [vmem:[#allocation2 + $0x88] sm:$0x3]  ;;  %v1661_v8 = vpack.c.bf16 %v8586_v26, %v8554_v39  ;;  %v1676_v63 = vrot.slane %v1555_v19, 1  ;;  %v7648_v39 = vld [vmem:[#allocation3 + $0x458] sm:$0xff]  }
 0x193   : > { %2318 = vmatprep.mubr.bf16.mxu1 %v8593_v48  ;;  %2376 = vmatmul.mubr.bf16.gmra.mxu0 %v8597_v22  ;;  %v8624_v38 = vpack.c.bf16 %v8619_v33, %v8608_v35  ;;  %v1634_v29 = vsel %vm1613_vm7, %v1632_v50, %v1633_v53  ;;  %v8640_v49 = vsel %vm1613_vm7, %v1635_v42, %v1636_v43  ;;  %v7656_v30 = vld [vmem:[#allocation3 + $0x4f0] sm:$0xff]   ;;  %v7665_v50 = vld [vmem:[#allocation3 + $0x4a0] sm:$0xff]   ;;  %v7668_v42 = vld [vmem:[#allocation3 + $0x4d8] sm:$0xff]  }
 0x194   : > { %6672 = vmatpush3.bf16.msra.mxu1 %v7621_v27  ;;  %2383 = vmatprep.mubr.bf16.mxu0 %v1652_v9  ;;  %v8643_v31 = vpack.c.bf16 %v8640_v49, %v1634_v29  ;;  %v7642_v27 = vld [vmem:[#allocation3 + $0x400] sm:$0xff]   ;;  %v1670_v10 = vpack.c.bf16 %v1634_v29, %v8611_v59  ;;  %v1664_v9 = vrot.slane %v8613_v28, 2  ;;  %v1677_v5 = vsel %vm1576_vm6, %v8525_v52, %v1676_v63  ;;  %v7669_v43 = vld [vmem:[#allocation3 + $0x498] sm:$0xff]   ;;  %v7672_v29 = vld [vmem:[#allocation3 + $0x4d0] sm:$0xff]  }
 0x195   : > { %6712 = vmatpush3.bf16.msra.mxu0 %v7623_v2  ;;  %6673 = vmatprep.subr.bf16.mxu1 %v7624_v1  ;;  %v7643_v2 = vld [vmem:[#allocation3 + $0x3c0] sm:$0xff]   ;;  %v7644_v1 = vld [vmem:[#allocation3 + $0x478] sm:$0xff]  }
 0x196   : > { %6713 = vmatprep.subr.bf16.mxu0 %v7626_v62  ;;  %v1665_v62 = vrot.slane %v1553_v60, 2  ;;  %v7666_v53 = vld [vmem:[#allocation3 + $0x560] sm:$0xff]  }
 0x198   : > { %6674 = vmatpush3.bf16.msra.mxu1 %v7625_v12  ;;  %v1666_v26 = vsel %vm1613_vm7, %v1664_v9, %v1665_v62  ;;  %v1662_v12 = vpack.c.bf16 %v8608_v35, %v8573_v47  ;;  %v1672_v47 = vpack.c.bf16 %v8527_v45, %v8613_v28 }
 0x199   : > { %6714 = vmatpush3.bf16.msra.mxu0 %v7627_v16  ;;  %6675 = vmatprep.subr.bf16.mxu1 %v7628_v20  ;;  %v1671_v14 = vpack.c.bf16 %v1666_v26, %v8640_v49  ;;  %v7651_v16 = vld [vmem:[#allocation3 + $0x440] sm:$0xff]   ;;  %v1681_v20 = vrot.slane %v1555_v19, 2  ;;  %v7675_v49 = vld [vmem:[#allocation3 + $0x510] sm:$0xff]  }
 0x19a   : > { %2319 = vmatmul.mubr.bf16.gmra.mxu1 %v8616_v32  ;;  %6715 = vmatprep.subr.bf16.mxu0 %v7630_v0  ;;  %v7652_v0 = vld [vmem:[#allocation3 + $0x4f8] sm:$0xff]  }
 0x19b   : > { %2326 = vmatprep.mubr.bf16.mxu1 %v8624_v38  ;;  %2384 = vmatmul.mubr.bf16.gmra.mxu0 %v8627_v54  ;;  %v1682_v35 = vsel %vm1613_vm7, %v8530_v7, %v1681_v20 }
 0x19c   : > { %6676 = vmatpush3.bf16.msra.mxu1 %v7629_v34  ;;  %2391 = vmatprep.mubr.bf16.mxu0 %v1653_v6  ;;  %v1684_v59 = vpack.c.bf16 %v1682_v35, %v1666_v26  ;;  %v7658_v34 = vld [vmem:[#allocation3 + $0x570] sm:$0xff]   ;;  %v7663_v6 = vld [vmem:[#allocation3 + $0x528] sm:$0xff]  }
 0x19d   : > { %6716 = vmatpush3.bf16.msra.mxu0 %v7631_v11  ;;  %6677 = vmatprep.subr.bf16.mxu1 %v7632_v24  ;;  %v7661_v11 = vld [vmem:[#allocation3 + $0x4a8] sm:$0xff]  }
 0x19e   : > { %6717 = vmatprep.subr.bf16.mxu0 %v7634_v36  ;;  %v7662_v24 = vld [vmem:[#allocation3 + $0x568] sm:$0xff]   ;;  %v7664_v36 = vld [vmem:[#allocation3 + $0x4e0] sm:$0xff]  }
 0x1a0   : > { %6678 = vmatpush3.bf16.msra.mxu1 %v7633_v44  ;;  %v7667_v44 = vld [vmem:[#allocation3 + $0x520] sm:$0xff]  }
 0x1a1   : > { %6718 = vmatpush3.bf16.msra.mxu0 %v7635_v55  ;;  %6679 = vmatprep.subr.bf16.mxu1 %v7636_v58  ;;  %v7670_v55 = vld [vmem:[#allocation3 + $0x558] sm:$0xff]  }
 0x1a2   : > { %2327 = vmatmul.mubr.bf16.gmra.mxu1 %v8637_v41  ;;  %6719 = vmatprep.subr.bf16.mxu0 %v7638_v46  ;;  %v7671_v58 = vld [vmem:[#allocation3 + $0x518] sm:$0xff]   ;;  %v7673_v46 = vld [vmem:[#allocation3 + $0x490] sm:$0xff]  }
 0x1a3   : > { %2392 = vmatmul.mubr.bf16.gmra.mxu0 %v8643_v31  ;;  %2432 = vmatprep.mubr.bf16.mxu1 %v1668_v17  ;;  %v7678_v17 = vld [vmem:[#allocation3 + $0x548] sm:$0xff]  }
 0x1a4   : > { %6680 = vmatpush3.bf16.msra.mxu1 %v7637_v40  ;;  %2497 = vmatprep.mubr.bf16.mxu0 %v8565_v21  ;;  %v7646_v21 = vld [vmem:[#allocation3 + $0x468] sm:$0xff]  }
 0x1a5   : > { %6720 = vmatpush3.bf16.msra.mxu0 %v7639_v37  ;;  %6681 = vmatprep.subr.bf16.mxu1 %v7640_v25  ;;  %v7676_v40 = vld [vmem:[#allocation3 + $0x4c8] sm:$0xff]   ;;  %v7680_v25 = vld [vmem:[#allocation3 + $0x4c0] sm:$0xff]  }
 0x1a6   : > { %6721 = vmatprep.subr.bf16.mxu0 %v7642_v27  ;;  %v7679_v37 = vld [vmem:[#allocation3 + $0x508] sm:$0xff]   ;;  %v7682_v27 = vld [vmem:[#allocation3 + $0x540] sm:$0xff]  }
 0x1a8   : > { %6682 = vmatpush3.bf16.msra.mxu1 %v7641_v56  ;;  %v7681_v56 = vld [vmem:[#allocation3 + $0x480] sm:$0xff]  }
 0x1a9   : > { %6722 = vmatpush3.bf16.msra.mxu0 %v7643_v2  ;;  %7299 = vmatprep.subr.bf16.mxu1 %v7644_v1  ;;  %v7683_v2 = vld [vmem:[#allocation3 + $0x500] sm:$0xff]  }
 0x1aa   : > { %6759 = vmatprep.subr.bf16.mxu0 %v7652_v0 }
 0x1ab   : > { %2433 = vmatmul.mubr.bf16.vlgmr.msra.gmra.mxu1 %v1660_v23  ;;  %v7686_v23 = vld [vmem:[#allocation3 + $0x678] sm:$0xff]  }
 0x1ac   : > { %2440 = vmatprep.mubr.bf16.mxu1 %v1669_v13  ;;  %2498 = vmatmul.mubr.bf16.vlgmr.msra.gmra.mxu0 %v8583_v18  ;;  %v1656_v18 = vrot.slane %v8613_v28, 1  ;;  %v7653_v28 = vld [vmem:[#allocation3 + $0x4b8] sm:$0xff]  }
 0x1ad   : > { %7300 = vmatpush3.bf16.msra.mxu1 %v7644_v1  ;;  %2505 = vmatprep.mubr.bf16.mxu0 %v8593_v48  ;;  %v1657_v48 = vrot.slane %v1553_v60, 1  ;;  %v7684_v1 = vld [vmem:[#allocation3 + $0x5f8] sm:$0xff]  }
 0x1ae   : > { %7301 = vmatprep.subr.bf16.mxu1 %v7645_v3  ;;  %6760 = vmatpush3.bf16.msra.mxu0 %v7653_v28 }
 0x1af   : > { %v1658_v4 = vsel %vm1576_vm6, %v1656_v18, %v1657_v48  ;;  %6761 = vmatprep.subr.bf16.mxu0 %v7656_v30 }
 0x1b0   : > { %v1679_v61 = vpack.c.bf16 %v1677_v5, %v1658_v4  ;;  %v1663_v52 = vpack.c.bf16 %v1658_v4, %v8619_v33  ;;  %v7655_v33 = vld [vmem:[#allocation3 + $0x538] sm:$0xff]  }
 0x1b1   : > { %7302 = vmatpush3.bf16.msra.mxu1 %v7645_v3 }
 0x1b2   : > { %7303 = vmatprep.subr.bf16.mxu1 %v7646_v21 }
 0x1b3   : > { %2441 = vmatmul.mubr.bf16.gmra.mxu1 %v1661_v8 }
 0x1b4   : > { %2448 = vmatprep.mubr.bf16.mxu1 %v1670_v10  ;;  %2506 = vmatmul.mubr.bf16.gmra.mxu0 %v8616_v32  ;;  %v7654_v32 = vld [vmem:[#allocation3 + $0x578] sm:$0xff]  }
 0x1b5   : > { %7304 = vmatpush3.bf16.msra.mxu1 %v7646_v21  ;;  %2513 = vmatprep.mubr.bf16.mxu0 %v8624_v38  ;;  %v7659_v38 = vld [vmem:[#allocation3 + $0x530] sm:$0xff]  }
 0x1b6   : > { %7305 = vmatprep.subr.bf16.mxu1 %v7647_v57 }
 0x1b9   : > { %7306 = vmatpush3.bf16.msra.mxu1 %v7647_v57 }
 0x1ba   : > { %7307 = vmatprep.subr.bf16.mxu1 %v7648_v39 }
 0x1bb   : > { %2449 = vmatmul.mubr.bf16.gmra.mxu1 %v1662_v12 }
 0x1bc   : > { %2456 = vmatprep.mubr.bf16.mxu1 %v1671_v14  ;;  %2514 = vmatmul.mubr.bf16.gmra.mxu0 %v8637_v41  ;;  %v7674_v41 = vld [vmem:[#allocation3 + $0x550] sm:$0xff]  }
 0x1bd   : > { %7308 = vmatpush3.bf16.msra.mxu1 %v7648_v39  ;;  %2521 = vmatprep.mubr.bf16.mxu0 %v1679_v61 }
 0x1be   : > { %7309 = vmatprep.subr.bf16.mxu1 %v7649_v51 }
 0x1c1   : > { %7310 = vmatpush3.bf16.msra.mxu1 %v7649_v51 }
 0x1c2   : > { %7311 = vmatprep.subr.bf16.mxu1 %v7650_v15 }
 0x1c3   : > { %2457 = vmatmul.mubr.bf16.gmra.mxu1 %v1663_v52 }
 0x1c4   : > { %2522 = vmatmul.mubr.bf16.gmra.mxu0 %v1672_v47  ;;  %7315 = vmatprep.mubr.bf16.mxu1 %v8597_v22  ;;  %v7657_v22 = vld [vmem:[#allocation3 + $0x4b0] sm:$0xff]  }
 0x1c5   : > { %7312 = vmatpush3.bf16.msra.mxu1 %v7650_v15  ;;  %6762 = vmatpush3.bf16.msra.mxu0 %v7657_v22 }
 0x1c6   : > { %7313 = vmatprep.subr.bf16.mxu1 %v7651_v16 }
 0x1c9   : > { %7314 = vmatpush3.bf16.msra.mxu1 %v7651_v16 }
 0x1ca   : > { %6799 = vmatprep.subr.bf16.mxu1 %v7654_v32 }
 0x1cc   : > { %7316 = vmatmul.mubr.bf16.vlgmr.msra.gmra.mxu1 %v8627_v54  ;;  %v7660_v54 = vld [vmem:[#allocation3 + $0x4e8] sm:$0xff]  }
 0x1cd   : > { %7319 = vmatprep.mubr.bf16.mxu1 %v8643_v31  ;;  %6800 = vmatpush3.bf16.msra.mxu1 %v7655_v33  ;;  %v7677_v31 = vld [vmem:[#allocation3 + $0x488] sm:$0xff]  }
 0x1ce   : > { %6801 = vmatprep.subr.bf16.mxu1 %v7658_v34  ;;  %6763 = vmatprep.subr.bf16.mxu0 %v7660_v54 }
 0x1cf   : > { %6764 = vmatpush3.bf16.msra.mxu0 %v7661_v11 }
 0x1d0   : > { %6765 = vmatprep.subr.bf16.mxu0 %v7664_v36 }
 0x1d1   : > { %6802 = vmatpush3.bf16.msra.mxu1 %v7659_v38 }
 0x1d2   : > { %6803 = vmatprep.subr.bf16.mxu1 %v7662_v24 }
 0x1d3   : > { %6766 = vmatpush3.bf16.msra.mxu0 %v7665_v50 }
 0x1d4   : > { %7320 = vmatmul.mubr.bf16.gmra.mxu1 %v1684_v59  ;;  %6767 = vmatprep.subr.bf16.mxu0 %v7668_v42 }
 0x1d5   : > { %6804 = vmatpush3.bf16.msra.mxu1 %v7663_v6 }
 0x1d6   : > { %6805 = vmatprep.subr.bf16.mxu1 %v7666_v53 }
 0x1d7   : > { %6768 = vmatpush3.bf16.msra.mxu0 %v7669_v43 }
 0x1d8   : > { %6769 = vmatprep.subr.bf16.mxu0 %v7672_v29 }
 0x1d9   : > { %6806 = vmatpush3.bf16.msra.mxu1 %v7667_v44 }
 0x1da   : > { %6807 = vmatprep.subr.bf16.mxu1 %v7670_v55 }
 0x1db   : > { %6770 = vmatpush3.bf16.msra.mxu0 %v7673_v46 }
 0x1dc   : > { %6771 = vmatprep.subr.bf16.mxu0 %v7676_v40 }
 0x1dd   : > { %6808 = vmatpush3.bf16.msra.mxu1 %v7671_v58 }
 0x1de   : > { %6809 = vmatprep.subr.bf16.mxu1 %v7674_v41 }
 0x1df   : > { %6772 = vmatpush3.bf16.msra.mxu0 %v7677_v31 }
 0x1e0   : > { %6773 = vmatprep.subr.bf16.mxu0 %v7680_v25 }
 0x1e1   : > { %6810 = vmatpush3.bf16.msra.mxu1 %v7675_v49 }
 0x1e2   : > { %6811 = vmatprep.subr.bf16.mxu1 %v7678_v17  ;;  %v6109_v17 = vld [vmem:[#allocation6 + $0x1] ss:$0 sm:$0xff] }
 0x1e3   : > { %6774 = vmatpush3.bf16.msra.mxu0 %v7681_v56 }
 0x1e4   : > { %6839 = vmatprep.subr.bf16.mxu0 %v7684_v1 }
 0x1e5   : > { %6812 = vmatpush3.bf16.msra.mxu1 %v7679_v37 }
 0x1e6   : > { %6813 = vmatprep.subr.bf16.mxu1 %v7682_v27 }
 0x1e9   : > { %6814 = vmatpush3.bf16.msra.mxu1 %v7683_v2 }
 0x1ea   : > { %6879 = vmatprep.subr.bf16.mxu1 %v7686_v23 }
 0x24a   : > { %v6603_v13 = vpop.f32.mrf.mxu1 }
 0x24b   : > { %v6643_v3 = vpop.f32.mrf.mxu0 }
 0x24c   : > { %v6604_v21 = vpop.f32.mrf.mxu1 }
 0x24d   : > { %v6644_v60 = vpop.f32.mrf.mxu0  ;;  %v6605_v40 = vadd.f32 %v6604_v21, %v6603_v13 }
 0x24e   : > { %v6606_v8 = vpop.f32.mrf.mxu1  ;;  %v6645_v7 = vadd.f32 %v6644_v60, %v6643_v3 }
 0x24f   : > { %v8678_v19 = vpop.f32.mrf.mxu0  ;;  %v2305_v23 = vadd.f32 %v6605_v40, %v6109_v17 }
 0x250   : > { %v6607_v10 = vpop.f32.mrf.mxu1 }
 0x251   : > { %v8680_v57 = vpop.f32.mrf.mxu0  ;;  %v6608_v45 = vadd.f32 %v6607_v10, %v6606_v8 }
 0x252   : > { %v6609_v9 = vpop.f32.mrf.mxu1 }
 0x253   : > { %v6649_v62 = vpop.f32.mrf.mxu0 }
 0x254   : > { %v6610_v18 = vpop.f32.mrf.mxu1 }
 0x255   : > { %v6650_v48 = vpop.f32.mrf.mxu0  ;;  %v6611_v41 = vadd.f32 %v6610_v18, %v6609_v9 }
 0x256   : > { %v6612_v63 = vpop.f32.mrf.mxu1  ;;  %v6651_v56 = vadd.f32 %v6650_v48, %v6649_v62  ;;  %v2308_v62 = vadd.f32 %v6608_v45, %v6109_v17  ;;  %v6648_v48 = vadd.f32 %v8680_v57, %v8678_v19 }
 0x257   : > { %v6652_v39 = vpop.f32.mrf.mxu0  ;;  %v2313_v27 = vadd.f32 %v6611_v41, %v6109_v17  ;;  %v2370_v41 = vadd.f32 %v6645_v7, %v2305_v23 }
 0x258   : > { %v6613_v26 = vpop.f32.mrf.mxu1  ;;  %v2373_v7 = vadd.f32 %v6648_v48, %v2308_v62 }
 0x259   : > { %v6653_v4 = vpop.f32.mrf.mxu0  ;;  %v6614_v2 = vadd.f32 %v6613_v26, %v6612_v63 }
 0x25a   : > { %v6615_v5 = vpop.f32.mrf.mxu1 }
 0x25b   : > { %v6655_v12 = vpop.f32.mrf.mxu0 }
 0x25c   : > { %v6616_v14 = vpop.f32.mrf.mxu1 }
 0x25d   : > { %v6656_v51 = vpop.f32.mrf.mxu0  ;;  %v6617_v9 = vadd.f32 %v6616_v14, %v6615_v5 }
 0x25e   : > { %v8682_v61 = vpop.f32.mrf.mxu1  ;;  %v6657_v63 = vadd.f32 %v6656_v51, %v6655_v12 }
 0x25f   : > { %v8684_v15 = vpop.f32.mrf.mxu0  ;;  %v2321_v3 = vadd.f32 %v6617_v9, %v6109_v17 }
 0x260   : > { %9411 = vst [vmem:[#allocation18_spill] sm:$0xff] %v8684_v15  ;;  %v8686_v52 = vpop.f32.mrf.mxu1  ;;  %v2316_v15 = vadd.f32 %v6614_v2, %v6109_v17 }
 0x261   : > { %v8688_v47 = vpop.f32.mrf.mxu0  ;;  %v6620_v45 = vadd.f32 %v8686_v52, %v8682_v61  ;;  %v2386_v57 = vadd.f32 %v6657_v63, %v2321_v3  ;;  %v2612_v3 = vld [vmem:[#allocation2 + $0x8] sm:$0x3] }
 0x262   : > { %9412 = vst [vmem:[#allocation19_spill] sm:$0xff] %v8688_v47  ;;  %v6621_v16 = vpop.f32.mrf.mxu1 }
 0x263   : > { %v6661_v20 = vpop.f32.mrf.mxu0  ;;  %v2324_v61 = vadd.f32 %v6620_v45, %v6109_v17 }
 0x264   : > { %v6622_v35 = vpop.f32.mrf.mxu1 }
 0x265   : > { %v6662_v59 = vpop.f32.mrf.mxu0  ;;  %v6623_v21 = vadd.f32 %v6622_v35, %v6621_v16 }
 0x266   : > { %v6624_v0 = vpop.f32.mrf.mxu1  ;;  %v6663_v14 = vadd.f32 %v6662_v59, %v6661_v20 }
 0x267   : > { %v8690_v28 = vpop.f32.mrf.mxu0  ;;  %v2329_v5 = vadd.f32 %v6623_v21, %v6109_v17  ;;  %v9419_v52 = vld [vmem:[#allocation18_spill] sm:$0xff] }
 0x268   : > { %v6625_v32 = vpop.f32.mrf.mxu1 }
 0x269   : > { %v8692_v33 = vpop.f32.mrf.mxu0  ;;  %v6626_v16 = vadd.f32 %v6625_v32, %v6624_v0 }
 0x26a   : > { %v6666_v20 = vadd.f32 %v8692_v33, %v8690_v28 }
 0x26b   : > { %v6683_v30 = vpop.f32.mrf.mxu1 }
 0x26c   : > { %v6723_v22 = vpop.f32.mrf.mxu0 }
 0x26d   : > { %v6684_v34 = vpop.f32.mrf.mxu1 }
 0x26e   : > { %v6724_v38 = vpop.f32.mrf.mxu0 }
 0x26f   : > { %v6686_v54 = vpop.f32.mrf.mxu1 }
 0x270   : > { %v8694_v11 = vpop.f32.mrf.mxu0 }
 0x271   : > { %v6687_v24 = vpop.f32.mrf.mxu1 }
 0x272   : > { %v8696_v6 = vpop.f32.mrf.mxu0 }
 0x273   : > { %9413 = vst [vmem:[#allocation20_spill] sm:$0xff] %v8696_v6  ;;  %v6689_v36 = vpop.f32.mrf.mxu1  ;;  %v6685_v6 = vadd.f32 %v6684_v34, %v6683_v30 }
 0x274   : > { %v6729_v50 = vpop.f32.mrf.mxu0 }
 0x275   : > { %v6690_v53 = vpop.f32.mrf.mxu1 }
 0x276   : > { %v6730_v44 = vpop.f32.mrf.mxu0  ;;  %v6691_v18 = vadd.f32 %v6690_v53, %v6689_v36  ;;  %v2435_v53 = vadd.f32 %v6685_v6, %v2370_v41  ;;  %v9420_v6 = vld [vmem:[#allocation19_spill] sm:$0xff] }
 0x277   : > { %v6692_v42 = vpop.f32.mrf.mxu1  ;;  %v6731_v8 = vadd.f32 %v6730_v44, %v6729_v50  ;;  %v2394_v50 = vadd.f32 %v6663_v14, %v2329_v5  ;;  %v2332_v44 = vadd.f32 %v6626_v16, %v6109_v17 }
 0x278   : > { %v6732_v43 = vpop.f32.mrf.mxu0 }
 0x279   : > { %v6693_v55 = vpop.f32.mrf.mxu1  ;;  %v2397_v33 = vadd.f32 %v6666_v20, %v2332_v44 }
 0x27a   : > { %v6733_v58 = vpop.f32.mrf.mxu0  ;;  %v6694_v10 = vadd.f32 %v6693_v55, %v6692_v42  ;;  %v6660_v42 = vadd.f32 %v9420_v6, %v9419_v52  ;;  %v9426_v6 = vld [vmem:[#allocation17_spill] sm:$0xff] }
 0x27b   : > { %v6695_v29 = vpop.f32.mrf.mxu1  ;;  %v6734_v51 = vadd.f32 %v6733_v58, %v6732_v43 }
 0x27c   : > { %v8698_v46 = vpop.f32.mrf.mxu0 }
 0x27d   : > { %9414 = vst [vmem:[#allocation21_spill] sm:$0xff] %v8698_v46  ;;  %v6696_v49 = vpop.f32.mrf.mxu1  ;;  %v2378_v46 = vadd.f32 %v6651_v56, %v2313_v27 }
 0x27e   : > { %v8700_v31 = vpop.f32.mrf.mxu0  ;;  %v6697_v59 = vadd.f32 %v6696_v49, %v6695_v29 }
 0x27f   : > { %9415 = vst [vmem:[#allocation22_spill] sm:$0xff] %v8700_v31  ;;  %v8702_v37 = vpop.f32.mrf.mxu1  ;;  %v2443_v60 = vadd.f32 %v6691_v18, %v2378_v46 }
 0x280   : > { %9416 = vst [vmem:[#allocation23_spill] sm:$0xff] %v8702_v37  ;;  %v8704_v25 = vpop.f32.mrf.mxu0  ;;  %v6654_v37 = vadd.f32 %v6653_v4, %v6652_v39  ;;  %v6725_v39 = vadd.f32 %v6724_v38, %v6723_v22  ;;  %v6688_v4 = vadd.f32 %v6687_v24, %v6686_v54  ;;  %v9418_v22 = vld [vmem:[#allocation20_spill] sm:$0xff]  ;;  %v2451_v29 = vadd.f32 %v6697_v59, %v2386_v57 }
 0x281   : > { %9417 = vst [vmem:[#allocation24_spill] sm:$0xff] %v8704_v25  ;;  %v8706_v1 = vpop.f32.mrf.mxu1  ;;  %v2508_v34 = vadd.f32 %v6731_v8, %v2443_v60  ;;  %v6728_v38 = vadd.f32 %v9418_v22, %v8694_v11 }
 0x282   : > { %v8708_v47 = vpop.f32.mrf.mxu0  ;;  %v2381_v36 = vadd.f32 %v6654_v37, %v2316_v15  ;;  %v2438_v32 = vadd.f32 %v6688_v4, %v2373_v7  ;;  %v2500_v24 = vadd.f32 %v6725_v39, %v2435_v53  ;;  %v2652_v53 = vrot.slane %v2612_v3, 1 }
 0x283   : > { %v6701_v13 = vpop.f32.mrf.mxu1 }
 0x284   : > { %v6741_v31 = vpop.f32.mrf.mxu0  ;;  %v2446_v12 = vadd.f32 %v6694_v10, %v2381_v36  ;;  %v9421_v49 = vld [vmem:[#allocation21_spill] sm:$0xff]  ;;  %v2503_v18 = vadd.f32 %v6728_v38, %v2438_v32 }
 0x285   : > { %v6702_v25 = vpop.f32.mrf.mxu1 }
 0x286   : > { %v6742_v35 = vpop.f32.mrf.mxu0  ;;  %v6703_v19 = vadd.f32 %v6702_v25, %v6701_v13  ;;  %v2511_v28 = vadd.f32 %v6734_v51, %v2446_v12  ;;  %v9422_v25 = vld [vmem:[#allocation22_spill] sm:$0xff]  ;;  %v2688_v12 = vrot.slane %v2612_v3, 2 }
 0x287   : > { %v6704_v26 = vpop.f32.mrf.mxu1  ;;  %v6743_v55 = vadd.f32 %v6742_v35, %v6741_v31  ;;  %v6737_v27 = vadd.f32 %v9422_v25, %v9421_v49  ;;  %v9423_v2 = vld [vmem:[#allocation23_spill] sm:$0xff]  ;;  %v2389_v31 = vadd.f32 %v6660_v42, %v2324_v61  ;;  %v9425_v35 = vld [vmem:[#allocation16_spill] sm:$0xff]  ;;  %v7691_v3 = vld [vmem:[#allocation3 + $0x630] sm:$0xff]  }
 0x288   : > { %v6744_v15 = vpop.f32.mrf.mxu0  ;;  %v2459_v43 = vadd.f32 %v6703_v19, %v2394_v50  ;;  %v6700_v17 = vadd.f32 %v8706_v1, %v9423_v2  ;;  %v2651_v36 = vrot.slane %v9425_v35, 1  ;;  %v2689_v42 = vsel %vm1613_vm7, %v9426_v6, %v2688_v12 }
 0x289   : > { %v6705_v30 = vpop.f32.mrf.mxu1  ;;  %v2516_v8 = vadd.f32 %v6737_v27, %v2451_v29  ;;  %v7687_v29 = vld [vmem:[#allocation3 + $0x638] sm:$0xff]  }
 0x28a   : > { %v6706_v46 = vadd.f32 %v6705_v30, %v6704_v26  ;;  %v6745_v56 = vpop.f32.mrf.mxu0  ;;  %v2524_v21 = vadd.f32 %v6743_v55, %v2459_v43  ;;  %v2454_v10 = vadd.f32 %v6700_v17, %v2389_v31  ;;  %v9424_v26 = vld [vmem:[#allocation24_spill] sm:$0xff]  ;;  %v2653_v20 = vsel %vm1576_vm6, %v2651_v36, %v2652_v53  ;;  %v7685_v43 = vld [vmem:[#allocation3 + $0x5b8] sm:$0xff]  }
 0x28b   : > { %v6746_v62 = vadd.f32 %v6745_v56, %v6744_v15  ;;  %v6740_v5 = vadd.f32 %v8708_v47, %v9424_v26 }
 0x28c   : > { %v7317_v0 = vpop.f32.mrf.mxu1  ;;  %v2462_v41 = vadd.f32 %v6706_v46, %v2397_v33 }
 0x28d   : > { %v2573_v54 = vadd.f32 %v7317_v0, %v2508_v34  ;;  %v2519_v57 = vadd.f32 %v6740_v5, %v2454_v10 }
 0x28e   : > { %v2564_v58 = vpop.f32.mrf.mxu1  ;;  %v2527_v30 = vadd.f32 %v6746_v62, %v2462_v41 }
 0x28f   : > { %v2597_v40 = vmax.f32 %v2573_v54, 0.0  ;;  %v2565_v37 = vadd.f32 %v2564_v58, %v2500_v24 }
 0x290   : > { %v7318_v11 = vpop.f32.mrf.mxu1 }
 0x291   : > { %2605 = vst [vmem:[#allocation2 + $0x31] sm:$0xff] %v2597_v40  ;;  %v2595_v23 = vmax.f32 %v2565_v37, 0.0  ;;  %v2576_v9 = vadd.f32 %v7318_v11, %v2511_v28  ;;  %v7688_v11 = vld [vmem:[#allocation3 + $0x5f0] sm:$0xff]  }
 0x292   : > { %v2567_v13 = vpop.f32.mrf.mxu1 }
 0x293   : > { %2603 = vst [vmem:[#allocation2 + $0x11] sm:$0xff] %v2595_v23  ;;  %v2598_v48 = vmax.f32 %v2576_v9, 0.0  ;;  %v2568_v63 = vadd.f32 %v2567_v13, %v2503_v18  ;;  %v7690_v9 = vld [vmem:[#allocation3 + $0x670] sm:$0xff]  }
 0x294   : > { %v7321_v60 = vpop.f32.mrf.mxu1 }
 0x295   : > { %2606 = vst [vmem:[#allocation2 + $0x41] sm:$0xff] %v2598_v48  ;;  %v2596_v1 = vmax.f32 %v2568_v63, 0.0  ;;  %v2589_v14 = vadd.f32 %v7321_v60, %v2524_v21  ;;  %v7689_v21 = vld [vmem:[#allocation3 + $0x5b0] sm:$0xff]   ;;  %v7692_v60 = vld [vmem:[#allocation3 + $0x5e8] sm:$0xff]  }
 0x296   : > { %v2580_v16 = vpop.f32.mrf.mxu1 }
 0x297   : > { %2604 = vst [vmem:[#allocation2 + $0x21] sm:$0xff] %v2596_v1  ;;  %v2601_v39 = vmax.f32 %v2589_v14, 0.0  ;;  %v2581_v4 = vadd.f32 %v2580_v16, %v2516_v8  ;;  %v7694_v1 = vld [vmem:[#allocation3 + $0x668] sm:$0xff]  }
 0x298   : > { %v7322_v7 = vpop.f32.mrf.mxu1  ;;  %v8727_v51 = vld [vmem:[#allocation2 + $0x30] sm:$0xff]  ;;  %v8729_v47 = vld [vmem:[#allocation2 + $0x38] sm:$0x3] }
 0x299   : > { %2609 = vst [vmem:[#allocation2 + $0x71] sm:$0xff] %v2601_v39  ;;  %v2599_v45 = vmax.f32 %v2581_v4, 0.0  ;;  %v2592_v19 = vadd.f32 %v7322_v7, %v2527_v30  ;;  %v2660_v54 = vrot.slane %v8727_v51, 1  ;;  %v2661_v24 = vrot.slane %v8729_v47, 1 }
 0x29a   : > { %v2583_v34 = vpop.f32.mrf.mxu1  ;;  %v2613_v50 = vld [vmem:[#allocation2 + $0x10] sm:$0xff]  ;;  %v2614_v44 = vld [vmem:[#allocation2 + $0x18] sm:$0x3]  ;;  %v2696_v48 = vrot.slane %v8727_v51, 2  ;;  %v2697_v63 = vrot.slane %v8729_v47, 2 }
 0x29b   : > { %2607 = vst [vmem:[#allocation2 + $0x51] sm:$0xff] %v2599_v45  ;;  %v2602_v59 = vmax.f32 %v2592_v19, 0.0  ;;  %v2584_v15 = vadd.f32 %v2583_v34, %v2519_v57  ;;  %v2654_v0 = vrot.slane %v2613_v50, 1  ;;  %v2655_v32 = vrot.slane %v2614_v44, 1  ;;  %v7693_v45 = vld [vmem:[#allocation3 + $0x5a8] sm:$0xff]  }
 0x29c   : > { %v2690_v22 = vrot.slane %v2613_v50, 2  ;;  %v2691_v38 = vrot.slane %v2614_v44, 2  ;;  %v8745_v40 = vld [vmem:[#allocation2 + $0x40] sm:$0xff]  ;;  %v2631_v28 = vpack.c.bf16 %v2613_v50, %v9425_v35  ;;  %v8750_v56 = vsel %vm1576_vm6, %v2660_v54, %v2661_v24  ;;  %v8752_v2 = vld [vmem:[#allocation2 + $0x48] sm:$0x3] }
 0x29d   : > { %2610 = vst [vmem:[#allocation2 + $0x81] sm:$0xff] %v2602_v59  ;;  %v2600_v61 = vmax.f32 %v2584_v15, 0.0  ;;  %v8737_v52 = vsel %vm1576_vm6, %v2654_v0, %v2655_v32  ;;  %v2724_v17 = vpack.c.bf16 %v8745_v40, %v8727_v51  ;;  %v2663_v8 = vrot.slane %v8745_v40, 1  ;;  %v7695_v19 = vld [vmem:[#allocation3 + $0x628] sm:$0xff]   ;;  %v7697_v32 = vld [vmem:[#allocation3 + $0x5a0] sm:$0xff]  }
 0x29e   : > { %v2683_v55 = vpack.c.bf16 %v8737_v52, %v2653_v20  ;;  %v2615_v58 = vld [vmem:[#allocation2 + $0x20] sm:$0xff]  ;;  %v8743_v46 = vsel %vm1613_vm7, %v2690_v22, %v2691_v38  ;;  %v2616_v37 = vld [vmem:[#allocation2 + $0x28] sm:$0x3]  ;;  %v2664_v10 = vrot.slane %v8752_v2, 1  ;;  %v8785_v7 = vsel %vm1613_vm7, %v2696_v48, %v2697_v63 }
 0x29f   : > { %2608 = vst [vmem:[#allocation2 + $0x61] sm:$0xff] %v2600_v61  ;;  %v2723_v33 = vpack.c.bf16 %v2615_v58, %v2613_v50  ;;  %v2657_v49 = vrot.slane %v2615_v58, 1  ;;  %v2658_v25 = vrot.slane %v2616_v37, 1  ;;  %v2719_v27 = vpack.c.bf16 %v8743_v46, %v2689_v42  ;;  %v7698_v20 = vld [vmem:[#allocation3 + $0x660] sm:$0xff]   ;;  %v7700_v42 = vld [vmem:[#allocation3 + $0x5d8] sm:$0xff]   ;;  %v7708_v48 = vld [vmem:[#allocation3 + $0x5c8] sm:$0xff]  }
 0x2a0   : > { %3375 = vmatprep.mubr.bf16.mxu0 %v2683_v55  ;;  %v2693_v18 = vrot.slane %v2615_v58, 2  ;;  %v2694_v31 = vrot.slane %v2616_v37, 2  ;;  %v8779_v4 = vpack.c.bf16 %v8727_v51, %v2615_v58  ;;  %v8782_v30 = vsel %vm1576_vm6, %v2663_v8, %v2664_v10  ;;  %v7696_v51 = vld [vmem:[#allocation3 + $0x5e0] sm:$0xff]   ;;  %v2625_v47 = vld [vmem:[#allocation2 + $0x70] sm:$0xff]  ;;  %v2626_v34 = vld [vmem:[#allocation2 + $0x78] sm:$0x3] }
 0x2a1   : > { %3376 = vmatmul.mubr.bf16.vlgmr.msra.gmra.mxu0 %v2631_v28  ;;  %3440 = vmatprep.mubr.bf16.mxu1 %v2723_v33  ;;  %v8757_v23 = vsel %vm1576_vm6, %v2657_v49, %v2658_v25  ;;  %v2672_v22 = vrot.slane %v2625_v47, 1  ;;  %v2673_v38 = vrot.slane %v2626_v34, 1  ;;  %v2699_v54 = vrot.slane %v8745_v40, 2  ;;  %v7699_v61 = vld [vmem:[#allocation3 + $0x620] sm:$0xff]   ;;  %v7702_v58 = vld [vmem:[#allocation3 + $0x658] sm:$0xff]   ;;  %v7709_v10 = vld [vmem:[#allocation3 + $0x588] sm:$0xff]  }
 0x2a2   : > { %3441 = vmatmul.mubr.bf16.vlgmr.msra.gmra.mxu1 %v2719_v27  ;;  %6840 = vmatpush3.bf16.msra.mxu0 %v7685_v43  ;;  %v8761_v13 = vpack.c.bf16 %v8750_v56, %v8757_v23  ;;  %v2621_v41 = vld [vmem:[#allocation2 + $0x50] sm:$0xff]  ;;  %v2622_v62 = vld [vmem:[#allocation2 + $0x58] sm:$0x3]  ;;  %v8772_v16 = vsel %vm1613_vm7, %v2693_v18, %v2694_v31  ;;  %v2700_v24 = vrot.slane %v8752_v2, 2 }
 0x2a3   : > { %3448 = vmatprep.mubr.bf16.mxu1 %v2724_v17  ;;  %6880 = vmatpush3.bf16.msra.mxu1 %v7687_v29  ;;  %v2666_v26 = vrot.slane %v2621_v41, 1  ;;  %v2667_v5 = vrot.slane %v2622_v62, 1  ;;  %v8793_v12 = vpack.c.bf16 %v8785_v7, %v8772_v16  ;;  %v2702_v50 = vrot.slane %v2621_v41, 2  ;;  %v7701_v49 = vld [vmem:[#allocation3 + $0x598] sm:$0xff]   ;;  %v7704_v2 = vld [vmem:[#allocation3 + $0x5d0] sm:$0xff]  }
 0x2a4   : > { %3383 = vmatprep.mubr.bf16.mxu0 %v8761_v13  ;;  %6841 = vmatprep.subr.bf16.mxu0 %v7688_v11  ;;  %v2703_v0 = vrot.slane %v2622_v62, 2  ;;  %v8809_v37 = vld [vmem:[#allocation2 + $0x80] sm:$0xff]  ;;  %v8812_v28 = vpack.c.bf16 %v2621_v41, %v8745_v40  ;;  %v8815_v33 = vsel %vm1576_vm6, %v2672_v22, %v2673_v38  ;;  %v2701_v29 = vsel %vm1613_vm7, %v2699_v54, %v2700_v24  ;;  %v7703_v11 = vld [vmem:[#allocation3 + $0x618] sm:$0xff]   ;;  %v7706_v17 = vld [vmem:[#allocation3 + $0x650] sm:$0xff]  }
 0x2a5   : > { %6881 = vmatprep.subr.bf16.mxu1 %v7690_v9  ;;  %v8769_v14 = vsel %vm1576_vm6, %v2666_v26, %v2667_v5  ;;  %v2726_v40 = vpack.c.bf16 %v8809_v37, %v2625_v47  ;;  %v7705_v31 = vld [vmem:[#allocation3 + $0x590] sm:$0xff]   ;;  %v2741_v5 = vpack.c.bf16 %v8772_v16, %v8743_v46  ;;  %v2733_v46 = vpack.c.bf16 %v8757_v23, %v8737_v52  ;;  %v2630_v52 = vld [vmem:[#allocation2 + $0x98] sm:$0x3]  ;;  %v7722_v24 = vld [vmem:[#allocation3 + $0x688] sm:$0xff]  }
 0x2a6   : > { %6842 = vmatpush3.bf16.msra.mxu0 %v7689_v21  ;;  %v8774_v53 = vld [vmem:[#allocation2 + $0x60] sm:$0xff]  ;;  %v8776_v39 = vld [vmem:[#allocation2 + $0x68] sm:$0x3]  ;;  %v8789_v57 = vpack.c.bf16 %v8769_v14, %v8782_v30  ;;  %v8807_v55 = vsel %vm1613_vm7, %v2702_v50, %v2703_v0  ;;  %v2708_v21 = vrot.slane %v2625_v47, 2  ;;  %v7707_v62 = vld [vmem:[#allocation3 + $0x610] sm:$0xff]   ;;  %v2742_v16 = vpack.c.bf16 %v2701_v29, %v8785_v7 }
 0x2a7   : > { %6882 = vmatpush3.bf16.msra.mxu1 %v7691_v3  ;;  %6843 = vmatprep.subr.bf16.mxu0 %v7692_v60  ;;  %v2725_v44 = vpack.c.bf16 %v8774_v53, %v2621_v41  ;;  %v2669_v59 = vrot.slane %v8774_v53, 1  ;;  %v2670_v15 = vrot.slane %v8776_v39, 1  ;;  %v8823_v27 = vpack.c.bf16 %v8807_v55, %v2701_v29  ;;  %v7710_v3 = vld [vmem:[#allocation3 + $0x648] sm:$0xff]   ;;  %v7719_v7 = vld [vmem:[#allocation3 + $0x6a0] sm:$0xff]   ;;  %v7721_v38 = vld [vmem:[#allocation3 + $0x690] sm:$0xff]  }
 0x2a8   : > { %6883 = vmatprep.subr.bf16.mxu1 %v7694_v1  ;;  %v2705_v9 = vrot.slane %v8774_v53, 2  ;;  %v2706_v18 = vrot.slane %v8776_v39, 2  ;;  %v2709_v41 = vrot.slane %v2626_v34, 2  ;;  %v8833_v60 = vpack.c.bf16 %v2625_v47, %v8774_v53  ;;  %v7711_v1 = vld [vmem:[#allocation3 + $0x608] sm:$0xff]   ;;  %v7712_v39 = vld [vmem:[#allocation3 + $0x5c0] sm:$0xff]   ;;  %v7717_v47 = vld [vmem:[#allocation3 + $0x6b0] sm:$0xff]  }
 0x2a9   : > { %3384 = vmatmul.mubr.bf16.gmra.mxu0 %v8779_v4  ;;  %v8804_v43 = vsel %vm1576_vm6, %v2669_v59, %v2670_v15  ;;  %v7713_v53 = vld [vmem:[#allocation3 + $0x580] sm:$0xff]   ;;  %v2628_v34 = vld [vmem:[#allocation2 + $0x88] sm:$0x3]  ;;  %v2734_v50 = vpack.c.bf16 %v8782_v30, %v8750_v56  ;;  %v2749_v59 = vrot.slane %v2630_v52, 1  ;;  %v7720_v56 = vld [vmem:[#allocation3 + $0x698] sm:$0xff]  }
 0x2aa   : > { %3391 = vmatprep.mubr.bf16.mxu0 %v8789_v57  ;;  %3449 = vmatmul.mubr.bf16.gmra.mxu1 %v8793_v12  ;;  %v8820_v25 = vpack.c.bf16 %v8815_v33, %v8804_v43  ;;  %v2707_v63 = vsel %vm1613_vm7, %v2705_v9, %v2706_v18  ;;  %v8836_v8 = vsel %vm1613_vm7, %v2708_v21, %v2709_v41  ;;  %v7728_v29 = vld [vmem:[#allocation3 + $0x730] sm:$0xff]   ;;  %v7738_v9 = vld [vmem:[#allocation3 + $0x7a0] sm:$0xff]   ;;  %v7741_v21 = vld [vmem:[#allocation3 + $0x6d8] sm:$0xff]  }
 0x2ab   : > { %6844 = vmatpush3.bf16.msra.mxu0 %v7693_v45  ;;  %3456 = vmatprep.mubr.bf16.mxu1 %v2725_v44  ;;  %v8839_v26 = vpack.c.bf16 %v8836_v8, %v2707_v63  ;;  %v7714_v45 = vld [vmem:[#allocation3 + $0x640] sm:$0xff]   ;;  %v2743_v23 = vpack.c.bf16 %v2707_v63, %v8807_v55  ;;  %v2737_v44 = vrot.slane %v8809_v37, 2  ;;  %v2750_v0 = vsel %vm1576_vm6, %v2651_v36, %v2749_v59  ;;  %v7742_v41 = vld [vmem:[#allocation3 + $0x798] sm:$0xff]   ;;  %v7745_v63 = vld [vmem:[#allocation3 + $0x6d0] sm:$0xff]  }
 0x2ac   : > { %6884 = vmatpush3.bf16.msra.mxu1 %v7695_v19  ;;  %6845 = vmatprep.subr.bf16.mxu0 %v7696_v51  ;;  %v7715_v19 = vld [vmem:[#allocation3 + $0x600] sm:$0xff]   ;;  %v7716_v51 = vld [vmem:[#allocation3 + $0x6b8] sm:$0xff]  }
 0x2ad   : > { %6885 = vmatprep.subr.bf16.mxu1 %v7698_v20  ;;  %v2738_v20 = vrot.slane %v2628_v34, 2  ;;  %v8868_v36 = vld [vmem:[#allocation2] sm:$0xff] }
 0x2ae   : > { %9427 = vst [vmem:[#allocation20_spill] sm:$0xff] %v8868_v36  ;;  %v7739_v18 = vld [vmem:[#allocation3 + $0x760] sm:$0xff]  }
 0x2af   : > { %6846 = vmatpush3.bf16.msra.mxu0 %v7697_v32  ;;  %v2739_v30 = vsel %vm1613_vm7, %v2737_v44, %v2738_v20  ;;  %v2735_v32 = vpack.c.bf16 %v8804_v43, %v8769_v14  ;;  %v2745_v14 = vpack.c.bf16 %v8868_v36, %v8809_v37 }
 0x2b0   : > { %6886 = vmatpush3.bf16.msra.mxu1 %v7699_v61  ;;  %6847 = vmatprep.subr.bf16.mxu0 %v7700_v42  ;;  %v2744_v22 = vpack.c.bf16 %v2739_v30, %v8836_v8  ;;  %v7723_v61 = vld [vmem:[#allocation3 + $0x680] sm:$0xff]   ;;  %v2754_v42 = vrot.slane %v2630_v52, 2  ;;  %v7748_v8 = vld [vmem:[#allocation3 + $0x708] sm:$0xff]  }
 0x2b1   : > { %3392 = vmatmul.mubr.bf16.gmra.mxu0 %v8812_v28  ;;  %6887 = vmatprep.subr.bf16.mxu1 %v7702_v58  ;;  %v7724_v58 = vld [vmem:[#allocation3 + $0x738] sm:$0xff]  }
 0x2b2   : > { %3399 = vmatprep.mubr.bf16.mxu0 %v8820_v25  ;;  %3457 = vmatmul.mubr.bf16.gmra.mxu1 %v8823_v27  ;;  %v2755_v43 = vsel %vm1613_vm7, %v9426_v6, %v2754_v42  ;;  %v7733_v6 = vld [vmem:[#allocation3 + $0x6e8] sm:$0xff]  }
 0x2b3   : > { %6848 = vmatpush3.bf16.msra.mxu0 %v7701_v49  ;;  %3464 = vmatprep.mubr.bf16.mxu1 %v2726_v40  ;;  %v2757_v55 = vpack.c.bf16 %v2755_v43, %v2739_v30  ;;  %v7730_v49 = vld [vmem:[#allocation3 + $0x7b0] sm:$0xff]   ;;  %v7736_v40 = vld [vmem:[#allocation3 + $0x720] sm:$0xff]  }
 0x2b4   : > { %6888 = vmatpush3.bf16.msra.mxu1 %v7703_v11  ;;  %6849 = vmatprep.subr.bf16.mxu0 %v7704_v2  ;;  %v7734_v11 = vld [vmem:[#allocation3 + $0x7a8] sm:$0xff]  }
 0x2b5   : > { %6889 = vmatprep.subr.bf16.mxu1 %v7706_v17  ;;  %v7735_v2 = vld [vmem:[#allocation3 + $0x768] sm:$0xff]   ;;  %v7737_v17 = vld [vmem:[#allocation3 + $0x6e0] sm:$0xff]  }
 0x2b7   : > { %6850 = vmatpush3.bf16.msra.mxu0 %v7705_v31  ;;  %v7740_v31 = vld [vmem:[#allocation3 + $0x718] sm:$0xff]  }
 0x2b8   : > { %6890 = vmatpush3.bf16.msra.mxu1 %v7707_v62  ;;  %6851 = vmatprep.subr.bf16.mxu0 %v7708_v48  ;;  %v7743_v62 = vld [vmem:[#allocation3 + $0x758] sm:$0xff]   ;;  %v7744_v48 = vld [vmem:[#allocation3 + $0x710] sm:$0xff]  }
 0x2b9   : > { %3400 = vmatmul.mubr.bf16.gmra.mxu0 %v8833_v60  ;;  %6891 = vmatprep.subr.bf16.mxu1 %v7710_v3  ;;  %v7746_v3 = vld [vmem:[#allocation3 + $0x790] sm:$0xff]  }
 0x2ba   : > { %3465 = vmatmul.mubr.bf16.gmra.mxu1 %v8839_v26  ;;  %3505 = vmatprep.mubr.bf16.mxu0 %v2741_v5  ;;  %v7751_v5 = vld [vmem:[#allocation3 + $0x748] sm:$0xff]  }
 0x2bb   : > { %6852 = vmatpush3.bf16.msra.mxu0 %v7709_v10  ;;  %3570 = vmatprep.mubr.bf16.mxu1 %v8761_v13  ;;  %v7718_v13 = vld [vmem:[#allocation3 + $0x6a8] sm:$0xff]  }
 0x2bc   : > { %6892 = vmatpush3.bf16.msra.mxu1 %v7711_v1  ;;  %6853 = vmatprep.subr.bf16.mxu0 %v7712_v39  ;;  %v7749_v10 = vld [vmem:[#allocation3 + $0x6c8] sm:$0xff]   ;;  %v7752_v1 = vld [vmem:[#allocation3 + $0x700] sm:$0xff]  }
 0x2bd   : > { %6893 = vmatprep.subr.bf16.mxu1 %v7714_v45  ;;  %v7754_v39 = vld [vmem:[#allocation3 + $0x780] sm:$0xff]  }
 0x2be   : > { %v7753_v45 = vld [vmem:[#allocation3 + $0x6c0] sm:$0xff]  }
 0x2bf   : > { %6854 = vmatpush3.bf16.msra.mxu0 %v7713_v53  ;;  %v7755_v53 = vld [vmem:[#allocation3 + $0x740] sm:$0xff]  }
 0x2c0   : > { %6894 = vmatpush3.bf16.msra.mxu1 %v7715_v19  ;;  %7323 = vmatprep.subr.bf16.mxu0 %v7716_v51  ;;  %v7756_v19 = vld [vmem:[#allocation3 + $0x838] sm:$0xff]  }
 0x2c1   : > { %6931 = vmatprep.subr.bf16.mxu1 %v7724_v58 }
 0x2c2   : > { %3506 = vmatmul.mubr.bf16.vlgmr.msra.gmra.mxu0 %v2733_v46 }
 0x2c3   : > { %3513 = vmatprep.mubr.bf16.mxu0 %v2742_v16  ;;  %3571 = vmatmul.mubr.bf16.vlgmr.msra.gmra.mxu1 %v8779_v4  ;;  %v2729_v4 = vrot.slane %v8809_v37, 1  ;;  %v7725_v37 = vld [vmem:[#allocation3 + $0x6f8] sm:$0xff]  }
 0x2c4   : > { %7324 = vmatpush3.bf16.msra.mxu0 %v7716_v51  ;;  %3578 = vmatprep.mubr.bf16.mxu1 %v8789_v57  ;;  %v2730_v57 = vrot.slane %v2628_v34, 1  ;;  %v7758_v51 = vld [vmem:[#allocation3 + $0x8b8] sm:$0xff]  }
 0x2c5   : > { %7325 = vmatprep.subr.bf16.mxu0 %v7717_v47  ;;  %6932 = vmatpush3.bf16.msra.mxu1 %v7725_v37 }
 0x2c6   : > { %v2731_v15 = vsel %vm1576_vm6, %v2729_v4, %v2730_v57  ;;  %6933 = vmatprep.subr.bf16.mxu1 %v7728_v29 }
 0x2c7   : > { %v2752_v54 = vpack.c.bf16 %v2750_v0, %v2731_v15  ;;  %v2736_v35 = vpack.c.bf16 %v2731_v15, %v8815_v33  ;;  %v7727_v33 = vld [vmem:[#allocation3 + $0x778] sm:$0xff]  }
 0x2c8   : > { %7326 = vmatpush3.bf16.msra.mxu0 %v7717_v47 }
 0x2c9   : > { %7327 = vmatprep.subr.bf16.mxu0 %v7718_v13 }
 0x2ca   : > { %3514 = vmatmul.mubr.bf16.gmra.mxu0 %v2734_v50 }
 0x2cb   : > { %3521 = vmatprep.mubr.bf16.mxu0 %v2743_v23  ;;  %3579 = vmatmul.mubr.bf16.gmra.mxu1 %v8812_v28  ;;  %v7726_v28 = vld [vmem:[#allocation3 + $0x7b8] sm:$0xff]  }
 0x2cc   : > { %7328 = vmatpush3.bf16.msra.mxu0 %v7718_v13  ;;  %3586 = vmatprep.mubr.bf16.mxu1 %v8820_v25  ;;  %v7731_v25 = vld [vmem:[#allocation3 + $0x770] sm:$0xff]  }
 0x2cd   : > { %7329 = vmatprep.subr.bf16.mxu0 %v7719_v7 }
 0x2d0   : > { %7330 = vmatpush3.bf16.msra.mxu0 %v7719_v7 }
 0x2d1   : > { %7331 = vmatprep.subr.bf16.mxu0 %v7720_v56 }
 0x2d2   : > { %3522 = vmatmul.mubr.bf16.gmra.mxu0 %v2735_v32 }
 0x2d3   : > { %3529 = vmatprep.mubr.bf16.mxu0 %v2744_v22  ;;  %3587 = vmatmul.mubr.bf16.gmra.mxu1 %v8833_v60  ;;  %v7747_v60 = vld [vmem:[#allocation3 + $0x750] sm:$0xff]  }
 0x2d4   : > { %7332 = vmatpush3.bf16.msra.mxu0 %v7720_v56  ;;  %3594 = vmatprep.mubr.bf16.mxu1 %v2752_v54 }
 0x2d5   : > { %7333 = vmatprep.subr.bf16.mxu0 %v7721_v38 }
 0x2d8   : > { %7334 = vmatpush3.bf16.msra.mxu0 %v7721_v38 }
 0x2d9   : > { %7335 = vmatprep.subr.bf16.mxu0 %v7722_v24 }
 0x2da   : > { %3530 = vmatmul.mubr.bf16.gmra.mxu0 %v2736_v35 }
 0x2db   : > { %3595 = vmatmul.mubr.bf16.gmra.mxu1 %v2745_v14  ;;  %7339 = vmatprep.mubr.bf16.mxu0 %v8793_v12  ;;  %v7729_v12 = vld [vmem:[#allocation3 + $0x6f0] sm:$0xff]  }
 0x2dc   : > { %7336 = vmatpush3.bf16.msra.mxu0 %v7722_v24  ;;  %6934 = vmatpush3.bf16.msra.mxu1 %v7729_v12 }
 0x2dd   : > { %7337 = vmatprep.subr.bf16.mxu0 %v7723_v61 }
 0x2e0   : > { %7338 = vmatpush3.bf16.msra.mxu0 %v7723_v61 }
 0x2e1   : > { %6971 = vmatprep.subr.bf16.mxu0 %v7726_v28 }
 0x2e3   : > { %7340 = vmatmul.mubr.bf16.vlgmr.msra.gmra.mxu0 %v8823_v27  ;;  %v7732_v27 = vld [vmem:[#allocation3 + $0x728] sm:$0xff]  }
 0x2e4   : > { %7343 = vmatprep.mubr.bf16.mxu0 %v8839_v26  ;;  %6972 = vmatpush3.bf16.msra.mxu0 %v7727_v33  ;;  %v7750_v26 = vld [vmem:[#allocation3 + $0x788] sm:$0xff]  }
 0x2e5   : > { %6973 = vmatprep.subr.bf16.mxu0 %v7730_v49  ;;  %6935 = vmatprep.subr.bf16.mxu1 %v7732_v27 }
 0x2e6   : > { %6936 = vmatpush3.bf16.msra.mxu1 %v7733_v6 }
 0x2e7   : > { %6937 = vmatprep.subr.bf16.mxu1 %v7736_v40 }
 0x2e8   : > { %6974 = vmatpush3.bf16.msra.mxu0 %v7731_v25 }
 0x2e9   : > { %6975 = vmatprep.subr.bf16.mxu0 %v7734_v11 }
 0x2ea   : > { %6938 = vmatpush3.bf16.msra.mxu1 %v7737_v17 }
 0x2eb   : > { %7344 = vmatmul.mubr.bf16.gmra.mxu0 %v2757_v55  ;;  %6939 = vmatprep.subr.bf16.mxu1 %v7740_v31 }
 0x2ec   : > { %6976 = vmatpush3.bf16.msra.mxu0 %v7735_v2 }
 0x2ed   : > { %6977 = vmatprep.subr.bf16.mxu0 %v7738_v9 }
 0x2ee   : > { %6940 = vmatpush3.bf16.msra.mxu1 %v7741_v21 }
 0x2ef   : > { %6941 = vmatprep.subr.bf16.mxu1 %v7744_v48 }
 0x2f0   : > { %6978 = vmatpush3.bf16.msra.mxu0 %v7739_v18 }
 0x2f1   : > { %6979 = vmatprep.subr.bf16.mxu0 %v7742_v41 }
 0x2f2   : > { %6942 = vmatpush3.bf16.msra.mxu1 %v7745_v63 }
 0x2f3   : > { %6943 = vmatprep.subr.bf16.mxu1 %v7748_v8 }
 0x2f4   : > { %6980 = vmatpush3.bf16.msra.mxu0 %v7743_v62 }
 0x2f5   : > { %6981 = vmatprep.subr.bf16.mxu0 %v7746_v3 }
 0x2f6   : > { %6944 = vmatpush3.bf16.msra.mxu1 %v7749_v10  ;;  %v6182_v10 = vld [vmem:[#allocation6 + $0x2] ss:$0 sm:$0xff] }
 0x2f7   : > { %6945 = vmatprep.subr.bf16.mxu1 %v7752_v1 }
 0x2f8   : > { %6982 = vmatpush3.bf16.msra.mxu0 %v7747_v60 }
 0x2f9   : > { %6983 = vmatprep.subr.bf16.mxu0 %v7750_v26 }
 0x2fa   : > { %6946 = vmatpush3.bf16.msra.mxu1 %v7753_v45 }
 0x2fb   : > { %7011 = vmatprep.subr.bf16.mxu1 %v7756_v19 }
 0x2fc   : > { %6984 = vmatpush3.bf16.msra.mxu0 %v7751_v5 }
 0x2fd   : > { %6985 = vmatprep.subr.bf16.mxu0 %v7754_v39 }
 0x300   : > { %6986 = vmatpush3.bf16.msra.mxu0 %v7755_v53 }
 0x301   : > { %7051 = vmatprep.subr.bf16.mxu0 %v7758_v51 }
 0x361   : > { %v6775_v46 = vpop.f32.mrf.mxu0 }
 0x362   : > { %v6815_v16 = vpop.f32.mrf.mxu1 }
 0x363   : > { %v6776_v47 = vpop.f32.mrf.mxu0 }
 0x364   : > { %v6816_v13 = vpop.f32.mrf.mxu1  ;;  %v6777_v60 = vadd.f32 %v6776_v47, %v6775_v46 }
 0x365   : > { %v6778_v34 = vpop.f32.mrf.mxu0  ;;  %v6817_v51 = vadd.f32 %v6816_v13, %v6815_v16 }
 0x366   : > { %v8877_v50 = vpop.f32.mrf.mxu1  ;;  %v3378_v19 = vadd.f32 %v6777_v60, %v6182_v10 }
 0x367   : > { %v6779_v52 = vpop.f32.mrf.mxu0 }
 0x368   : > { %v8879_v23 = vpop.f32.mrf.mxu1  ;;  %v6780_v36 = vadd.f32 %v6779_v52, %v6778_v34 }
 0x369   : > { %v6781_v7 = vpop.f32.mrf.mxu0 }
 0x36a   : > { %v6821_v44 = vpop.f32.mrf.mxu1 }
 0x36b   : > { %v6782_v20 = vpop.f32.mrf.mxu0 }
 0x36c   : > { %v6822_v4 = vpop.f32.mrf.mxu1  ;;  %v6783_v63 = vadd.f32 %v6782_v20, %v6781_v7 }
 0x36d   : > { %v6784_v57 = vpop.f32.mrf.mxu0  ;;  %v6823_v39 = vadd.f32 %v6822_v4, %v6821_v44  ;;  %v3381_v44 = vadd.f32 %v6780_v36, %v6182_v10  ;;  %v6820_v4 = vadd.f32 %v8879_v23, %v8877_v50 }
 0x36e   : > { %v6824_v59 = vpop.f32.mrf.mxu1  ;;  %v3386_v1 = vadd.f32 %v6783_v63, %v6182_v10  ;;  %v3443_v63 = vadd.f32 %v6817_v51, %v3378_v19 }
 0x36f   : > { %v6785_v56 = vpop.f32.mrf.mxu0 }
 0x370   : > { %v6825_v30 = vpop.f32.mrf.mxu1  ;;  %v6786_v45 = vadd.f32 %v6785_v56, %v6784_v57 }
 0x371   : > { %v6787_v15 = vpop.f32.mrf.mxu0 }
 0x372   : > { %v6827_v0 = vpop.f32.mrf.mxu1 }
 0x373   : > { %v6788_v32 = vpop.f32.mrf.mxu0 }
 0x374   : > { %v6828_v22 = vpop.f32.mrf.mxu1  ;;  %v6789_v7 = vadd.f32 %v6788_v32, %v6787_v15 }
 0x375   : > { %v8881_v38 = vpop.f32.mrf.mxu0  ;;  %v6829_v57 = vadd.f32 %v6828_v22, %v6827_v0 }
 0x376   : > { %v8883_v54 = vpop.f32.mrf.mxu1  ;;  %v3394_v16 = vadd.f32 %v6789_v7, %v6182_v10 }
 0x377   : > { %9428 = vst [vmem:[#allocation18_spill] sm:$0xff] %v8883_v54  ;;  %v8885_v24 = vpop.f32.mrf.mxu0  ;;  %v3389_v54 = vadd.f32 %v6786_v45, %v6182_v10 }
 0x378   : > { %v8887_v35 = vpop.f32.mrf.mxu1  ;;  %v6792_v36 = vadd.f32 %v8885_v24, %v8881_v38  ;;  %v3459_v23 = vadd.f32 %v6829_v57, %v3394_v16  ;;  %v3685_v16 = vld [vmem:[#allocation2 + $0x8] sm:$0x3] }
 0x379   : > { %9429 = vst [vmem:[#allocation19_spill] sm:$0xff] %v8887_v35  ;;  %v6793_v14 = vpop.f32.mrf.mxu0 }
 0x37a   : > { %v6833_v61 = vpop.f32.mrf.mxu1  ;;  %v3397_v38 = vadd.f32 %v6792_v36, %v6182_v10 }
 0x37b   : > { %v6794_v42 = vpop.f32.mrf.mxu0 }
 0x37c   : > { %v6834_v43 = vpop.f32.mrf.mxu1  ;;  %v6795_v47 = vadd.f32 %v6794_v42, %v6793_v14 }
 0x37d   : > { %v6796_v55 = vpop.f32.mrf.mxu0  ;;  %v6835_v32 = vadd.f32 %v6834_v43, %v6833_v61 }
 0x37e   : > { %v8889_v58 = vpop.f32.mrf.mxu1  ;;  %v3402_v15 = vadd.f32 %v6795_v47, %v6182_v10  ;;  %v9436_v24 = vld [vmem:[#allocation18_spill] sm:$0xff] }
 0x37f   : > { %v6797_v37 = vpop.f32.mrf.mxu0 }
 0x380   : > { %v8891_v28 = vpop.f32.mrf.mxu1  ;;  %v6798_v14 = vadd.f32 %v6797_v37, %v6796_v55 }
 0x381   : > { %v6838_v61 = vadd.f32 %v8891_v28, %v8889_v58 }
 0x382   : > { %v6855_v33 = vpop.f32.mrf.mxu0 }
 0x383   : > { %v6895_v29 = vpop.f32.mrf.mxu1 }
 0x384   : > { %v6856_v12 = vpop.f32.mrf.mxu0 }
 0x385   : > { %v6896_v49 = vpop.f32.mrf.mxu1 }
 0x386   : > { %v6858_v25 = vpop.f32.mrf.mxu0 }
 0x387   : > { %v8893_v27 = vpop.f32.mrf.mxu1 }
 0x388   : > { %v6859_v6 = vpop.f32.mrf.mxu0 }
 0x389   : > { %v8895_v11 = vpop.f32.mrf.mxu1 }
 0x38a   : > { %9430 = vst [vmem:[#allocation21_spill] sm:$0xff] %v8895_v11  ;;  %v6861_v2 = vpop.f32.mrf.mxu0  ;;  %v6857_v11 = vadd.f32 %v6856_v12, %v6855_v33  ;;  %v3446_v12 = vadd.f32 %v6820_v4, %v3381_v44 }
 0x38b   : > { %v6901_v40 = vpop.f32.mrf.mxu1 }
 0x38c   : > { %v6862_v17 = vpop.f32.mrf.mxu0 }
 0x38d   : > { %v6902_v9 = vpop.f32.mrf.mxu1  ;;  %v6863_v20 = vadd.f32 %v6862_v17, %v6861_v2  ;;  %v3508_v17 = vadd.f32 %v6857_v11, %v3443_v63  ;;  %v9437_v11 = vld [vmem:[#allocation19_spill] sm:$0xff] }
 0x38e   : > { %v6864_v18 = vpop.f32.mrf.mxu0  ;;  %v6903_v34 = vadd.f32 %v6902_v9, %v6901_v40  ;;  %v3467_v9 = vadd.f32 %v6835_v32, %v3402_v15 }
 0x38f   : > { %v6904_v31 = vpop.f32.mrf.mxu1 }
 0x390   : > { %v6865_v21 = vpop.f32.mrf.mxu0 }
 0x391   : > { %v6905_v41 = vpop.f32.mrf.mxu1  ;;  %v6866_v52 = vadd.f32 %v6865_v21, %v6864_v18  ;;  %v3405_v18 = vadd.f32 %v6798_v14, %v6182_v10  ;;  %v6832_v21 = vadd.f32 %v9437_v11, %v9436_v24 }
 0x392   : > { %v6867_v62 = vpop.f32.mrf.mxu0  ;;  %v6906_v22 = vadd.f32 %v6905_v41, %v6904_v31 }
 0x393   : > { %v8897_v48 = vpop.f32.mrf.mxu1  ;;  %v3470_v28 = vadd.f32 %v6838_v61, %v3405_v18 }
 0x394   : > { %9431 = vst [vmem:[#allocation22_spill] sm:$0xff] %v8897_v48  ;;  %v6868_v3 = vpop.f32.mrf.mxu0  ;;  %v3451_v48 = vadd.f32 %v6823_v39, %v3386_v1 }
 0x395   : > { %v8899_v8 = vpop.f32.mrf.mxu1  ;;  %v6869_v43 = vadd.f32 %v6868_v3, %v6867_v62 }
 0x396   : > { %9432 = vst [vmem:[#allocation23_spill] sm:$0xff] %v8899_v8  ;;  %v8901_v26 = vpop.f32.mrf.mxu0  ;;  %v3516_v13 = vadd.f32 %v6863_v20, %v3451_v48 }
 0x397   : > { %9433 = vst [vmem:[#allocation24_spill] sm:$0xff] %v8901_v26  ;;  %v8903_v5 = vpop.f32.mrf.mxu1  ;;  %v6826_v26 = vadd.f32 %v6825_v30, %v6824_v59  ;;  %v6897_v59 = vadd.f32 %v6896_v49, %v6895_v29  ;;  %v6860_v30 = vadd.f32 %v6859_v6, %v6858_v25  ;;  %v9435_v29 = vld [vmem:[#allocation21_spill] sm:$0xff]  ;;  %v3524_v62 = vadd.f32 %v6869_v43, %v3459_v23 }
 0x398   : > { %9434 = vst [vmem:[#allocation16_spill] sm:$0xff] %v8903_v5  ;;  %v8905_v53 = vpop.f32.mrf.mxu0  ;;  %v3581_v40 = vadd.f32 %v6903_v34, %v3516_v13  ;;  %v6900_v49 = vadd.f32 %v9435_v29, %v8893_v27 }
 0x399   : > { %v8907_v35 = vpop.f32.mrf.mxu1  ;;  %v3454_v2 = vadd.f32 %v6826_v26, %v3389_v54  ;;  %v3511_v37 = vadd.f32 %v6860_v30, %v3446_v12  ;;  %v3573_v6 = vadd.f32 %v6897_v59, %v3508_v17  ;;  %v3725_v17 = vrot.slane %v3685_v16, 1 }
 0x39a   : > { %v6873_v46 = vpop.f32.mrf.mxu0 }
 0x39b   : > { %v6913_v8 = vpop.f32.mrf.mxu1  ;;  %v3519_v0 = vadd.f32 %v6866_v52, %v3454_v2  ;;  %v9438_v3 = vld [vmem:[#allocation22_spill] sm:$0xff]  ;;  %v3576_v20 = vadd.f32 %v6900_v49, %v3511_v37 }
 0x39c   : > { %v6874_v5 = vpop.f32.mrf.mxu0 }
 0x39d   : > { %v6914_v42 = vpop.f32.mrf.mxu1  ;;  %v6875_v50 = vadd.f32 %v6874_v5, %v6873_v46  ;;  %v3584_v58 = vadd.f32 %v6906_v22, %v3519_v0  ;;  %v9439_v1 = vld [vmem:[#allocation23_spill] sm:$0xff]  ;;  %v3761_v22 = vrot.slane %v3685_v16, 2  ;;  %v7763_v16 = vld [vmem:[#allocation3 + $0x870] sm:$0xff]  }
 0x39e   : > { %v6876_v56 = vpop.f32.mrf.mxu0  ;;  %v6915_v41 = vadd.f32 %v6914_v42, %v6913_v8  ;;  %v6909_v39 = vadd.f32 %v9439_v1, %v9438_v3  ;;  %v9440_v19 = vld [vmem:[#allocation24_spill] sm:$0xff]  ;;  %v3462_v8 = vadd.f32 %v6832_v21, %v3397_v38 }
 0x39f   : > { %v6916_v54 = vpop.f32.mrf.mxu1  ;;  %v3532_v31 = vadd.f32 %v6875_v50, %v3467_v9  ;;  %v6872_v10 = vadd.f32 %v8905_v53, %v9440_v19  ;;  %v9442_v42 = vld [vmem:[#allocation20_spill] sm:$0xff] }
 0x3a0   : > { %v6877_v33 = vpop.f32.mrf.mxu0  ;;  %v3589_v34 = vadd.f32 %v6909_v39, %v3524_v62  ;;  %v3724_v2 = vrot.slane %v9442_v42, 1  ;;  %v3760_v36 = vrot.slane %v9442_v42, 2  ;;  %v7759_v62 = vld [vmem:[#allocation3 + $0x878] sm:$0xff]  }
 0x3a1   : > { %v6878_v60 = vadd.f32 %v6877_v33, %v6876_v56  ;;  %v6917_v45 = vpop.f32.mrf.mxu1  ;;  %v3597_v47 = vadd.f32 %v6915_v41, %v3532_v31  ;;  %v3527_v52 = vadd.f32 %v6872_v10, %v3462_v8  ;;  %v9441_v56 = vld [vmem:[#allocation16_spill] sm:$0xff]  ;;  %v7757_v31 = vld [vmem:[#allocation3 + $0x7f8] sm:$0xff]  }
 0x3a2   : > { %v6918_v44 = vadd.f32 %v6917_v45, %v6916_v54  ;;  %v6912_v15 = vadd.f32 %v8907_v35, %v9441_v56  ;;  %v3726_v43 = vsel %vm1576_vm6, %v3724_v2, %v3725_v17  ;;  %v3762_v21 = vsel %vm1613_vm7, %v3760_v36, %v3761_v22 }
 0x3a3   : > { %v7341_v55 = vpop.f32.mrf.mxu0  ;;  %v3535_v63 = vadd.f32 %v6878_v60, %v3470_v28 }
 0x3a4   : > { %v3646_v25 = vadd.f32 %v7341_v55, %v3581_v40  ;;  %v3592_v0 = vadd.f32 %v6912_v15, %v3527_v52 }
 0x3a5   : > { %v3637_v48 = vpop.f32.mrf.mxu0  ;;  %v3600_v33 = vadd.f32 %v6918_v44, %v3535_v63 }
 0x3a6   : > { %v3670_v26 = vmax.f32 %v3646_v25, 0.0  ;;  %v3638_v5 = vadd.f32 %v3637_v48, %v3573_v6 }
 0x3a7   : > { %v7342_v27 = vpop.f32.mrf.mxu0 }
 0x3a8   : > { %3678 = vst [vmem:[#allocation2 + $0x31] sm:$0xff] %v3670_v26  ;;  %v3668_v51 = vmax.f32 %v3638_v5, 0.0  ;;  %v3649_v7 = vadd.f32 %v7342_v27, %v3584_v58  ;;  %v7760_v27 = vld [vmem:[#allocation3 + $0x830] sm:$0xff]  }
 0x3a9   : > { %v3640_v46 = vpop.f32.mrf.mxu0 }
 0x3aa   : > { %3676 = vst [vmem:[#allocation2 + $0x11] sm:$0xff] %v3668_v51  ;;  %v3671_v4 = vmax.f32 %v3649_v7, 0.0  ;;  %v3641_v57 = vadd.f32 %v3640_v46, %v3576_v20  ;;  %v7762_v7 = vld [vmem:[#allocation3 + $0x8b0] sm:$0xff]  }
 0x3ab   : > { %v7345_v13 = vpop.f32.mrf.mxu0 }
 0x3ac   : > { %3679 = vst [vmem:[#allocation2 + $0x41] sm:$0xff] %v3671_v4  ;;  %v3669_v53 = vmax.f32 %v3641_v57, 0.0  ;;  %v3662_v32 = vadd.f32 %v7345_v13, %v3597_v47  ;;  %v7761_v47 = vld [vmem:[#allocation3 + $0x7f0] sm:$0xff]   ;;  %v7764_v13 = vld [vmem:[#allocation3 + $0x828] sm:$0xff]  }
 0x3ad   : > { %v3653_v14 = vpop.f32.mrf.mxu0 }
 0x3ae   : > { %3677 = vst [vmem:[#allocation2 + $0x21] sm:$0xff] %v3669_v53  ;;  %v3674_v59 = vmax.f32 %v3662_v32, 0.0  ;;  %v3654_v30 = vadd.f32 %v3653_v14, %v3589_v34  ;;  %v7766_v53 = vld [vmem:[#allocation3 + $0x8a8] sm:$0xff]  }
 0x3af   : > { %v7346_v12 = vpop.f32.mrf.mxu0  ;;  %v8927_v35 = vld [vmem:[#allocation2 + $0x30] sm:$0xff]  ;;  %v8929_v40 = vld [vmem:[#allocation2 + $0x38] sm:$0x3] }
 0x3b0   : > { %3682 = vst [vmem:[#allocation2 + $0x71] sm:$0xff] %v3674_v59  ;;  %v3672_v50 = vmax.f32 %v3654_v30, 0.0  ;;  %v3665_v23 = vadd.f32 %v7346_v12, %v3600_v33  ;;  %v3733_v6 = vrot.slane %v8927_v35, 1  ;;  %v3734_v38 = vrot.slane %v8929_v40, 1 }
 0x3b1   : > { %v3656_v9 = vpop.f32.mrf.mxu0  ;;  %v3686_v18 = vld [vmem:[#allocation2 + $0x10] sm:$0xff]  ;;  %v3687_v61 = vld [vmem:[#allocation2 + $0x18] sm:$0x3]  ;;  %v3769_v4 = vrot.slane %v8927_v35, 2  ;;  %v3770_v57 = vrot.slane %v8929_v40, 2 }
 0x3b2   : > { %3680 = vst [vmem:[#allocation2 + $0x51] sm:$0xff] %v3672_v50  ;;  %v3675_v54 = vmax.f32 %v3665_v23, 0.0  ;;  %v3657_v55 = vadd.f32 %v3656_v9, %v3592_v0  ;;  %v3727_v37 = vrot.slane %v3686_v18, 1  ;;  %v3728_v29 = vrot.slane %v3687_v61, 1  ;;  %v7765_v50 = vld [vmem:[#allocation3 + $0x7e8] sm:$0xff]  }
 0x3b3   : > { %v3763_v49 = vrot.slane %v3686_v18, 2  ;;  %v3764_v25 = vrot.slane %v3687_v61, 2  ;;  %v8946_v26 = vld [vmem:[#allocation2 + $0x40] sm:$0xff]  ;;  %v3704_v58 = vpack.c.bf16 %v3686_v18, %v9442_v42  ;;  %v8951_v45 = vsel %vm1576_vm6, %v3733_v6, %v3734_v38  ;;  %v8953_v19 = vld [vmem:[#allocation2 + $0x48] sm:$0x3] }
 0x3b4   : > { %3683 = vst [vmem:[#allocation2 + $0x81] sm:$0xff] %v3675_v54  ;;  %v3673_v24 = vmax.f32 %v3657_v55, 0.0  ;;  %v8937_v11 = vsel %vm1576_vm6, %v3727_v37, %v3728_v29  ;;  %v3797_v10 = vpack.c.bf16 %v8946_v26, %v8927_v35  ;;  %v3736_v34 = vrot.slane %v8946_v26, 1  ;;  %v7767_v23 = vld [vmem:[#allocation3 + $0x868] sm:$0xff]   ;;  %v7769_v29 = vld [vmem:[#allocation3 + $0x7e0] sm:$0xff]  }
 0x3b5   : > { %v3756_v41 = vpack.c.bf16 %v8937_v11, %v3726_v43  ;;  %v8944_v48 = vsel %vm1613_vm7, %v3763_v49, %v3764_v25  ;;  %v3688_v60 = vld [vmem:[#allocation2 + $0x20] sm:$0xff]  ;;  %v3689_v5 = vld [vmem:[#allocation2 + $0x28] sm:$0x3]  ;;  %v3737_v52 = vrot.slane %v8953_v19, 1  ;;  %v8986_v12 = vsel %vm1613_vm7, %v3769_v4, %v3770_v57 }
 0x3b6   : > { %3681 = vst [vmem:[#allocation2 + $0x61] sm:$0xff] %v3673_v24  ;;  %v3796_v28 = vpack.c.bf16 %v3688_v60, %v3686_v18  ;;  %v3730_v3 = vrot.slane %v3688_v60, 1  ;;  %v3731_v1 = vrot.slane %v3689_v5, 1  ;;  %v3792_v39 = vpack.c.bf16 %v8944_v48, %v3762_v21  ;;  %v7770_v43 = vld [vmem:[#allocation3 + $0x8a0] sm:$0xff]   ;;  %v7772_v21 = vld [vmem:[#allocation3 + $0x818] sm:$0xff]   ;;  %v7780_v4 = vld [vmem:[#allocation3 + $0x808] sm:$0xff]  }
 0x3b7   : > { %4448 = vmatprep.mubr.bf16.mxu1 %v3756_v41  ;;  %v3766_v20 = vrot.slane %v3688_v60, 2  ;;  %v3767_v8 = vrot.slane %v3689_v5, 2  ;;  %v8980_v30 = vpack.c.bf16 %v8927_v35, %v3688_v60  ;;  %v8983_v33 = vsel %vm1576_vm6, %v3736_v34, %v3737_v52  ;;  %v7768_v35 = vld [vmem:[#allocation3 + $0x820] sm:$0xff]   ;;  %v3698_v40 = vld [vmem:[#allocation2 + $0x70] sm:$0xff]  ;;  %v3699_v9 = vld [vmem:[#allocation2 + $0x78] sm:$0x3] }
 0x3b8   : > { %4449 = vmatmul.mubr.bf16.vlgmr.msra.gmra.mxu1 %v3704_v58  ;;  %4513 = vmatprep.mubr.bf16.mxu0 %v3796_v28  ;;  %v8958_v51 = vsel %vm1576_vm6, %v3730_v3, %v3731_v1  ;;  %v3745_v49 = vrot.slane %v3698_v40, 1  ;;  %v3746_v25 = vrot.slane %v3699_v9, 1  ;;  %v3772_v6 = vrot.slane %v8946_v26, 2  ;;  %v7771_v24 = vld [vmem:[#allocation3 + $0x860] sm:$0xff]   ;;  %v7774_v60 = vld [vmem:[#allocation3 + $0x898] sm:$0xff]   ;;  %v7781_v52 = vld [vmem:[#allocation3 + $0x7c8] sm:$0xff]  }
 0x3b9   : > { %4514 = vmatmul.mubr.bf16.vlgmr.msra.gmra.mxu0 %v3792_v39  ;;  %7012 = vmatpush3.bf16.msra.mxu1 %v7757_v31  ;;  %v8962_v46 = vpack.c.bf16 %v8951_v45, %v8958_v51  ;;  %v3694_v63 = vld [vmem:[#allocation2 + $0x50] sm:$0xff]  ;;  %v3695_v44 = vld [vmem:[#allocation2 + $0x58] sm:$0x3]  ;;  %v8973_v14 = vsel %vm1613_vm7, %v3766_v20, %v3767_v8  ;;  %v3773_v38 = vrot.slane %v8953_v19, 2 }
 0x3ba   : > { %4521 = vmatprep.mubr.bf16.mxu0 %v3797_v10  ;;  %7052 = vmatpush3.bf16.msra.mxu0 %v7759_v62  ;;  %v3739_v56 = vrot.slane %v3694_v63, 1  ;;  %v3740_v15 = vrot.slane %v3695_v44, 1  ;;  %v8994_v22 = vpack.c.bf16 %v8986_v12, %v8973_v14  ;;  %v3775_v18 = vrot.slane %v3694_v63, 2  ;;  %v7773_v3 = vld [vmem:[#allocation3 + $0x7d8] sm:$0xff]   ;;  %v7776_v19 = vld [vmem:[#allocation3 + $0x810] sm:$0xff]  }
 0x3bb   : > { %4456 = vmatprep.mubr.bf16.mxu1 %v8962_v46  ;;  %7013 = vmatprep.subr.bf16.mxu1 %v7760_v27  ;;  %v3776_v37 = vrot.slane %v3695_v44, 2  ;;  %v9010_v5 = vld [vmem:[#allocation2 + $0x80] sm:$0xff]  ;;  %v9013_v58 = vpack.c.bf16 %v3694_v63, %v8946_v26  ;;  %v9016_v28 = vsel %vm1576_vm6, %v3745_v49, %v3746_v25  ;;  %v3774_v62 = vsel %vm1613_vm7, %v3772_v6, %v3773_v38  ;;  %v7775_v27 = vld [vmem:[#allocation3 + $0x858] sm:$0xff]   ;;  %v7778_v10 = vld [vmem:[#allocation3 + $0x890] sm:$0xff]  }
 0x3bc   : > { %7053 = vmatprep.subr.bf16.mxu0 %v7762_v7  ;;  %v8970_v32 = vsel %vm1576_vm6, %v3739_v56, %v3740_v15  ;;  %v3799_v26 = vpack.c.bf16 %v9010_v5, %v3698_v40  ;;  %v7777_v8 = vld [vmem:[#allocation3 + $0x7d0] sm:$0xff]   ;;  %v3814_v15 = vpack.c.bf16 %v8973_v14, %v8944_v48  ;;  %v3806_v48 = vpack.c.bf16 %v8958_v51, %v8937_v11  ;;  %v3703_v11 = vld [vmem:[#allocation2 + $0x98] sm:$0x3]  ;;  %v7794_v38 = vld [vmem:[#allocation3 + $0x8c8] sm:$0xff]  }
 0x3bd   : > { %7014 = vmatpush3.bf16.msra.mxu1 %v7761_v47  ;;  %v8975_v17 = vld [vmem:[#allocation2 + $0x60] sm:$0xff]  ;;  %v8977_v59 = vld [vmem:[#allocation2 + $0x68] sm:$0x3]  ;;  %v8990_v0 = vpack.c.bf16 %v8970_v32, %v8983_v33  ;;  %v9008_v41 = vsel %vm1613_vm7, %v3775_v18, %v3776_v37  ;;  %v3781_v47 = vrot.slane %v3698_v40, 2  ;;  %v7779_v44 = vld [vmem:[#allocation3 + $0x850] sm:$0xff]   ;;  %v3815_v14 = vpack.c.bf16 %v3774_v62, %v8986_v12 }
 0x3be   : > { %7054 = vmatpush3.bf16.msra.mxu0 %v7763_v16  ;;  %7015 = vmatprep.subr.bf16.mxu1 %v7764_v13  ;;  %v3798_v61 = vpack.c.bf16 %v8975_v17, %v3694_v63  ;;  %v3742_v54 = vrot.slane %v8975_v17, 1  ;;  %v3743_v55 = vrot.slane %v8977_v59, 1  ;;  %v9024_v39 = vpack.c.bf16 %v9008_v41, %v3774_v62  ;;  %v7782_v16 = vld [vmem:[#allocation3 + $0x888] sm:$0xff]   ;;  %v7791_v12 = vld [vmem:[#allocation3 + $0x8e0] sm:$0xff]   ;;  %v7793_v25 = vld [vmem:[#allocation3 + $0x8d0] sm:$0xff]  }
 0x3bf   : > { %7055 = vmatprep.subr.bf16.mxu0 %v7766_v53  ;;  %v3778_v7 = vrot.slane %v8975_v17, 2  ;;  %v3779_v20 = vrot.slane %v8977_v59, 2  ;;  %v3782_v63 = vrot.slane %v3699_v9, 2  ;;  %v9034_v13 = vpack.c.bf16 %v3698_v40, %v8975_v17  ;;  %v7783_v53 = vld [vmem:[#allocation3 + $0x848] sm:$0xff]   ;;  %v7784_v59 = vld [vmem:[#allocation3 + $0x800] sm:$0xff]   ;;  %v7789_v40 = vld [vmem:[#allocation3 + $0x8f0] sm:$0xff]  }
 0x3c0   : > { %4457 = vmatmul.mubr.bf16.gmra.mxu1 %v8980_v30  ;;  %v9005_v31 = vsel %vm1576_vm6, %v3742_v54, %v3743_v55  ;;  %v7785_v17 = vld [vmem:[#allocation3 + $0x7c0] sm:$0xff]   ;;  %v3701_v9 = vld [vmem:[#allocation2 + $0x88] sm:$0x3]  ;;  %v3807_v18 = vpack.c.bf16 %v8983_v33, %v8951_v45  ;;  %v3822_v54 = vrot.slane %v3703_v11, 1  ;;  %v7792_v45 = vld [vmem:[#allocation3 + $0x8d8] sm:$0xff]  }
 0x3c1   : > { %4464 = vmatprep.mubr.bf16.mxu1 %v8990_v0  ;;  %4522 = vmatmul.mubr.bf16.gmra.mxu0 %v8994_v22  ;;  %v9021_v1 = vpack.c.bf16 %v9016_v28, %v9005_v31  ;;  %v3780_v57 = vsel %vm1613_vm7, %v3778_v7, %v3779_v20  ;;  %v9037_v34 = vsel %vm1613_vm7, %v3781_v47, %v3782_v63  ;;  %v7801_v62 = vld [vmem:[#allocation8 + $0x30] sm:$0xff]   ;;  %v7811_v7 = vld [vmem:[#allocation8 + $0xa0] sm:$0xff]   ;;  %v7812_v20 = vld [vmem:[#allocation8 + $0x58] sm:$0xff]  }
 0x3c2   : > { %7016 = vmatpush3.bf16.msra.mxu1 %v7765_v50  ;;  %4529 = vmatprep.mubr.bf16.mxu0 %v3798_v61  ;;  %v9040_v56 = vpack.c.bf16 %v9037_v34, %v3780_v57  ;;  %v7786_v50 = vld [vmem:[#allocation3 + $0x880] sm:$0xff]   ;;  %v3816_v51 = vpack.c.bf16 %v3780_v57, %v9008_v41  ;;  %v3810_v61 = vrot.slane %v9010_v5, 2  ;;  %v3823_v37 = vsel %vm1576_vm6, %v3724_v2, %v3822_v54  ;;  %v7818_v57 = vld [vmem:[#allocation8 + $0xd0] sm:$0xff]  }
 0x3c3   : > { %7056 = vmatpush3.bf16.msra.mxu0 %v7767_v23  ;;  %7017 = vmatprep.subr.bf16.mxu1 %v7768_v35  ;;  %v7787_v23 = vld [vmem:[#allocation3 + $0x840] sm:$0xff]   ;;  %v7788_v35 = vld [vmem:[#allocation3 + $0x8f8] sm:$0xff]   ;;  %v3818_v2 = vpack.c.bf16 %v9442_v42, %v9010_v5  ;;  %v7805_v42 = vld [vmem:[#allocation8 + $0x28] sm:$0xff]  }
 0x3c4   : > { %7057 = vmatprep.subr.bf16.mxu0 %v7770_v43  ;;  %v3811_v43 = vrot.slane %v3701_v9, 2  ;;  %v7814_v47 = vld [vmem:[#allocation8 + $0xd8] sm:$0xff]  }
 0x3c5   : > { %v7815_v63 = vld [vmem:[#allocation8 + $0x98] sm:$0xff]  }
 0x3c6   : > { %7018 = vmatpush3.bf16.msra.mxu1 %v7769_v29  ;;  %v3812_v33 = vsel %vm1613_vm7, %v3810_v61, %v3811_v43  ;;  %v3808_v29 = vpack.c.bf16 %v9005_v31, %v8970_v32  ;;  %v7795_v32 = vld [vmem:[#allocation3 + $0x8c0] sm:$0xff]  }
 0x3c7   : > { %7058 = vmatpush3.bf16.msra.mxu0 %v7771_v24  ;;  %7019 = vmatprep.subr.bf16.mxu1 %v7772_v21  ;;  %v3817_v49 = vpack.c.bf16 %v3812_v33, %v9037_v34  ;;  %v3827_v21 = vrot.slane %v3703_v11, 2  ;;  %v7821_v34 = vld [vmem:[#allocation8 + $0x8] sm:$0xff]  }
 0x3c8   : > { %4465 = vmatmul.mubr.bf16.gmra.mxu1 %v9013_v58  ;;  %7059 = vmatprep.subr.bf16.mxu0 %v7774_v60  ;;  %v7796_v60 = vld [vmem:[#allocation8 + $0x78] sm:$0xff]  }
 0x3c9   : > { %4472 = vmatprep.mubr.bf16.mxu1 %v9021_v1  ;;  %4530 = vmatmul.mubr.bf16.gmra.mxu0 %v9024_v39  ;;  %v3828_v31 = vsel %vm1613_vm7, %v3760_v36, %v3827_v21  ;;  %v7806_v36 = vld [vmem:[#allocation8 + $0xe8] sm:$0xff]  }
 0x3ca   : > { %7020 = vmatpush3.bf16.msra.mxu1 %v7773_v3  ;;  %4537 = vmatprep.mubr.bf16.mxu0 %v3799_v26  ;;  %v3830_v41 = vpack.c.bf16 %v3828_v31, %v3812_v33  ;;  %v7802_v3 = vld [vmem:[#allocation8 + $0xf0] sm:$0xff]   ;;  %v7809_v26 = vld [vmem:[#allocation8 + $0x20] sm:$0xff]  }
 0x3cb   : > { %7060 = vmatpush3.bf16.msra.mxu0 %v7775_v27  ;;  %7021 = vmatprep.subr.bf16.mxu1 %v7776_v19  ;;  %v7807_v27 = vld [vmem:[#allocation8 + $0xa8] sm:$0xff]   ;;  %v7808_v19 = vld [vmem:[#allocation8 + $0x60] sm:$0xff]  }
 0x3cc   : > { %7061 = vmatprep.subr.bf16.mxu0 %v7778_v10  ;;  %v7810_v10 = vld [vmem:[#allocation8 + $0xe0] sm:$0xff]  }
 0x3ce   : > { %7022 = vmatpush3.bf16.msra.mxu1 %v7777_v8  ;;  %v7813_v8 = vld [vmem:[#allocation8 + $0x18] sm:$0xff]  }
 0x3cf   : > { %7062 = vmatpush3.bf16.msra.mxu0 %v7779_v44  ;;  %7023 = vmatprep.subr.bf16.mxu1 %v7780_v4  ;;  %v7816_v44 = vld [vmem:[#allocation8 + $0x50] sm:$0xff]  }
 0x3d0   : > { %4473 = vmatmul.mubr.bf16.gmra.mxu1 %v9034_v13  ;;  %7063 = vmatprep.subr.bf16.mxu0 %v7782_v16  ;;  %v7817_v4 = vld [vmem:[#allocation8 + $0x10] sm:$0xff]  }
 0x3d1   : > { %4538 = vmatmul.mubr.bf16.gmra.mxu0 %v9040_v56  ;;  %4578 = vmatprep.mubr.bf16.mxu1 %v3814_v15  ;;  %v7819_v16 = vld [vmem:[#allocation8 + $0x90] sm:$0xff]   ;;  %v7824_v15 = vld [vmem:[#allocation8 + $0x40] sm:$0xff]  }
 0x3d2   : > { %7024 = vmatpush3.bf16.msra.mxu1 %v7781_v52  ;;  %4643 = vmatprep.mubr.bf16.mxu0 %v8962_v46  ;;  %v7790_v46 = vld [vmem:[#allocation3 + $0x8e8] sm:$0xff]  }
 0x3d3   : > { %7064 = vmatpush3.bf16.msra.mxu0 %v7783_v53  ;;  %7025 = vmatprep.subr.bf16.mxu1 %v7784_v59  ;;  %v7822_v52 = vld [vmem:[#allocation8 + $0xc8] sm:$0xff]   ;;  %v7826_v53 = vld [vmem:[#allocation8 + $0xc0] sm:$0xff]  }
 0x3d4   : > { %7065 = vmatprep.subr.bf16.mxu0 %v7786_v50  ;;  %v7825_v59 = vld [vmem:[#allocation8] sm:$0xff]  }
 0x3d5   : > { %v7827_v50 = vld [vmem:[#allocation8 + $0x80] sm:$0xff]  }
 0x3d6   : > { %7026 = vmatpush3.bf16.msra.mxu1 %v7785_v17  ;;  %v7828_v17 = vld [vmem:[#allocation8 + $0x178] sm:$0xff]  }
 0x3d7   : > { %7066 = vmatpush3.bf16.msra.mxu0 %v7787_v23  ;;  %7347 = vmatprep.subr.bf16.mxu1 %v7788_v35  ;;  %v7830_v23 = vld [vmem:[#allocation8 + $0x1f8] sm:$0xff]  }
 0x3d8   : > { %7103 = vmatprep.subr.bf16.mxu0 %v7796_v60 }
 0x3d9   : > { %4579 = vmatmul.mubr.bf16.vlgmr.msra.gmra.mxu1 %v3806_v48 }
 0x3da   : > { %4586 = vmatprep.mubr.bf16.mxu1 %v3815_v14  ;;  %4644 = vmatmul.mubr.bf16.vlgmr.msra.gmra.mxu0 %v8980_v30  ;;  %v3802_v30 = vrot.slane %v9010_v5, 1  ;;  %v7797_v5 = vld [vmem:[#allocation8 + $0x38] sm:$0xff]  }
 0x3db   : > { %7348 = vmatpush3.bf16.msra.mxu1 %v7788_v35  ;;  %4651 = vmatprep.mubr.bf16.mxu0 %v8990_v0  ;;  %v3803_v0 = vrot.slane %v3701_v9, 1 }
 0x3dc   : > { %7349 = vmatprep.subr.bf16.mxu1 %v7789_v40  ;;  %7104 = vmatpush3.bf16.msra.mxu0 %v7797_v5 }
 0x3dd   : > { %v3804_v55 = vsel %vm1576_vm6, %v3802_v30, %v3803_v0 }
 0x3de   : > { %v3825_v6 = vpack.c.bf16 %v3823_v37, %v3804_v55  ;;  %v3809_v24 = vpack.c.bf16 %v3804_v55, %v9016_v28  ;;  %v7799_v28 = vld [vmem:[#allocation8 + $0xb8] sm:$0xff]  }
 0x3df   : > { %7350 = vmatpush3.bf16.msra.mxu1 %v7789_v40 }
 0x3e0   : > { %7351 = vmatprep.subr.bf16.mxu1 %v7790_v46 }
 0x3e1   : > { %4587 = vmatmul.mubr.bf16.gmra.mxu1 %v3807_v18 }
 0x3e2   : > { %4594 = vmatprep.mubr.bf16.mxu1 %v3816_v51  ;;  %4652 = vmatmul.mubr.bf16.gmra.mxu0 %v9013_v58  ;;  %v7798_v58 = vld [vmem:[#allocation8 + $0xf8] sm:$0xff]  }
 0x3e3   : > { %7352 = vmatpush3.bf16.msra.mxu1 %v7790_v46  ;;  %4659 = vmatprep.mubr.bf16.mxu0 %v9021_v1  ;;  %v7803_v1 = vld [vmem:[#allocation8 + $0xb0] sm:$0xff]  }
 0x3e4   : > { %7353 = vmatprep.subr.bf16.mxu1 %v7791_v12 }
 0x3e7   : > { %7354 = vmatpush3.bf16.msra.mxu1 %v7791_v12 }
 0x3e8   : > { %7355 = vmatprep.subr.bf16.mxu1 %v7792_v45 }
 0x3e9   : > { %4595 = vmatmul.mubr.bf16.gmra.mxu1 %v3808_v29 }
 0x3ea   : > { %4602 = vmatprep.mubr.bf16.mxu1 %v3817_v49  ;;  %4660 = vmatmul.mubr.bf16.gmra.mxu0 %v9034_v13  ;;  %v7820_v13 = vld [vmem:[#allocation8 + $0x48] sm:$0xff]  }
 0x3eb   : > { %7356 = vmatpush3.bf16.msra.mxu1 %v7792_v45  ;;  %4667 = vmatprep.mubr.bf16.mxu0 %v3825_v6 }
 0x3ec   : > { %7357 = vmatprep.subr.bf16.mxu1 %v7793_v25 }
 0x3ef   : > { %7358 = vmatpush3.bf16.msra.mxu1 %v7793_v25 }
 0x3f0   : > { %7359 = vmatprep.subr.bf16.mxu1 %v7794_v38 }
 0x3f1   : > { %4603 = vmatmul.mubr.bf16.gmra.mxu1 %v3809_v24 }
 0x3f2   : > { %4668 = vmatmul.mubr.bf16.gmra.mxu0 %v3818_v2  ;;  %7363 = vmatprep.mubr.bf16.mxu1 %v8994_v22  ;;  %v7800_v22 = vld [vmem:[#allocation8 + $0x70] sm:$0xff]  }
 0x3f3   : > { %7360 = vmatpush3.bf16.msra.mxu1 %v7794_v38  ;;  %7105 = vmatprep.subr.bf16.mxu0 %v7800_v22 }
 0x3f4   : > { %7361 = vmatprep.subr.bf16.mxu1 %v7795_v32  ;;  %7106 = vmatpush3.bf16.msra.mxu0 %v7801_v62 }
 0x3f7   : > { %7362 = vmatpush3.bf16.msra.mxu1 %v7795_v32 }
 0x3f8   : > { %7143 = vmatprep.subr.bf16.mxu1 %v7798_v58 }
 0x3fa   : > { %7364 = vmatmul.mubr.bf16.vlgmr.msra.gmra.mxu1 %v9024_v39  ;;  %v7804_v39 = vld [vmem:[#allocation8 + $0x68] sm:$0xff]  }
 0x3fb   : > { %7367 = vmatprep.mubr.bf16.mxu1 %v9040_v56  ;;  %7144 = vmatpush3.bf16.msra.mxu1 %v7799_v28  ;;  %v7823_v56 = vld [vmem:[#allocation8 + $0x88] sm:$0xff]  }
 0x3fc   : > { %7145 = vmatprep.subr.bf16.mxu1 %v7802_v3  ;;  %7107 = vmatprep.subr.bf16.mxu0 %v7804_v39 }
 0x3fd   : > { %7108 = vmatpush3.bf16.msra.mxu0 %v7805_v42 }
 0x3fe   : > { %7109 = vmatprep.subr.bf16.mxu0 %v7808_v19 }
 0x3ff   : > { %7146 = vmatpush3.bf16.msra.mxu1 %v7803_v1 }
 0x400   : > { %7147 = vmatprep.subr.bf16.mxu1 %v7806_v36 }
 0x401   : > { %7110 = vmatpush3.bf16.msra.mxu0 %v7809_v26 }
 0x402   : > { %7368 = vmatmul.mubr.bf16.gmra.mxu1 %v3830_v41  ;;  %7111 = vmatprep.subr.bf16.mxu0 %v7812_v20 }
 0x403   : > { %7148 = vmatpush3.bf16.msra.mxu1 %v7807_v27 }
 0x404   : > { %7149 = vmatprep.subr.bf16.mxu1 %v7810_v10 }
 0x405   : > { %7112 = vmatpush3.bf16.msra.mxu0 %v7813_v8 }
 0x406   : > { %7113 = vmatprep.subr.bf16.mxu0 %v7816_v44 }
 0x407   : > { %7150 = vmatpush3.bf16.msra.mxu1 %v7811_v7 }
 0x408   : > { %7151 = vmatprep.subr.bf16.mxu1 %v7814_v47 }
 0x409   : > { %7114 = vmatpush3.bf16.msra.mxu0 %v7817_v4 }
 0x40a   : > { %7115 = vmatprep.subr.bf16.mxu0 %v7820_v13  ;;  %v6255_v13 = vld [vmem:[#allocation6 + $0x3] ss:$0 sm:$0xff] }
 0x40b   : > { %7152 = vmatpush3.bf16.msra.mxu1 %v7815_v63 }
 0x40c   : > { %7153 = vmatprep.subr.bf16.mxu1 %v7818_v57 }
 0x40d   : > { %7116 = vmatpush3.bf16.msra.mxu0 %v7821_v34 }
 0x40e   : > { %7117 = vmatprep.subr.bf16.mxu0 %v7824_v15 }
 0x40f   : > { %7154 = vmatpush3.bf16.msra.mxu1 %v7819_v16 }
 0x410   : > { %7155 = vmatprep.subr.bf16.mxu1 %v7822_v52 }
 0x411   : > { %7118 = vmatpush3.bf16.msra.mxu0 %v7825_v59 }
 0x412   : > { %7183 = vmatprep.subr.bf16.mxu0 %v7828_v17 }
 0x413   : > { %7156 = vmatpush3.bf16.msra.mxu1 %v7823_v56 }
 0x414   : > { %7157 = vmatprep.subr.bf16.mxu1 %v7826_v53 }
 0x417   : > { %7158 = vmatpush3.bf16.msra.mxu1 %v7827_v50 }
 0x418   : > { %7223 = vmatprep.subr.bf16.mxu1 %v7830_v23 }
 0x478   : > { %v6947_v35 = vpop.f32.mrf.mxu1 }
 0x479   : > { %v6987_v48 = vpop.f32.mrf.mxu0 }
 0x47a   : > { %v6948_v14 = vpop.f32.mrf.mxu1 }
 0x47b   : > { %v6988_v40 = vpop.f32.mrf.mxu0  ;;  %v6949_v57 = vadd.f32 %v6948_v14, %v6947_v35 }
 0x47c   : > { %v6950_v46 = vpop.f32.mrf.mxu1  ;;  %v6989_v17 = vadd.f32 %v6988_v40, %v6987_v48 }
 0x47d   : > { %v9077_v9 = vpop.f32.mrf.mxu0  ;;  %v4451_v50 = vadd.f32 %v6949_v57, %v6255_v13 }
 0x47e   : > { %v6951_v18 = vpop.f32.mrf.mxu1 }
 0x47f   : > { %v9079_v11 = vpop.f32.mrf.mxu0  ;;  %v6952_v23 = vadd.f32 %v6951_v18, %v6950_v46 }
 0x480   : > { %v6953_v51 = vpop.f32.mrf.mxu1 }
 0x481   : > { %v6993_v12 = vpop.f32.mrf.mxu0 }
 0x482   : > { %v6954_v61 = vpop.f32.mrf.mxu1 }
 0x483   : > { %v6994_v43 = vpop.f32.mrf.mxu0  ;;  %v6955_v44 = vadd.f32 %v6954_v61, %v6953_v51 }
 0x484   : > { %v6956_v30 = vpop.f32.mrf.mxu1  ;;  %v6995_v15 = vadd.f32 %v6994_v43, %v6993_v12  ;;  %v4454_v12 = vadd.f32 %v6952_v23, %v6255_v13  ;;  %v6992_v43 = vadd.f32 %v9079_v11, %v9077_v9 }
 0x485   : > { %v6996_v0 = vpop.f32.mrf.mxu0  ;;  %v4459_v56 = vadd.f32 %v6955_v44, %v6255_v13  ;;  %v4516_v44 = vadd.f32 %v6989_v17, %v4451_v50 }
 0x486   : > { %v6957_v54 = vpop.f32.mrf.mxu1 }
 0x487   : > { %v6997_v45 = vpop.f32.mrf.mxu0  ;;  %v6958_v53 = vadd.f32 %v6957_v54, %v6956_v30 }
 0x488   : > { %v6959_v33 = vpop.f32.mrf.mxu1 }
 0x489   : > { %v6999_v55 = vpop.f32.mrf.mxu0 }
 0x48a   : > { %v6960_v37 = vpop.f32.mrf.mxu1 }
 0x48b   : > { %v7000_v29 = vpop.f32.mrf.mxu0  ;;  %v6961_v51 = vadd.f32 %v6960_v37, %v6959_v33 }
 0x48c   : > { %v9081_v49 = vpop.f32.mrf.mxu1  ;;  %v7001_v30 = vadd.f32 %v7000_v29, %v6999_v55 }
 0x48d   : > { %v9083_v25 = vpop.f32.mrf.mxu0  ;;  %v4467_v48 = vadd.f32 %v6961_v51, %v6255_v13 }
 0x48e   : > { %9443 = vst [vmem:[#allocation17_spill] sm:$0xff] %v9083_v25  ;;  %v9085_v6 = vpop.f32.mrf.mxu1  ;;  %v4462_v25 = vadd.f32 %v6958_v53, %v6255_v13 }
 0x48f   : > { %v9087_v38 = vpop.f32.mrf.mxu0  ;;  %v6964_v57 = vadd.f32 %v9085_v6, %v9081_v49  ;;  %v4532_v11 = vadd.f32 %v7001_v30, %v4467_v48 }
 0x490   : > { %9444 = vst [vmem:[#allocation21_spill] sm:$0xff] %v9087_v38  ;;  %v6965_v24 = vpop.f32.mrf.mxu1 }
 0x491   : > { %v7005_v2 = vpop.f32.mrf.mxu0  ;;  %v4470_v49 = vadd.f32 %v6964_v57, %v6255_v13 }
 0x492   : > { %v6966_v32 = vpop.f32.mrf.mxu1 }
 0x493   : > { %v7006_v21 = vpop.f32.mrf.mxu0  ;;  %v6967_v14 = vadd.f32 %v6966_v32, %v6965_v24 }
 0x494   : > { %v6968_v31 = vpop.f32.mrf.mxu1  ;;  %v7007_v37 = vadd.f32 %v7006_v21, %v7005_v2 }
 0x495   : > { %v9089_v41 = vpop.f32.mrf.mxu0  ;;  %v4475_v33 = vadd.f32 %v6967_v14, %v6255_v13  ;;  %v9451_v6 = vld [vmem:[#allocation17_spill] sm:$0xff] }
 0x496   : > { %v6969_v60 = vpop.f32.mrf.mxu1 }
 0x497   : > { %v9091_v5 = vpop.f32.mrf.mxu0  ;;  %v6970_v24 = vadd.f32 %v6969_v60, %v6968_v31 }
 0x498   : > { %v7010_v2 = vadd.f32 %v9091_v5, %v9089_v41 }
 0x499   : > { %v7027_v58 = vpop.f32.mrf.mxu1 }
 0x49a   : > { %v7067_v28 = vpop.f32.mrf.mxu0 }
 0x49b   : > { %v7028_v22 = vpop.f32.mrf.mxu1 }
 0x49c   : > { %v7068_v62 = vpop.f32.mrf.mxu0 }
 0x49d   : > { %v7030_v3 = vpop.f32.mrf.mxu1 }
 0x49e   : > { %v9093_v1 = vpop.f32.mrf.mxu0 }
 0x49f   : > { %v7031_v39 = vpop.f32.mrf.mxu1 }
 0x4a0   : > { %v9095_v42 = vpop.f32.mrf.mxu0 }
 0x4a1   : > { %9445 = vst [vmem:[#allocation18_spill] sm:$0xff] %v9095_v42  ;;  %v7033_v36 = vpop.f32.mrf.mxu1  ;;  %v7029_v42 = vadd.f32 %v7028_v22, %v7027_v58  ;;  %v4519_v22 = vadd.f32 %v6992_v43, %v4454_v12 }
 0x4a2   : > { %v7073_v27 = vpop.f32.mrf.mxu0 }
 0x4a3   : > { %v7034_v19 = vpop.f32.mrf.mxu1 }
 0x4a4   : > { %v7074_v26 = vpop.f32.mrf.mxu0  ;;  %v7035_v61 = vadd.f32 %v7034_v19, %v7033_v36  ;;  %v4581_v19 = vadd.f32 %v7029_v42, %v4516_v44  ;;  %v9452_v42 = vld [vmem:[#allocation21_spill] sm:$0xff] }
 0x4a5   : > { %v7036_v10 = vpop.f32.mrf.mxu1  ;;  %v7075_v46 = vadd.f32 %v7074_v26, %v7073_v27  ;;  %v4540_v26 = vadd.f32 %v7007_v37, %v4475_v33  ;;  %v4758_v37 = vld [vmem:[#allocation2 + $0x8] sm:$0x3] }
 0x4a6   : > { %v7076_v7 = vpop.f32.mrf.mxu0 }
 0x4a7   : > { %v7037_v20 = vpop.f32.mrf.mxu1 }
 0x4a8   : > { %v7077_v8 = vpop.f32.mrf.mxu0  ;;  %v7038_v18 = vadd.f32 %v7037_v20, %v7036_v10  ;;  %v4478_v10 = vadd.f32 %v6970_v24, %v6255_v13  ;;  %v7004_v20 = vadd.f32 %v9452_v42, %v9451_v6 }
 0x4a9   : > { %v7039_v47 = vpop.f32.mrf.mxu1  ;;  %v7078_v29 = vadd.f32 %v7077_v8, %v7076_v7 }
 0x4aa   : > { %v9097_v63 = vpop.f32.mrf.mxu0  ;;  %v4543_v5 = vadd.f32 %v7010_v2, %v4478_v10 }
 0x4ab   : > { %9446 = vst [vmem:[#allocation19_spill] sm:$0xff] %v9097_v63  ;;  %v7040_v4 = vpop.f32.mrf.mxu1  ;;  %v4524_v63 = vadd.f32 %v6995_v15, %v4459_v56 }
 0x4ac   : > { %v9099_v16 = vpop.f32.mrf.mxu0  ;;  %v7041_v21 = vadd.f32 %v7040_v4, %v7039_v47 }
 0x4ad   : > { %9447 = vst [vmem:[#allocation22_spill] sm:$0xff] %v9099_v16  ;;  %v9101_v34 = vpop.f32.mrf.mxu1  ;;  %v4589_v40 = vadd.f32 %v7035_v61, %v4524_v63 }
 0x4ae   : > { %9448 = vst [vmem:[#allocation23_spill] sm:$0xff] %v9101_v34  ;;  %v9103_v52 = vpop.f32.mrf.mxu0  ;;  %v6998_v34 = vadd.f32 %v6997_v45, %v6996_v0  ;;  %v7069_v0 = vadd.f32 %v7068_v62, %v7067_v28  ;;  %v7032_v45 = vadd.f32 %v7031_v39, %v7030_v3  ;;  %v9450_v28 = vld [vmem:[#allocation18_spill] sm:$0xff]  ;;  %v4597_v47 = vadd.f32 %v7041_v21, %v4532_v11 }
 0x4af   : > { %9449 = vst [vmem:[#allocation24_spill] sm:$0xff] %v9103_v52  ;;  %v9105_v59 = vpop.f32.mrf.mxu1  ;;  %v4654_v27 = vadd.f32 %v7075_v46, %v4589_v40  ;;  %v7072_v62 = vadd.f32 %v9450_v28, %v9093_v1 }
 0x4b0   : > { %v9107_v38 = vpop.f32.mrf.mxu0  ;;  %v4527_v36 = vadd.f32 %v6998_v34, %v4462_v25  ;;  %v4584_v60 = vadd.f32 %v7032_v45, %v4519_v22  ;;  %v4646_v39 = vadd.f32 %v7069_v0, %v4581_v19  ;;  %v9125_v45 = vld [vmem:[#allocation2] sm:$0xff]  ;;  %v4798_v22 = vrot.slane %v4758_v37, 1 }
 0x4b1   : > { %v7045_v35 = vpop.f32.mrf.mxu1  ;;  %v4833_v57 = vrot.slane %v9125_v45, 2 }
 0x4b2   : > { %v7085_v16 = vpop.f32.mrf.mxu0  ;;  %v4592_v55 = vadd.f32 %v7038_v18, %v4527_v36  ;;  %v9453_v4 = vld [vmem:[#allocation19_spill] sm:$0xff]  ;;  %v4649_v61 = vadd.f32 %v7072_v62, %v4584_v60 }
 0x4b3   : > { %v7046_v52 = vpop.f32.mrf.mxu1 }
 0x4b4   : > { %v7086_v32 = vpop.f32.mrf.mxu0  ;;  %v7047_v9 = vadd.f32 %v7046_v52, %v7045_v35  ;;  %v4657_v41 = vadd.f32 %v7078_v29, %v4592_v55  ;;  %v9454_v15 = vld [vmem:[#allocation22_spill] sm:$0xff]  ;;  %v4834_v55 = vrot.slane %v4758_v37, 2  ;;  %v7838_v37 = vld [vmem:[#allocation8 + $0x1e8] sm:$0xff]  }
 0x4b5   : > { %v7048_v54 = vpop.f32.mrf.mxu1  ;;  %v7087_v8 = vadd.f32 %v7086_v32, %v7085_v16  ;;  %v7081_v53 = vadd.f32 %v9454_v15, %v9453_v4  ;;  %v9455_v17 = vld [vmem:[#allocation23_spill] sm:$0xff]  ;;  %v4535_v16 = vadd.f32 %v7004_v20, %v4470_v49 }
 0x4b6   : > { %v7088_v25 = vpop.f32.mrf.mxu0  ;;  %v4605_v7 = vadd.f32 %v7047_v9, %v4540_v26  ;;  %v7044_v13 = vadd.f32 %v9105_v59, %v9455_v17  ;;  %v9456_v18 = vld [vmem:[#allocation24_spill] sm:$0xff]  ;;  %v4835_v49 = vsel %vm1613_vm7, %v4833_v57, %v4834_v55  ;;  %v7831_v4 = vld [vmem:[#allocation8 + $0x1b8] sm:$0xff]  }
 0x4b7   : > { %v7049_v58 = vpop.f32.mrf.mxu1  ;;  %v4662_v40 = vadd.f32 %v7081_v53, %v4597_v47  ;;  %v7840_v55 = vld [vmem:[#allocation8 + $0x160] sm:$0xff]  }
 0x4b8   : > { %v7050_v34 = vadd.f32 %v7049_v58, %v7048_v54  ;;  %v7089_v50 = vpop.f32.mrf.mxu0  ;;  %v4670_v14 = vadd.f32 %v7087_v8, %v4605_v7  ;;  %v4600_v46 = vadd.f32 %v7044_v13, %v4535_v16  ;;  %v7084_v54 = vadd.f32 %v9107_v38, %v9456_v18  ;;  %v7836_v18 = vld [vmem:[#allocation8 + $0x168] sm:$0xff]  }
 0x4b9   : > { %v7090_v12 = vadd.f32 %v7089_v50, %v7088_v25  ;;  %v4797_v58 = vrot.slane %v9125_v45, 1  ;;  %v7832_v50 = vld [vmem:[#allocation8 + $0x170] sm:$0xff]  }
 0x4ba   : > { %v7365_v31 = vpop.f32.mrf.mxu1  ;;  %v4608_v44 = vadd.f32 %v7050_v34, %v4543_v5  ;;  %v4665_v11 = vadd.f32 %v7084_v54, %v4600_v46  ;;  %v7835_v46 = vld [vmem:[#allocation8 + $0x1b0] sm:$0xff]  }
 0x4bb   : > { %v4719_v3 = vadd.f32 %v7365_v31, %v4654_v27  ;;  %v4799_v60 = vsel %vm1576_vm6, %v4797_v58, %v4798_v22 }
 0x4bc   : > { %v4710_v63 = vpop.f32.mrf.mxu1  ;;  %v4673_v19 = vadd.f32 %v7090_v12, %v4608_v44 }
 0x4bd   : > { %v4743_v52 = vmax.f32 %v4719_v3, 0.0  ;;  %v4711_v56 = vadd.f32 %v4710_v63, %v4646_v39 }
 0x4be   : > { %v7366_v1 = vpop.f32.mrf.mxu1 }
 0x4bf   : > { %4751 = vst [vmem:[#allocation2 + $0x31] sm:$0xff] %v4743_v52  ;;  %v4741_v23 = vmax.f32 %v4711_v56, 0.0  ;;  %v4722_v51 = vadd.f32 %v7366_v1, %v4657_v41  ;;  %v7829_v41 = vld [vmem:[#allocation8 + $0x138] sm:$0xff]  }
 0x4c0   : > { %v4713_v35 = vpop.f32.mrf.mxu1 }
 0x4c1   : > { %4749 = vst [vmem:[#allocation2 + $0x11] sm:$0xff] %v4741_v23  ;;  %v4744_v43 = vmax.f32 %v4722_v51, 0.0  ;;  %v4714_v30 = vadd.f32 %v4713_v35, %v4649_v61  ;;  %v7834_v23 = vld [vmem:[#allocation8 + $0x1f0] sm:$0xff]  }
 0x4c2   : > { %v7369_v48 = vpop.f32.mrf.mxu1 }
 0x4c3   : > { %4752 = vst [vmem:[#allocation2 + $0x41] sm:$0xff] %v4744_v43  ;;  %v4742_v59 = vmax.f32 %v4714_v30, 0.0  ;;  %v4735_v33 = vadd.f32 %v7369_v48, %v4670_v14  ;;  %v7833_v30 = vld [vmem:[#allocation8 + $0x130] sm:$0xff]  }
 0x4c4   : > { %v4726_v24 = vpop.f32.mrf.mxu1 }
 0x4c5   : > { %4750 = vst [vmem:[#allocation2 + $0x21] sm:$0xff] %v4742_v59  ;;  %v4747_v32 = vmax.f32 %v4735_v33, 0.0  ;;  %v4727_v36 = vadd.f32 %v4726_v24, %v4662_v40 }
 0x4c6   : > { %v7370_v0 = vpop.f32.mrf.mxu1  ;;  %v9129_v25 = vld [vmem:[#allocation2 + $0x30] sm:$0xff]  ;;  %v4764_v31 = vld [vmem:[#allocation2 + $0x38] sm:$0x3] }
 0x4c7   : > { %4755 = vst [vmem:[#allocation2 + $0x71] sm:$0xff] %v4747_v32  ;;  %v4745_v9 = vmax.f32 %v4727_v36, 0.0  ;;  %v4738_v38 = vadd.f32 %v7370_v0, %v4673_v19  ;;  %v4806_v63 = vrot.slane %v9129_v25, 1  ;;  %v4807_v34 = vrot.slane %v4764_v31, 1  ;;  %v7837_v36 = vld [vmem:[#allocation8 + $0x128] sm:$0xff]  }
 0x4c8   : > { %v4729_v29 = vpop.f32.mrf.mxu1  ;;  %v4759_v27 = vld [vmem:[#allocation2 + $0x10] sm:$0xff]  ;;  %v4760_v26 = vld [vmem:[#allocation2 + $0x18] sm:$0x3]  ;;  %v4842_v61 = vrot.slane %v9129_v25, 2  ;;  %v4843_v43 = vrot.slane %v4764_v31, 2 }
 0x4c9   : > { %4753 = vst [vmem:[#allocation2 + $0x51] sm:$0xff] %v4745_v9  ;;  %v4748_v10 = vmax.f32 %v4738_v38, 0.0  ;;  %v4730_v2 = vadd.f32 %v4729_v29, %v4665_v11  ;;  %v4800_v21 = vrot.slane %v4759_v27, 1  ;;  %v4801_v28 = vrot.slane %v4760_v26, 1  ;;  %v7839_v11 = vld [vmem:[#allocation8 + $0x1a8] sm:$0xff]  }
 0x4ca   : > { %v4836_v62 = vrot.slane %v4759_v27, 2  ;;  %v4837_v3 = vrot.slane %v4760_v26, 2  ;;  %v9143_v7 = vld [vmem:[#allocation2 + $0x40] sm:$0xff]  ;;  %v4777_v5 = vpack.c.bf16 %v4759_v27, %v9125_v45  ;;  %v9151_v51 = vld [vmem:[#allocation2 + $0x48] sm:$0x3]  ;;  %v9158_v35 = vsel %vm1576_vm6, %v4806_v63, %v4807_v34 }
 0x4cb   : > { %4756 = vst [vmem:[#allocation2 + $0x81] sm:$0xff] %v4748_v10  ;;  %v4746_v39 = vmax.f32 %v4730_v2, 0.0  ;;  %v9138_v6 = vsel %vm1576_vm6, %v4800_v21, %v4801_v28  ;;  %v4870_v17 = vpack.c.bf16 %v9143_v7, %v9129_v25  ;;  %v4809_v54 = vrot.slane %v9143_v7, 1  ;;  %v7842_v26 = vld [vmem:[#allocation8 + $0x1e0] sm:$0xff]   ;;  %v7846_v34 = vld [vmem:[#allocation8 + $0x1d8] sm:$0xff]  }
 0x4cc   : > { %v9141_v42 = vsel %vm1613_vm7, %v4836_v62, %v4837_v3  ;;  %v4761_v20 = vld [vmem:[#allocation2 + $0x20] sm:$0xff]  ;;  %v4762_v8 = vld [vmem:[#allocation2 + $0x28] sm:$0x3]  ;;  %v4829_v52 = vpack.c.bf16 %v9138_v6, %v4799_v60  ;;  %v4810_v59 = vrot.slane %v9151_v51, 1  ;;  %v9177_v32 = vsel %vm1613_vm7, %v4842_v61, %v4843_v43  ;;  %v7849_v61 = vld [vmem:[#allocation8 + $0x110] sm:$0xff]  }
 0x4cd   : > { %4754 = vst [vmem:[#allocation2 + $0x61] sm:$0xff] %v4746_v39  ;;  %v4869_v56 = vpack.c.bf16 %v4761_v20, %v4759_v27  ;;  %v4865_v47 = vpack.c.bf16 %v9141_v42, %v4835_v49  ;;  %v4803_v15 = vrot.slane %v4761_v20, 1  ;;  %v4804_v53 = vrot.slane %v4762_v8, 1  ;;  %v7841_v3 = vld [vmem:[#allocation8 + $0x120] sm:$0xff]   ;;  %v7844_v49 = vld [vmem:[#allocation8 + $0x158] sm:$0xff]   ;;  %v7852_v43 = vld [vmem:[#allocation8 + $0x148] sm:$0xff]  }
 0x4ce   : > { %5519 = vmatprep.mubr.bf16.mxu0 %v4829_v52  ;;  %v4839_v1 = vrot.slane %v4761_v20, 2  ;;  %v4840_v13 = vrot.slane %v4762_v8, 2  ;;  %v9184_v22 = vpack.c.bf16 %v9129_v25, %v4761_v20  ;;  %v9187_v9 = vsel %vm1576_vm6, %v4809_v54, %v4810_v59  ;;  %v4771_v10 = vld [vmem:[#allocation2 + $0x70] sm:$0xff]  ;;  %v4772_v2 = vld [vmem:[#allocation2 + $0x78] sm:$0x3]  ;;  %v7843_v39 = vld [vmem:[#allocation8 + $0x1a0] sm:$0xff]  }
 0x4cf   : > { %5584 = vmatprep.mubr.bf16.mxu1 %v4869_v56  ;;  %5520 = vmatmul.mubr.bf16.vlgmr.msra.gmra.mxu0 %v4777_v5  ;;  %v9155_v16 = vsel %vm1576_vm6, %v4803_v15, %v4804_v53  ;;  %v4845_v28 = vrot.slane %v9143_v7, 2  ;;  %v4846_v62 = vrot.slane %v9151_v51, 2  ;;  %v4818_v20 = vrot.slane %v4771_v10, 1  ;;  %v7847_v53 = vld [vmem:[#allocation8 + $0x198] sm:$0xff]   ;;  %v7855_v59 = vld [vmem:[#allocation8 + $0x188] sm:$0xff]  }
 0x4d0   : > { %5585 = vmatmul.mubr.bf16.vlgmr.msra.gmra.mxu1 %v4865_v47  ;;  %v9160_v14 = vld [vmem:[#allocation2 + $0x50] sm:$0xff]  ;;  %v4768_v44 = vld [vmem:[#allocation2 + $0x58] sm:$0x3]  ;;  %7184 = vmatpush3.bf16.msra.mxu0 %v7829_v41  ;;  %v9164_v12 = vpack.c.bf16 %v9158_v35, %v9155_v16  ;;  %v9171_v33 = vsel %vm1613_vm7, %v4839_v1, %v4840_v13  ;;  %v4819_v8 = vrot.slane %v4772_v2, 1  ;;  %v7845_v41 = vld [vmem:[#allocation8 + $0x118] sm:$0xff]   ;;  %v4855_v51 = vrot.slane %v4772_v2, 2 }
 0x4d1   : > { %5592 = vmatprep.mubr.bf16.mxu1 %v4870_v17  ;;  %v4812_v48 = vrot.slane %v9160_v14, 1  ;;  %v4813_v40 = vrot.slane %v4768_v44, 1  ;;  %7224 = vmatpush3.bf16.msra.mxu1 %v7831_v4  ;;  %v9191_v38 = vpack.c.bf16 %v9177_v32, %v9171_v33  ;;  %v4849_v27 = vrot.slane %v4768_v44, 2  ;;  %v7848_v13 = vld [vmem:[#allocation8 + $0x150] sm:$0xff]  }
 0x4d2   : > { %7185 = vmatprep.subr.bf16.mxu0 %v7832_v50  ;;  %5527 = vmatprep.mubr.bf16.mxu0 %v9164_v12  ;;  %v4848_v21 = vrot.slane %v9160_v14, 2  ;;  %v4847_v56 = vsel %vm1613_vm7, %v4845_v28, %v4846_v62  ;;  %v9214_v5 = vld [vmem:[#allocation2 + $0x80] sm:$0xff]  ;;  %v9218_v47 = vpack.c.bf16 %v9160_v14, %v9143_v7  ;;  %v9221_v4 = vsel %vm1576_vm6, %v4818_v20, %v4819_v8  ;;  %v7850_v7 = vld [vmem:[#allocation8 + $0x1d0] sm:$0xff]  }
 0x4d3   : > { %7225 = vmatprep.subr.bf16.mxu1 %v7834_v23  ;;  %v9174_v24 = vsel %vm1576_vm6, %v4812_v48, %v4813_v40  ;;  %v4872_v23 = vpack.c.bf16 %v9214_v5, %v4771_v10  ;;  %v7851_v44 = vld [vmem:[#allocation8 + $0x190] sm:$0xff]   ;;  %v7854_v48 = vld [vmem:[#allocation8 + $0x1c8] sm:$0xff]   ;;  %v4875_v2 = vrot.slane %v9214_v5, 1  ;;  %v7867_v20 = vld [vmem:[#allocation8 + $0x200] sm:$0xff]  }
 0x4d4   : > { %7186 = vmatpush3.bf16.msra.mxu0 %v7833_v30  ;;  %v9179_v19 = vld [vmem:[#allocation2 + $0x60] sm:$0xff]  ;;  %v9181_v0 = vld [vmem:[#allocation2 + $0x68] sm:$0x3]  ;;  %v9195_v29 = vpack.c.bf16 %v9174_v24, %v9187_v9  ;;  %v9208_v63 = vsel %vm1613_vm7, %v4848_v21, %v4849_v27  ;;  %v7861_v27 = vld [vmem:[#allocation8 + $0x230] sm:$0xff]  }
 0x4d5   : > { %7226 = vmatpush3.bf16.msra.mxu1 %v7835_v46  ;;  %7187 = vmatprep.subr.bf16.mxu0 %v7836_v18  ;;  %v4871_v25 = vpack.c.bf16 %v9179_v19, %v9160_v14  ;;  %v4815_v31 = vrot.slane %v9179_v19, 1  ;;  %v4816_v60 = vrot.slane %v9181_v0, 1  ;;  %v9224_v15 = vpack.c.bf16 %v9208_v63, %v4847_v56  ;;  %v7853_v46 = vld [vmem:[#allocation8 + $0x108] sm:$0xff]  }
 0x4d6   : > { %7227 = vmatprep.subr.bf16.mxu1 %v7838_v37  ;;  %v4851_v50 = vrot.slane %v9179_v19, 2  ;;  %v4852_v17 = vrot.slane %v9181_v0, 2  ;;  %v4854_v14 = vrot.slane %v4771_v10, 2  ;;  %v9241_v18 = vpack.c.bf16 %v4771_v10, %v9179_v19  ;;  %v7858_v0 = vld [vmem:[#allocation8 + $0x1c0] sm:$0xff]  }
 0x4d7   : > { %5528 = vmatmul.mubr.bf16.gmra.mxu0 %v9184_v22  ;;  %v9211_v52 = vsel %vm1576_vm6, %v4815_v31, %v4816_v60  ;;  %v4887_v37 = vpack.c.bf16 %v9171_v33, %v9141_v42  ;;  %v7859_v19 = vld [vmem:[#allocation8 + $0x180] sm:$0xff]   ;;  %v4879_v42 = vpack.c.bf16 %v9155_v16, %v9138_v6  ;;  %v4888_v33 = vpack.c.bf16 %v4847_v56, %v9177_v32  ;;  %v4776_v16 = vld [vmem:[#allocation2 + $0x98] sm:$0x3] }
 0x4d8   : > { %5593 = vmatmul.mubr.bf16.gmra.mxu1 %v9191_v38  ;;  %5535 = vmatprep.mubr.bf16.mxu0 %v9195_v29  ;;  %v9229_v1 = vpack.c.bf16 %v9221_v4, %v9211_v52  ;;  %v4853_v30 = vsel %vm1613_vm7, %v4851_v50, %v4852_v17  ;;  %v9238_v40 = vsel %vm1613_vm7, %v4854_v14, %v4855_v51  ;;  %v7863_v10 = vld [vmem:[#allocation8 + $0x220] sm:$0xff]   ;;  %v4900_v8 = vrot.slane %v4776_v16, 2 }
 0x4d9   : > { %7188 = vmatpush3.bf16.msra.mxu0 %v7837_v36  ;;  %5600 = vmatprep.mubr.bf16.mxu1 %v4871_v25  ;;  %v9244_v54 = vpack.c.bf16 %v9238_v40, %v4853_v30  ;;  %v7856_v36 = vld [vmem:[#allocation8 + $0x140] sm:$0xff]   ;;  %v4880_v6 = vpack.c.bf16 %v9187_v9, %v9158_v35  ;;  %v4889_v32 = vpack.c.bf16 %v4853_v30, %v9208_v63  ;;  %v4895_v25 = vrot.slane %v4776_v16, 1  ;;  %v7864_v35 = vld [vmem:[#allocation8 + $0x218] sm:$0xff]  }
 0x4da   : > { %7228 = vmatpush3.bf16.msra.mxu1 %v7839_v11  ;;  %7189 = vmatprep.subr.bf16.mxu0 %v7840_v55  ;;  %v7857_v11 = vld [vmem:[#allocation8 + $0x100] sm:$0xff]   ;;  %v7860_v55 = vld [vmem:[#allocation8 + $0x238] sm:$0xff]   ;;  %v4881_v28 = vpack.c.bf16 %v9211_v52, %v9174_v24  ;;  %v4901_v63 = vsel %vm1613_vm7, %v4833_v57, %v4900_v8 }
 0x4db   : > { %7229 = vmatprep.subr.bf16.mxu1 %v7842_v26  ;;  %v4774_v26 = vld [vmem:[#allocation2 + $0x88] sm:$0x3]  ;;  %v4896_v60 = vsel %vm1576_vm6, %v4797_v58, %v4895_v25  ;;  %v7866_v58 = vld [vmem:[#allocation8 + $0x208] sm:$0xff]  }
 0x4dc   : > { %v4876_v21 = vrot.slane %v4774_v26, 1 }
 0x4dd   : > { %7190 = vmatpush3.bf16.msra.mxu0 %v7841_v3  ;;  %v7865_v3 = vld [vmem:[#allocation8 + $0x210] sm:$0xff]  }
 0x4de   : > { %7230 = vmatpush3.bf16.msra.mxu1 %v7843_v39  ;;  %7191 = vmatprep.subr.bf16.mxu0 %v7844_v49  ;;  %v4877_v31 = vsel %vm1576_vm6, %v4875_v2, %v4876_v21  ;;  %v4891_v49 = vpack.c.bf16 %v9125_v45, %v9214_v5 }
 0x4df   : > { %7231 = vmatprep.subr.bf16.mxu1 %v7846_v34  ;;  %5536 = vmatmul.mubr.bf16.gmra.mxu0 %v9218_v47  ;;  %v4898_v39 = vpack.c.bf16 %v4896_v60, %v4877_v31  ;;  %v4882_v24 = vpack.c.bf16 %v4877_v31, %v9221_v4  ;;  %v6328_v31 = vld [vmem:[#allocation9] ss:$0 sm:$0xff] }
 0x4e0   : > { %5601 = vmatmul.mubr.bf16.gmra.mxu1 %v9224_v15  ;;  %5543 = vmatprep.mubr.bf16.mxu0 %v9229_v1 }
 0x4e1   : > { %7192 = vmatpush3.bf16.msra.mxu0 %v7845_v41  ;;  %5608 = vmatprep.mubr.bf16.mxu1 %v4872_v23 }
 0x4e2   : > { %7232 = vmatpush3.bf16.msra.mxu1 %v7847_v53  ;;  %7193 = vmatprep.subr.bf16.mxu0 %v7848_v13 }
 0x4e3   : > { %7233 = vmatprep.subr.bf16.mxu1 %v7850_v7 }
 0x4e5   : > { %7194 = vmatpush3.bf16.msra.mxu0 %v7849_v61 }
 0x4e6   : > { %7234 = vmatpush3.bf16.msra.mxu1 %v7851_v44  ;;  %7195 = vmatprep.subr.bf16.mxu0 %v7852_v43 }
 0x4e7   : > { %7235 = vmatprep.subr.bf16.mxu1 %v7854_v48  ;;  %5544 = vmatmul.mubr.bf16.gmra.mxu0 %v9241_v18 }
 0x4e8   : > { %5609 = vmatmul.mubr.bf16.gmra.mxu1 %v9244_v54  ;;  %5649 = vmatprep.mubr.bf16.mxu0 %v4887_v37 }
 0x4e9   : > { %7196 = vmatpush3.bf16.msra.mxu0 %v7853_v46  ;;  %5714 = vmatprep.mubr.bf16.mxu1 %v9164_v12  ;;  %v7862_v12 = vld [vmem:[#allocation8 + $0x228] sm:$0xff]  }
 0x4ea   : > { %7236 = vmatpush3.bf16.msra.mxu1 %v7855_v59  ;;  %7197 = vmatprep.subr.bf16.mxu0 %v7856_v36 }
 0x4eb   : > { %7237 = vmatprep.subr.bf16.mxu1 %v7858_v0 }
 0x4ed   : > { %7198 = vmatpush3.bf16.msra.mxu0 %v7857_v11 }
 0x4ee   : > { %7238 = vmatpush3.bf16.msra.mxu1 %v7859_v19  ;;  %7371 = vmatprep.subr.bf16.mxu0 %v7860_v55 }
 0x4ef   : > { %7395 = vmatprep.subr.bf16.mxu1 %v7860_v55 }
 0x4f0   : > { %5650 = vmatmul.mubr.bf16.vlgmr.msra.gmra.mxu0 %v4879_v42 }
 0x4f1   : > { %5657 = vmatprep.mubr.bf16.mxu0 %v4888_v33  ;;  %5715 = vmatmul.mubr.bf16.vlgmr.msra.gmra.mxu1 %v9184_v22  ;;  %v4883_v22 = vrot.slane %v9214_v5, 2 }
 0x4f2   : > { %7372 = vmatpush3.bf16.msra.mxu0 %v7860_v55  ;;  %5722 = vmatprep.mubr.bf16.mxu1 %v9195_v29  ;;  %v4884_v29 = vrot.slane %v4774_v26, 2 }
 0x4f3   : > { %7403 = vmatpush3.bf16.msra.mxu1 %v7860_v55  ;;  %7373 = vmatprep.subr.bf16.mxu0 %v7861_v27 }
 0x4f4   : > { %7396 = vmatprep.subr.bf16.mxu1 %v7861_v27  ;;  %v4885_v9 = vsel %vm1613_vm7, %v4883_v22, %v4884_v29 }
 0x4f5   : > { %v4890_v62 = vpack.c.bf16 %v4885_v9, %v9238_v40  ;;  %v4903_v34 = vpack.c.bf16 %v4901_v63, %v4885_v9 }
 0x4f6   : > { %7374 = vmatpush3.bf16.msra.mxu0 %v7861_v27 }
 0x4f7   : > { %7404 = vmatpush3.bf16.msra.mxu1 %v7861_v27  ;;  %7375 = vmatprep.subr.bf16.mxu0 %v7862_v12 }
 0x4f8   : > { %5658 = vmatmul.mubr.bf16.gmra.mxu0 %v4880_v6  ;;  %7397 = vmatprep.subr.bf16.mxu1 %v7862_v12 }
 0x4f9   : > { %5665 = vmatprep.mubr.bf16.mxu0 %v4889_v32  ;;  %5723 = vmatmul.mubr.bf16.gmra.mxu1 %v9218_v47 }
 0x4fa   : > { %7376 = vmatpush3.bf16.msra.mxu0 %v7862_v12  ;;  %5730 = vmatprep.mubr.bf16.mxu1 %v9229_v1 }
 0x4fb   : > { %7405 = vmatpush3.bf16.msra.mxu1 %v7862_v12  ;;  %7377 = vmatprep.subr.bf16.mxu0 %v7863_v10 }
 0x4fc   : > { %7398 = vmatprep.subr.bf16.mxu1 %v7863_v10 }
 0x4fe   : > { %7378 = vmatpush3.bf16.msra.mxu0 %v7863_v10 }
 0x4ff   : > { %7406 = vmatpush3.bf16.msra.mxu1 %v7863_v10  ;;  %7379 = vmatprep.subr.bf16.mxu0 %v7864_v35 }
 0x500   : > { %5666 = vmatmul.mubr.bf16.gmra.mxu0 %v4881_v28  ;;  %7399 = vmatprep.subr.bf16.mxu1 %v7864_v35 }
 0x501   : > { %5673 = vmatprep.mubr.bf16.mxu0 %v4890_v62  ;;  %5731 = vmatmul.mubr.bf16.gmra.mxu1 %v9241_v18 }
 0x502   : > { %7380 = vmatpush3.bf16.msra.mxu0 %v7864_v35  ;;  %5738 = vmatprep.mubr.bf16.mxu1 %v4898_v39 }
 0x503   : > { %7407 = vmatpush3.bf16.msra.mxu1 %v7864_v35  ;;  %7381 = vmatprep.subr.bf16.mxu0 %v7865_v3 }
 0x504   : > { %7400 = vmatprep.subr.bf16.mxu1 %v7865_v3 }
 0x506   : > { %7382 = vmatpush3.bf16.msra.mxu0 %v7865_v3 }
 0x507   : > { %7408 = vmatpush3.bf16.msra.mxu1 %v7865_v3  ;;  %7383 = vmatprep.subr.bf16.mxu0 %v7866_v58 }
 0x508   : > { %5674 = vmatmul.mubr.bf16.gmra.mxu0 %v4882_v24  ;;  %7401 = vmatprep.subr.bf16.mxu1 %v7866_v58 }
 0x509   : > { %5739 = vmatmul.mubr.bf16.gmra.mxu1 %v4891_v49  ;;  %7387 = vmatprep.mubr.bf16.mxu0 %v9191_v38 }
 0x50a   : > { %7384 = vmatpush3.bf16.msra.mxu0 %v7866_v58  ;;  %7391 = vmatprep.mubr.bf16.mxu1 %v9244_v54 }
 0x50b   : > { %7409 = vmatpush3.bf16.msra.mxu1 %v7866_v58  ;;  %7385 = vmatprep.subr.bf16.mxu0 %v7867_v20 }
 0x50c   : > { %7402 = vmatprep.subr.bf16.mxu1 %v7867_v20 }
 0x50e   : > { %7386 = vmatpush3.bf16.msra.mxu0 %v7867_v20 }
 0x50f   : > { %7410 = vmatpush3.bf16.msra.mxu1 %v7867_v20 }
 0x511   : > { %7388 = vmatmul.mubr.bf16.vlgmr.msra.gmra.mxu0 %v9224_v15 }
 0x512   : > { %7392 = vmatmul.mubr.bf16.vlgmr.msra.gmra.mxu1 %v4903_v34 }
 0x58f   : > { %v7119_v52 = vpop.f32.mrf.mxu0 }
 0x590   : > { %v7159_v56 = vpop.f32.mrf.mxu1 }
 0x591   : > { %v7120_v41 = vpop.f32.mrf.mxu0 }
 0x592   : > { %v7160_v38 = vpop.f32.mrf.mxu1  ;;  %v7121_v25 = vadd.f32 %v7120_v41, %v7119_v52 }
 0x593   : > { %v7122_v5 = vpop.f32.mrf.mxu0  ;;  %v7161_v49 = vadd.f32 %v7160_v38, %v7159_v56 }
 0x594   : > { %v7162_v47 = vpop.f32.mrf.mxu1  ;;  %v5522_v24 = vadd.f32 %v7121_v25, %v6328_v31 }
 0x595   : > { %v7123_v4 = vpop.f32.mrf.mxu0 }
 0x596   : > { %v7163_v53 = vpop.f32.mrf.mxu1  ;;  %v7124_v35 = vadd.f32 %v7123_v4, %v7122_v5 }
 0x597   : > { %v7125_v50 = vpop.f32.mrf.mxu0  ;;  %v7164_v8 = vadd.f32 %v7163_v53, %v7162_v47 }
 0x598   : > { %v7165_v1 = vpop.f32.mrf.mxu1  ;;  %v5525_v20 = vadd.f32 %v7124_v35, %v6328_v31 }
 0x599   : > { %v7126_v17 = vpop.f32.mrf.mxu0 }
 0x59a   : > { %v7166_v45 = vpop.f32.mrf.mxu1  ;;  %v7127_v60 = vadd.f32 %v7126_v17, %v7125_v50 }
 0x59b   : > { %v7128_v13 = vpop.f32.mrf.mxu0 }
 0x59c   : > { %v9281_v57 = vpop.f32.mrf.mxu1  ;;  %v5530_v34 = vadd.f32 %v7127_v60, %v6328_v31 }
 0x59d   : > { %v7129_v7 = vpop.f32.mrf.mxu0 }
 0x59e   : > { %v9283_v23 = vpop.f32.mrf.mxu1 }
 0x59f   : > { %v7131_v15 = vpop.f32.mrf.mxu0  ;;  %v7170_v56 = vadd.f32 %v9283_v23, %v9281_v57 }
 0x5a0   : > { %v7171_v51 = vpop.f32.mrf.mxu1 }
 0x5a1   : > { %v7132_v61 = vpop.f32.mrf.mxu0 }
 0x5a2   : > { %v7172_v14 = vpop.f32.mrf.mxu1  ;;  %v7133_v62 = vadd.f32 %v7132_v61, %v7131_v15  ;;  %v5587_v15 = vadd.f32 %v7161_v49, %v5522_v24  ;;  %v5590_v61 = vadd.f32 %v7164_v8, %v5525_v20 }
 0x5a3   : > { %v7134_v44 = vpop.f32.mrf.mxu0  ;;  %v7173_v52 = vadd.f32 %v7172_v14, %v7171_v51 }
 0x5a4   : > { %v9285_v43 = vpop.f32.mrf.mxu1 }
 0x5a5   : > { %v7135_v30 = vpop.f32.mrf.mxu0 }
 0x5a6   : > { %v7175_v48 = vpop.f32.mrf.mxu1  ;;  %v7136_v38 = vadd.f32 %v7135_v30, %v7134_v44 }
 0x5a7   : > { %v7137_v40 = vpop.f32.mrf.mxu0 }
 0x5a8   : > { %v7177_v46 = vpop.f32.mrf.mxu1  ;;  %v5541_v57 = vadd.f32 %v7136_v38, %v6328_v31 }
 0x5a9   : > { %v7138_v18 = vpop.f32.mrf.mxu0 }
 0x5aa   : > { %v7178_v54 = vpop.f32.mrf.mxu1  ;;  %v7139_v39 = vadd.f32 %v7138_v18, %v7137_v40 }
 0x5ab   : > { %v7140_v59 = vpop.f32.mrf.mxu0  ;;  %v7179_v4 = vadd.f32 %v7178_v54, %v7177_v46 }
 0x5ac   : > { %v7180_v37 = vpop.f32.mrf.mxu1  ;;  %v5546_v5 = vadd.f32 %v7139_v39, %v6328_v31 }
 0x5ad   : > { %v7141_v36 = vpop.f32.mrf.mxu0 }
 0x5ae   : > { %v7181_v0 = vpop.f32.mrf.mxu1  ;;  %v7142_v50 = vadd.f32 %v7141_v36, %v7140_v59  ;;  %v5611_v14 = vadd.f32 %v7179_v4, %v5546_v5 }
 0x5af   : > { %v7182_v54 = vadd.f32 %v7181_v0, %v7180_v37 }
 0x5b0   : > { %v7199_v11 = vpop.f32.mrf.mxu0  ;;  %v5549_v46 = vadd.f32 %v7142_v50, %v6328_v31 }
 0x5b1   : > { %v9287_v19 = vpop.f32.mrf.mxu1 }
 0x5b2   : > { %v7200_v55 = vpop.f32.mrf.mxu0 }
 0x5b3   : > { %v9289_v42 = vpop.f32.mrf.mxu1  ;;  %v7201_v47 = vadd.f32 %v7200_v55, %v7199_v11 }
 0x5b4   : > { %v9291_v33 = vpop.f32.mrf.mxu0  ;;  %v7241_v44 = vadd.f32 %v9289_v42, %v9287_v19 }
 0x5b5   : > { %v9293_v27 = vpop.f32.mrf.mxu1  ;;  %v5652_v23 = vadd.f32 %v7201_v47, %v5587_v15 }
 0x5b6   : > { %9457 = vst [vmem:[#allocation16_spill] sm:$0xff] %v9293_v27  ;;  %v9295_v12 = vpop.f32.mrf.mxu0 }
 0x5b7   : > { %v9297_v26 = vpop.f32.mrf.mxu1  ;;  %v5717_v49 = vadd.f32 %v7241_v44, %v5652_v23 }
 0x5b8   : > { %9458 = vst [vmem:[#allocation20_spill] sm:$0xff] %v9297_v26  ;;  %v7205_v6 = vpop.f32.mrf.mxu0  ;;  %v7167_v26 = vadd.f32 %v7166_v45, %v7165_v1 }
 0x5b9   : > { %v7245_v16 = vpop.f32.mrf.mxu1 }
 0x5ba   : > { %v7206_v32 = vpop.f32.mrf.mxu0  ;;  %v5595_v25 = vadd.f32 %v7167_v26, %v5530_v34 }
 0x5bb   : > { %v7246_v10 = vpop.f32.mrf.mxu1  ;;  %v7207_v40 = vadd.f32 %v7206_v32, %v7205_v6 }
 0x5bc   : > { %v7208_v22 = vpop.f32.mrf.mxu0  ;;  %v7247_v32 = vadd.f32 %v7246_v10, %v7245_v16 }
 0x5bd   : > { %v9299_v29 = vpop.f32.mrf.mxu1  ;;  %v5660_v6 = vadd.f32 %v7207_v40, %v5595_v25 }
 0x5be   : > { %9459 = vst [vmem:[#allocation18_spill] sm:$0xff] %v9299_v29  ;;  %v7209_v2 = vpop.f32.mrf.mxu0  ;;  %v7130_v29 = vadd.f32 %v7129_v7, %v7128_v13  ;;  %v7176_v13 = vadd.f32 %v7175_v48, %v9285_v43  ;;  %v7204_v48 = vadd.f32 %v9295_v12, %v9291_v33  ;;  %v9463_v33 = vld [vmem:[#allocation16_spill] sm:$0xff] }
 0x5bf   : > { %v9301_v21 = vpop.f32.mrf.mxu1  ;;  %v7210_v26 = vadd.f32 %v7209_v2, %v7208_v22  ;;  %v5725_v19 = vadd.f32 %v7247_v32, %v5660_v6  ;;  %v9464_v12 = vld [vmem:[#allocation20_spill] sm:$0xff] }
 0x5c0   : > { %9460 = vst [vmem:[#allocation17_spill] sm:$0xff] %v9301_v21  ;;  %v7211_v9 = vpop.f32.mrf.mxu0  ;;  %v5538_v21 = vadd.f32 %v7133_v62, %v6328_v31  ;;  %v5533_v1 = vadd.f32 %v7130_v29, %v6328_v31  ;;  %v5614_v29 = vadd.f32 %v7182_v54, %v5549_v46  ;;  %v5606_v42 = vadd.f32 %v7176_v13, %v5541_v57 }
 0x5c1   : > { %v7251_v28 = vpop.f32.mrf.mxu1  ;;  %v5655_v20 = vadd.f32 %v7204_v48, %v5590_v61 }
 0x5c2   : > { %v7212_v3 = vpop.f32.mrf.mxu0  ;;  %v5603_v45 = vadd.f32 %v7173_v52, %v5538_v21  ;;  %v5598_v43 = vadd.f32 %v7170_v56, %v5533_v1 }
 0x5c3   : > { %v7252_v58 = vpop.f32.mrf.mxu1  ;;  %v7213_v7 = vadd.f32 %v7212_v3, %v7211_v9 }
 0x5c4   : > { %v7214_v63 = vpop.f32.mrf.mxu0  ;;  %v7253_v37 = vadd.f32 %v7252_v58, %v7251_v28  ;;  %v5663_v2 = vadd.f32 %v7210_v26, %v5598_v43  ;;  %v7244_v28 = vadd.f32 %v9464_v12, %v9463_v33 }
 0x5c5   : > { %v7254_v27 = vpop.f32.mrf.mxu1  ;;  %v5668_v55 = vadd.f32 %v7213_v7, %v5603_v45  ;;  %v9461_v9 = vld [vmem:[#allocation18_spill] sm:$0xff] }
 0x5c6   : > { %v7215_v41 = vpop.f32.mrf.mxu0  ;;  %v5720_v1 = vadd.f32 %v7244_v28, %v5655_v20 }
 0x5c7   : > { %v7255_v17 = vpop.f32.mrf.mxu1  ;;  %v7216_v21 = vadd.f32 %v7215_v41, %v7214_v63  ;;  %v9462_v31 = vld [vmem:[#allocation17_spill] sm:$0xff]  ;;  %v5733_v63 = vadd.f32 %v7253_v37, %v5668_v55 }
 0x5c8   : > { %v7217_v18 = vpop.f32.mrf.mxu0  ;;  %v7250_v62 = vadd.f32 %v9462_v31, %v9461_v9  ;;  %v7256_v52 = vadd.f32 %v7255_v17, %v7254_v27 }
 0x5c9   : > { %v7257_v53 = vpop.f32.mrf.mxu1  ;;  %v5671_v34 = vadd.f32 %v7216_v21, %v5606_v42 }
 0x5ca   : > { %v7218_v51 = vpop.f32.mrf.mxu0 }
 0x5cb   : > { %v7219_v59 = vadd.f32 %v7218_v51, %v7217_v18  ;;  %v7258_v36 = vpop.f32.mrf.mxu1  ;;  %v5728_v18 = vadd.f32 %v7250_v62, %v5663_v2  ;;  %v5736_v27 = vadd.f32 %v7256_v52, %v5671_v34 }
 0x5cc   : > { %v7259_v35 = vadd.f32 %v7258_v36, %v7257_v53  ;;  %v7220_v60 = vpop.f32.mrf.mxu0 }
 0x5cd   : > { %v5676_v30 = vadd.f32 %v7219_v59, %v5611_v14  ;;  %v7260_v11 = vpop.f32.mrf.mxu1 }
 0x5ce   : > { %v7221_v0 = vpop.f32.mrf.mxu0 }
 0x5cf   : > { %v7222_v16 = vadd.f32 %v7221_v0, %v7220_v60  ;;  %v7261_v10 = vpop.f32.mrf.mxu1  ;;  %v5741_v22 = vadd.f32 %v7259_v35, %v5676_v30 }
 0x5d0   : > { %v7262_v3 = vadd.f32 %v7261_v10, %v7260_v11 }
 0x5d1   : > { %v5679_v39 = vadd.f32 %v7222_v16, %v5614_v29  ;;  %v7389_v24 = vpop.f32.mrf.mxu0 }
 0x5d2   : > { %v5790_v58 = vadd.f32 %v7389_v24, %v5725_v19  ;;  %v7393_v8 = vpop.f32.mrf.mxu1 }
 0x5d3   : > { %v5806_v41 = vadd.f32 %v7393_v8, %v5741_v22  ;;  %v5781_v5 = vpop.f32.mrf.mxu0  ;;  %v5744_v4 = vadd.f32 %v7262_v3, %v5679_v39 }
 0x5d4   : > { %v6403_v50 = vmul.f32 -1.442695, %v5790_v58  ;;  %v5782_v15 = vadd.f32 %v5781_v5, %v5717_v49  ;;  %v5797_v40 = vpop.f32.mrf.mxu1 }
 0x5d5   : > { %v6407_v25 = vmul.f32 -1.442695, %v5806_v41  ;;  %v5798_v56 = vadd.f32 %v5797_v40, %v5733_v63  ;;  %v7390_v38 = vpop.f32.mrf.mxu0 }
 0x5d6   : > { %7868 = vpow2.f32 %v6403_v50  ;;  %v6401_v61 = vmul.f32 -1.442695, %v5782_v15  ;;  %v5793_v47 = vadd.f32 %v7390_v38, %v5728_v18  ;;  %v7394_v53 = vpop.f32.mrf.mxu1 }
 0x5d7   : > { %7870 = vpow2.f32 %v6407_v25  ;;  %v6405_v45 = vmul.f32 -1.442695, %v5798_v56  ;;  %v5809_v13 = vadd.f32 %v7394_v53, %v5744_v4  ;;  %v5784_v7 = vpop.f32.mrf.mxu0 }
 0x5d8   : > { %7872 = vpow2.f32 %v6401_v61  ;;  %v6404_v17 = vmul.f32 -1.442695, %v5793_v47  ;;  %v5785_v51 = vadd.f32 %v5784_v7, %v5720_v1  ;;  %v5800_v14 = vpop.f32.mrf.mxu1 }
 0x5d9   : > { %7874 = vpow2.f32 %v6405_v45  ;;  %v6408_v46 = vmul.f32 -1.442695, %v5809_v13  ;;  %v5801_v54 = vadd.f32 %v5800_v14, %v5736_v27 }
 0x5da   : > { %7876 = vpow2.f32 %v6404_v17  ;;  %v6402_v59 = vmul.f32 -1.442695, %v5785_v51 }
 0x5db   : > { %7878 = vpow2.f32 %v6408_v46  ;;  %v6406_v36 = vmul.f32 -1.442695, %v5801_v54 }
 0x5dc   : > { %7880 = vpow2.f32 %v6402_v59 }
 0x5dd   : > { %7882 = vpow2.f32 %v6406_v36 }
 0x5e3   : > { %v7869_v6 = vpop.eup %7868 }
 0x5e4   : > { %v7871_v32 = vpop.eup %7870  ;;  %v5838_v26 = vadd.f32 1.0, %v7869_v6 }
 0x5e5   : > { %v7873_v35 = vpop.eup %7872  ;;  %v5842_v60 = vadd.f32 1.0, %v7871_v32 }
 0x5e6   : > { %v7875_v57 = vpop.eup %7874  ;;  %7884 = vrcp.f32 %v5838_v26  ;;  %v5836_v23 = vadd.f32 1.0, %v7873_v35 }
 0x5e7   : > { %v7877_v44 = vpop.eup %7876  ;;  %7886 = vrcp.f32 %v5842_v60  ;;  %v5840_v30 = vadd.f32 1.0, %v7875_v57 }
 0x5e8   : > { %v7879_v11 = vpop.eup %7878  ;;  %7888 = vrcp.f32 %v5836_v23  ;;  %v5839_v43 = vadd.f32 1.0, %v7877_v44 }
 0x5e9   : > { %v7881_v48 = vpop.eup %7880  ;;  %7890 = vrcp.f32 %v5840_v30  ;;  %v5843_v55 = vadd.f32 1.0, %v7879_v11 }
 0x5ea   : > { %v7883_v37 = vpop.eup %7882  ;;  %7892 = vrcp.f32 %v5839_v43  ;;  %v5837_v0 = vadd.f32 1.0, %v7881_v48 }
 0x5eb   : > { %7894 = vrcp.f32 %v5843_v55  ;;  %v5841_v29 = vadd.f32 1.0, %v7883_v37 }
 0x5ec   : > { %7896 = vrcp.f32 %v5837_v0 }
 0x5ed   : > { %7898 = vrcp.f32 %v5841_v29 }
 0x5f3   : > { %v7885_v21 = vpop.eup %7884 }
 0x5f4   : > { %v7887_v16 = vpop.eup %7886  ;;  %5862 = vst [vmem:[%s274_s9 + $0x10] sm:$0xff] %v7885_v21 }
 0x5f5   : > { %v7889_v10 = vpop.eup %7888  ;;  %5866 = vst [vmem:[%s274_s9 + $0x30] sm:$0xff] %v7887_v16 }
 0x5f6   : > { %v7891_v22 = vpop.eup %7890  ;;  %5860 = vst [vmem:[%s274_s9] sm:$0xff] %v7889_v10 }
 0x5f7   : > { %v7893_v2 = vpop.eup %7892  ;;  %5864 = vst [vmem:[%s274_s9 + $0x20] sm:$0xff] %v7891_v22 }
 0x5f8   : > { %v7895_v9 = vpop.eup %7894  ;;  %5863 = vst [vmem:[%s274_s9 + $0x18] sm:$0xff] %v7893_v2 }
 0x5f9   : > { %v7897_v31 = vpop.eup %7896  ;;  %5867 = vst [vmem:[%s274_s9 + $0x38] sm:$0xff] %v7895_v9 }
 0x5fa   : > { %v7899_v62 = vpop.eup %7898  ;;  %5861 = vst [vmem:[%s274_s9 + $0x8] sm:$0xff] %v7897_v31 }
 0x5fb   : > { %5865 = vst [vmem:[%s274_s9 + $0x28] sm:$0xff] %v7899_v62 }
 0x5fc   : > { %8020 = shalt.err (!%p8017_p9)
}
 0x5fd   : > { %s8021_s8 = scalar_lea.hbm %s9319_s14, 1024  ;;  %s8025_s26 = scalar_lea.hbm %s9368_s5, 2048 }
 0x5fe   : > { %p8022_p13 = scmp.ne.s32.totalorder %s9319_s14, %s8021_s8  ;;  %p8026_p11 = scmp.lt.s32.totalorder %s9319_s14, %s9368_s5 }
 0x5ff   : > { %p8027_p12 = scmp.lt.s32.totalorder %s8025_s26, %s8021_s8 }
 0x600   : > { %p8023_p8 = pnand %p8022_p13, %p9465_p1 }
 0x601   : > { %p8028_p10 = por %p8027_p12, %p8026_p11 }
 0x602   : > { %p8024_p5 = pneg %p8023_p8 }
 0x604   : > { %p8029_p0 = pnand %p8028_p10, %p8024_p5 }
 0x606   : > { %8032 = shalt.err (!%p8029_p0)
}
 0x607   : > { %s8091_s9 = smov 128   ;;  %s8092_s11 = smov 8  }
 0x608   : > { %7428 = dma.vmem_to_hbm [thread:$0]  (%p9465_p1), %s9321_s12, 1024, %s9319_s14, %s9323_s22, %s8091_s9, %s8091_s9, %s8092_s11  }
 0x609 PF: > { %p7455_p3 = scmp.ge.s32.totalorder %s8079_s21, 2  ;;  %s5897_s10 = sand.u32 1, %s8067_s18  }
 0x60a   : > { %p9466_p2 = scmp.ne.s32.totalorder %s9379_s29, 0  ;;  %s5898_s13 = scalar_lea.sflag [#allocation5], %s5897_s10 }
 0x60c   : > { %p7444_p4 = pnand %p7455_p3, %p9466_p2 }
 0x60e   : > { %p7445_p6 = pneg %p7444_p4 }
 0x610   : > { %8062 = dma.done.wait (%p7445_p6), %s5898_s13, 1024  }
 0x611   : > { %8064 = vsyncadd (%p7445_p6), %s5898_s13, 4294966272  ;;  %p18_p7 = scmp.ge.s32.totalorder %s8148_s24, 4   ;;  %s9467_s18 = smov %s8071_s19 }
 0x612   : > { %s9468_s19 = smov %s8075_s20  ;;  %s9469_s20 = smov %s8159_s27 }
 0x613   : > { %s9470_s21 = smov %s8148_s24  ;;  %20 = sbr.rel (!%p18_p7) target bundleno = 6 (0x6), region = 99 }
 0x618   :  { %5903 = vsyncpa [#allocation4], 1 }
 0x619   :  { %5905 = vsyncpa [#allocation4 + $0x1], 1 }
 0x61a   :  { %5906 = vsyncpa [#allocation7], 1 }
 0x61b   :  { %5907 = vsyncpa [#allocation10], 1 }
 0x61c   :  { %5908 = vsyncpa [#allocation5], 1 }
 0x61d   :  { %5910 = vsyncpa [#allocation5 + $0x1], 1 }

</bundles_post_ra>
